<compile_context>
chip_gen: v7x
topology: tpu7x:2x2x1
jax: 0.10.0
libtpu: 0.0.40
codegen_flags: <defaults>
</compile_context>

<pallas_src>
import math
from functools import partial

import jax
import jax.numpy as jnp
from jax.experimental import pallas as pl
from jax.experimental.pallas import tpu as pltpu


# ----------------------------------------------------------------------------
# Kernel: one (batch, pixel-tile) grid step.
#   w_ref  : (dim, 2*hidden)   1x1-conv weight (channel matmul on the MXU)
#   b_ref  : (dim, 1)          bias (broadcast over pixels)
#   fp_ref : (2*hidden, 3)     per-channel [freq_y, freq_x, phase] table
#   o_ref  : (1, dim, tile_n)  channel-major output block
# ----------------------------------------------------------------------------
def pos_enc_kernel(w_ref, b_ref, fp_ref, o_ref, *, H, W, tile_n, scale, eps):
    j = pl.program_id(1)

    # Pixel indices for this tile, along lanes.
    p_i = jax.lax.broadcasted_iota(jnp.int32, (1, tile_n), 1)
    p = p_i.astype(jnp.float32) + (j * tile_n).astype(jnp.float32)

    # Decompose flat pixel index into (row, col).  +0.5 before the floor makes
    # the float division robust to 1-ulp rounding at exact multiples of W.
    w_f = jnp.float32(W)
    h_idx = jnp.floor((p + 0.5) / w_f)          # (1, tile_n) row index
    w_idx = p - h_idx * w_f                     # (1, tile_n) col index

    # Normalized * scaled coordinates (matches cumsum-of-ones reference).
    y = (h_idx + 1.0) * jnp.float32(scale / (H + eps))
    x = (w_idx + 1.0) * jnp.float32(scale / (W + eps))

    # Fused Fourier features in PyTorch channel order:
    #   feat[c, p] = sin(fy[c]*y[p] + fx[c]*x[p] + phase[c])   (cos = sin(+pi/2))
    fy = fp_ref[:, 0:1]                         # (2*hidden, 1)
    fx = fp_ref[:, 1:2]
    ph = fp_ref[:, 2:3]
    feat = jnp.sin(fy * y + fx * x + ph)        # (2*hidden, tile_n)

    # 1x1 Conv2d == channel matmul on the MXU, output already channel-major.
    out = jnp.dot(w_ref[...], feat, preferred_element_type=jnp.float32) + b_ref[...]
    o_ref[...] = out[None]                      # (1, dim, tile_n)


# ----------------------------------------------------------------------------
# Wrapper: constant tables, tiling, pallas_call, final (free) reshape.
# ----------------------------------------------------------------------------
def positional_encoding_fourier(
    B, H, W, conv_weight, conv_bias, *,
    hidden_dim=32, dim=128, temperature=10000, tile_n=1024
):
    scale = 2.0 * math.pi
    eps = 1e-6
    HW = H * W

    # Tile size: multiple of 128, no larger than the (128-rounded) pixel count.
    tile_n = max(128, min((int(tile_n) // 128) * 128, pl.cdiv(HW, 128) * 128))
    HWp = pl.cdiv(HW, tile_n) * tile_n
    n_tiles = HWp // tile_n

    # Per-channel frequency / phase table in PyTorch's interleaved layout:
    #   channels [0, hidden)      : pos_y -> [sin f0, cos f0, sin f1, cos f1, ...]
    #   channels [hidden, 2*hid)  : pos_x -> same pattern
    hd2 = hidden_dim // 2
    k = jnp.arange(hd2, dtype=jnp.float32)
    inv_f = jnp.float32(temperature) ** (-2.0 * k / hidden_dim)       # (hd2,)
    inv_pair = jnp.repeat(inv_f, 2)                                   # (hidden,)
    phase_pair = jnp.tile(jnp.array([0.0, 0.5 * math.pi], jnp.float32), hd2)
    zeros = jnp.zeros((hidden_dim,), jnp.float32)
    fy = jnp.concatenate([inv_pair, zeros])
    fx = jnp.concatenate([zeros, inv_pair])
    ph = jnp.concatenate([phase_pair, phase_pair])
    freq_phase = jnp.stack([fy, fx, ph], axis=1)                      # (2*hidden, 3)

    w2d = conv_weight.reshape(dim, 2 * hidden_dim).astype(jnp.float32)
    b2d = conv_bias.reshape(dim, 1).astype(jnp.float32)

    kernel = partial(pos_enc_kernel, H=H, W=W, tile_n=tile_n, scale=scale, eps=eps)

    out = pl.pallas_call(
        kernel,
        out_shape=jax.ShapeDtypeStruct((B, dim, HWp), jnp.float32),
        grid_spec=pltpu.PrefetchScalarGridSpec(
            num_scalar_prefetch=0,
            grid=(B, n_tiles),
            in_specs=[
                pl.BlockSpec((dim, 2 * hidden_dim), lambda b, j: (0, 0)),  # weight
                pl.BlockSpec((dim, 1), lambda b, j: (0, 0)),               # bias
                pl.BlockSpec((2 * hidden_dim, 3), lambda b, j: (0, 0)),    # freq/phase
            ],
            out_specs=pl.BlockSpec((1, dim, tile_n), lambda b, j: (b, 0, j)),
        ),
        compiler_params=pltpu.CompilerParams(
            dimension_semantics=("parallel", "parallel"),
        ),
    )(w2d, b2d, freq_phase)

    if HWp != HW:
        out = out[:, :, :HW]
    return out.reshape(B, dim, H, W)


# ----------------------------------------------------------------------------
# Pure-JAX reference (mirrors the PyTorch forward exactly) for verification.
# ----------------------------------------------------------------------------
def reference(B, H, W, conv_weight, conv_bias, *, hidden_dim, dim, temperature):
    scale = 2.0 * math.pi
    eps = 1e-6
    not_mask = jnp.ones((B, H, W), jnp.float32)
    y_embed = jnp.cumsum(not_mask, axis=1)
    x_embed = jnp.cumsum(not_mask, axis=2)
    y_embed = y_embed / (y_embed[:, -1:, :] + eps) * scale
    x_embed = x_embed / (x_embed[:, :, -1:] + eps) * scale
    dim_t = jnp.arange(hidden_dim, dtype=jnp.float32)
    dim_t = temperature ** (2.0 * jnp.floor(dim_t / 2.0) / hidden_dim)
    pos_x = x_embed[..., None] / dim_t
    pos_y = y_embed[..., None] / dim_t
    pos_x = jnp.stack(
        [jnp.sin(pos_x[..., 0::2]), jnp.cos(pos_x[..., 1::2])], axis=4
    ).reshape(B, H, W, -1)
    pos_y = jnp.stack(
        [jnp.sin(pos_y[..., 0::2]), jnp.cos(pos_y[..., 1::2])], axis=4
    ).reshape(B, H, W, -1)
    pos = jnp.concatenate([pos_y, pos_x], axis=3)          # (B,H,W,2*hidden)
    w2d = conv_weight.reshape(dim, 2 * hidden_dim)
    out = jnp.einsum("bhwc,dc->bdhw", pos, w2d) + conv_bias[None, :, None, None]
    return out


if __name__ == "__main__":
    B, H, W = 2, 16, 16
    hidden_dim, dim, temperature = 32, 128, 10000

    key = jax.random.PRNGKey(0)
    kw, kb = jax.random.split(key)
    # Conv2d(hidden_dim*2, dim, kernel_size=1): weight (dim, 2*hidden, 1, 1), bias (dim,)
    conv_weight = 0.02 * jax.random.normal(
        kw, (dim, 2 * hidden_dim, 1, 1), dtype=jnp.float32
    )
    conv_bias = 0.02 * jax.random.normal(kb, (dim,), dtype=jnp.float32)

    out = positional_encoding_fourier(
        B, H, W, conv_weight, conv_bias,
        hidden_dim=hidden_dim, dim=dim, temperature=temperature,
    )
    out = jax.block_until_ready(out)

    ref = reference(
        B, H, W, conv_weight, conv_bias,
        hidden_dim=hidden_dim, dim=dim, temperature=temperature,
    )
    assert out.shape == (B, dim, H, W)
    assert jnp.allclose(out, ref, atol=1e-4, rtol=1e-4), "mismatch vs reference"

    print("KERNEL_OK")
</pallas_src>

<mosaic_0001>
module attributes {stable_mosaic.version = 11 : i64} {
  func.func @pos_enc_kernel(%arg0: i32, %arg1: i32, %arg2: memref<128x64xf32, #tpu.memory_space<vmem>>, %arg3: memref<128x1xf32, #tpu.memory_space<vmem>>, %arg4: memref<64x3xf32, #tpu.memory_space<vmem>>, %arg5: memref<1x128x256xf32, #tpu.memory_space<vmem>>) attributes {dimension_semantics = [#tpu.dimension_semantics<parallel>, #tpu.dimension_semantics<parallel>], iteration_bounds = array<i64: 2, 1>, scalar_prefetch = 0 : i64, scratch_operands = 0 : i64, tpu.core_type = #tpu.core_type<tc>, window_params = [{pipeline_mode = #tpu.pipeline_mode<synchronous>, transform_indices = @transform_0, window_bounds = array<i64: 128, 64>}, {pipeline_mode = #tpu.pipeline_mode<synchronous>, transform_indices = @transform_1, window_bounds = array<i64: 128, 1>}, {pipeline_mode = #tpu.pipeline_mode<synchronous>, transform_indices = @transform_2, window_bounds = array<i64: 64, 3>}, {transform_indices = @transform_3, window_bounds = array<i64: 1, 128, 256>}]} {
    %0 = tpu.iota {dimensions = array<i32: 1>} : vector<1x256xi32>
    %1 = arith.sitofp %0 : vector<1x256xi32> to vector<1x256xf32>
    %c256_i32 = arith.constant 256 : i32
    %2 = arith.muli %arg1, %c256_i32 : i32
    %3 = arith.sitofp %2 : i32 to f32
    %4 = vector.broadcast %3 : f32 to vector<1x256xf32>
    %5 = arith.addf %1, %4 : vector<1x256xf32>
    %cst = arith.constant 5.000000e-01 : f32
    %6 = vector.broadcast %cst : f32 to vector<1x256xf32>
    %7 = arith.addf %5, %6 : vector<1x256xf32>
    %cst_0 = arith.constant 1.600000e+01 : f32
    %8 = vector.broadcast %cst_0 : f32 to vector<1x256xf32>
    %9 = arith.divf %7, %8 : vector<1x256xf32>
    %10 = math.floor %9 : vector<1x256xf32>
    %cst_1 = arith.constant 1.600000e+01 : f32
    %11 = vector.broadcast %cst_1 : f32 to vector<1x256xf32>
    %12 = arith.mulf %10, %11 : vector<1x256xf32>
    %13 = arith.subf %5, %12 : vector<1x256xf32>
    %cst_2 = arith.constant 1.000000e+00 : f32
    %14 = vector.broadcast %cst_2 : f32 to vector<1x256xf32>
    %15 = arith.addf %10, %14 : vector<1x256xf32>
    %cst_3 = arith.constant 0.392699063 : f32
    %16 = vector.broadcast %cst_3 : f32 to vector<1x256xf32>
    %17 = arith.mulf %15, %16 : vector<1x256xf32>
    %cst_4 = arith.constant 1.000000e+00 : f32
    %18 = vector.broadcast %cst_4 : f32 to vector<1x256xf32>
    %19 = arith.addf %13, %18 : vector<1x256xf32>
    %cst_5 = arith.constant 0.392699063 : f32
    %20 = vector.broadcast %cst_5 : f32 to vector<1x256xf32>
    %21 = arith.mulf %19, %20 : vector<1x256xf32>
    %c0 = arith.constant 0 : index
    %c0_6 = arith.constant 0 : index
    %22 = vector.load %arg4[%c0, %c0_6] : memref<64x3xf32, #tpu.memory_space<vmem>>, vector<64x1xf32>
    %c0_7 = arith.constant 0 : index
    %c1 = arith.constant 1 : index
    %23 = vector.load %arg4[%c0_7, %c1] : memref<64x3xf32, #tpu.memory_space<vmem>>, vector<64x1xf32>
    %c0_8 = arith.constant 0 : index
    %c2 = arith.constant 2 : index
    %24 = vector.load %arg4[%c0_8, %c2] : memref<64x3xf32, #tpu.memory_space<vmem>>, vector<64x1xf32>
    %25 = vector.broadcast %22 : vector<64x1xf32> to vector<64x256xf32>
    %26 = vector.broadcast %17 : vector<1x256xf32> to vector<64x256xf32>
    %27 = arith.mulf %25, %26 : vector<64x256xf32>
    %28 = vector.broadcast %23 : vector<64x1xf32> to vector<64x256xf32>
    %29 = vector.broadcast %21 : vector<1x256xf32> to vector<64x256xf32>
    %30 = arith.mulf %28, %29 : vector<64x256xf32>
    %31 = arith.addf %27, %30 : vector<64x256xf32>
    %32 = vector.broadcast %24 : vector<64x1xf32> to vector<64x256xf32>
    %33 = arith.addf %31, %32 : vector<64x256xf32>
    %34 = math.sin %33 : vector<64x256xf32>
    %c0_9 = arith.constant 0 : index
    %c0_10 = arith.constant 0 : index
    %35 = vector.load %arg2[%c0_9, %c0_10] : memref<128x64xf32, #tpu.memory_space<vmem>>, vector<128x64xf32>
    %cst_11 = arith.constant dense<0.000000e+00> : vector<128x256xf32>
    %36 = tpu.matmul %35, %34, %cst_11 {dimension_numbers = #tpu.dot_dimension_numbers<[1], [0], [0], [1], [0, 0, 1, 1], [], []>} : vector<128x64xf32>, vector<64x256xf32>, vector<128x256xf32> -> vector<128x256xf32>
    %c0_12 = arith.constant 0 : index
    %c0_13 = arith.constant 0 : index
    %37 = vector.load %arg3[%c0_12, %c0_13] : memref<128x1xf32, #tpu.memory_space<vmem>>, vector<128x1xf32>
    %38 = vector.broadcast %37 : vector<128x1xf32> to vector<128x256xf32>
    %39 = arith.addf %36, %38 : vector<128x256xf32>
    %40 = vector.shape_cast %39 : vector<128x256xf32> to vector<1x128x256xf32>
    %c0_14 = arith.constant 0 : index
    %c0_15 = arith.constant 0 : index
    %c0_16 = arith.constant 0 : index
    %41 = vector.load %arg5[%c0_14, %c0_15, %c0_16] : memref<1x128x256xf32, #tpu.memory_space<vmem>>, vector<1x128x256xf32>
    tpu.vector_store %arg5[%c0_14, %c0_15, %c0_16], %40 {strides = array<i32>} : memref<1x128x256xf32, #tpu.memory_space<vmem>>, vector<1x128x256xf32>,
    return
  }
  func.func @transform_0(%arg0: i32, %arg1: i32) -> (i32, i32) {
    %c0_i32 = arith.constant 0 : i32
    %c0_i32_0 = arith.constant 0 : i32
    %c0_i32_1 = arith.constant 0 : i32
    return %c0_i32, %c0_i32_0 : i32, i32
  }
  func.func @transform_1(%arg0: i32, %arg1: i32) -> (i32, i32) {
    %c0_i32 = arith.constant 0 : i32
    %c0_i32_0 = arith.constant 0 : i32
    %c0_i32_1 = arith.constant 0 : i32
    return %c0_i32, %c0_i32_0 : i32, i32
  }
  func.func @transform_2(%arg0: i32, %arg1: i32) -> (i32, i32) {
    %c0_i32 = arith.constant 0 : i32
    %c0_i32_0 = arith.constant 0 : i32
    %c0_i32_1 = arith.constant 0 : i32
    return %c0_i32, %c0_i32_0 : i32, i32
  }
  func.func @transform_3(%arg0: i32, %arg1: i32) -> (i32, i32, i32) {
    %c0_i32 = arith.constant 0 : i32
    %c0_i32_0 = arith.constant 0 : i32
    return %arg0, %c0_i32, %arg1 : i32, i32, i32
  }
}

</mosaic_0001>

<bundles_post_ra>
// kernel: tpu_custom_call.1
= control target key start
LH: loop header
LB: loop body
LE: loop exit
PB: predicated region body
PF: predicated region fallthrough
CT: control target
= control target key end

     0   :  { %8 = vsyncpa [#allocation3], 0  ;;  %s4980_s0 = inlined_call_operand.vmem [shape: f32[128,64], index: 0, kind: input, shape index: {}]   ;;  %s4981_s1 = inlined_call_operand.vmem [shape: f32[128,1], index: 1, kind: input, shape index: {}]   ;;  %s4982_s2 = inlined_call_operand.vmem [shape: f32[64,3], index: 2, kind: input, shape index: {}]   ;;  %s4983_s3 = inlined_call_operand.hbm [shape: f32[2,128,256], index: 3, kind: output, shape index: {}]  }
   0x1   :  { %10 = vsyncpa [#allocation3 + $0x1], 0  ;;  %s2902_s12 = smov 0   ;;  %s2904_s13 = smov 0  }
   0x2   :  { %s2906_s14 = smov 0   ;;  %s2908_s15 = smov 0  }
   0x3   :  { %s2910_s16 = smov 0   ;;  %s2912_s17 = smov 0  }
   0x4 LB: > { %s2464_s18 = sadd.s32 4294967295, %s2867_s17   ;;  %s2465_s19 = sadd.s32 4294967294, %s2867_s17   ;;  %s2867_s17 = sphi %s2912_s17, %s16_s17   ;;  %s2863_s16 = sphi %s2910_s16, %s5336_s16   ;;  %s2859_s15 = sphi %s2908_s15, %s5335_s15   ;;  %s2855_s14 = sphi %s2906_s14, %s5334_s14   ;;  %s2851_s13 = sphi %s2904_s13, %s5333_s13   ;;  %s2847_s12 = sphi %s2902_s12, %s5332_s12  }
   0x5   : > { %s28_s20 = sadd.s32 1, %s2863_s16  ;;  %s100_s21 = sadd.s32 1, %s2855_s14 }
   0x6   : > { %p30_p0 = scmp.ge.s32.totalorder %s28_s20, 2  ;;  %p110_p1 = scmp.ne.s32.totalorder %s2855_s14, %s2851_s13 }
   0x7   : > { %p111_p2 = scmp.eq.s32.totalorder %s2464_s18, 1  ;;  %p116_p3 = scmp.ne.s32.totalorder %s2851_s13, %s2847_s12 }
   0x8   : > { %s5338_s20 = smov (%p30_p0, %s28_s20), 0  ;;  %p117_p5 = scmp.eq.s32.totalorder %s2465_s19, 1 }
   0x9   : > { %p2942_p4 = por %p111_p2, %p110_p1  ;;  %s95_s23 = ssub.s32 %s2863_s16, %s5338_s20 }
   0xa   : > { %p2467_p6 = scmp.ge.s32.totalorder %s2867_s17, 1  ;;  %p98_p7 = scmp.eq.s32.totalorder %s95_s23, 0 }
   0xb   : > { %p2949_p8 = por %p117_p5, %p116_p3  ;;  %p144_p9 = scmp.lt.s32.totalorder %s2867_s17, 3 }
   0xc   : > { %s2955_s25 = scalar_select %p98_p7, %s2855_s14, %s100_s21  }
   0xd   : > { %p145_p10 = pnand %p2467_p6, %p144_p9 }
   0xf   : > { %148 = sbr.rel (%p145_p10) target bundleno = 862 (0x35e), region = 32 }
  0x16   : > { %v193_v0 = vld [vmem:[%s4982_s2] sm:$0xff]  ;;  %v2869_v1 = vmov 1   ;;  %v2870_v2 = vmov 0   ;;  %v194_v3 = vld [vmem:[%s4982_s2 + $0x8] sm:$0xff]  ;;  %v195_v4 = vld [vmem:[%s4982_s2 + $0x10] sm:$0xff]  ;;  %v2871_v7 = vmov 2   ;;  %v164_v11 = vlaneseq }
  0x17   : > { %2711 = vset.pattern.permute.xlu1 %v2869_v1  ;;  %2710 = vset.pattern.permute.xlu0 %v2870_v2  ;;  %v196_v5 = vld [vmem:[%s4982_s2 + $0x18] sm:$0xff]  ;;  %v197_v6 = vld [vmem:[%s4982_s2 + $0x20] sm:$0xff]  ;;  %v199_v8 = vld [vmem:[%s4982_s2 + $0x30] sm:$0xff]  ;;  %s160_s11 = sand.u32 1, %s2851_s13   ;;  %s2554_s21 = sshll.u32 %s2859_s15, 12 }
  0x18   : > { %258 = vperm.xlu1 %2711, %v193_v0   ;;  %203 = vperm.xlu0 %2710, %v193_v0   ;;  %v198_v9 = vld [vmem:[%s4982_s2 + $0x28] sm:$0xff]  ;;  %v200_v10 = vld [vmem:[%s4982_s2 + $0x38] sm:$0xff]  ;;  %v165_v12 = vand.u32 127, %v164_v11  ;;  %s2468_s18 = sshll.u32 %s160_s11, 8  ;;  %s4923_s27 = scalar_lea.hbm %s4983_s3, %s2554_s21 }
  0x19   : > { %s4881_s19 = scalar_lea.vmem [#allocation2], %s2468_s18  ;;  %s4934_s28 = scalar_lea.sflag [#allocation3], %s160_s11 }
  0x1a   : > { %v166_v13 = vadd.s32 128, %v165_v12  ;;  %v167_v14 = vcvt.s32.f32 %v165_v12  ;;  %s2403_s23 = sshll.u32 %s4881_s19, 4  ;;  %s2879_s30 = smov [#allocation2]   ;;  %s4925_s23 = int_to_ptr.vmem [resolvable:$true] %s2403_s23 }
  0x1b   : > { %s2789_s29 = scalar_lea.vmem %s4925_s23, 4096  ;;  %s2793_s4 = sshll.u32 %s2879_s30, 4  ;;  %s2794_s4 = int_to_ptr.vmem [resolvable:$false] %s2793_s4 }
  0x1c   : > { %262 = vperm.xlu1 %2711, %v194_v3   ;;  %208 = vperm.xlu0 %2710, %v194_v3   ;;  %v168_v15 = vcvt.s32.f32 %v166_v13  ;;  %v174_v16 = vadd.f32 0.5, %v167_v14  ;;  %p2790_p11 = scmp.ne.s32.totalorder %s4925_s23, %s2789_s29  ;;  %s2795_s5 = scalar_lea.vmem %s2794_s4, 8192 }
  0x1d   : > { %p2796_p0 = scmp.lt.s32.totalorder %s4925_s23, %s2794_s4  ;;  %p2797_p1 = scmp.lt.s32.totalorder %s2795_s5, %s2789_s29 }
  0x1e   : > { %v175_v17 = vadd.f32 0.5, %v168_v15  ;;  %v177_v18 = vmul.f32 0.0625, %v174_v16  ;;  %p2791_p12 = pnand %p2790_p11, %p2942_p4 }
  0x1f   : > { %p2798_p2 = por %p2797_p1, %p2796_p0 }
  0x20   : > { %2712 = vset.pattern.permute.xlu1 %v2870_v2  ;;  %213 = vperm.xlu0 %2710, %v195_v4   ;;  %v178_v19 = vmul.f32 0.0625, %v175_v17  ;;  %v179_v20 = vfloor.f32 %v177_v18  ;;  %p2792_p13 = pneg %p2791_p12 }
  0x21   : > { %218 = vperm.xlu1 %2712, %v196_v5  }
  0x22   : > { %v180_v21 = vfloor.f32 %v178_v19  ;;  %v181_v22 = vmul.f32 16.0, %v179_v20  ;;  %v185_v30 = vadd.f32 1.0, %v179_v20  ;;  %p2799_p3 = pnand %p2798_p2, %p2792_p13 }
  0x24   : > { %2713 = vset.pattern.permute.xlu0 %v2869_v1  ;;  %v182_v23 = vmul.f32 16.0, %v180_v21  ;;  %v183_v26 = vsub.f32 %v167_v14, %v181_v22  ;;  %v186_v33 = vadd.f32 1.0, %v180_v21  ;;  %v2981_v35 = vmul.f32 0.39269906, %v185_v30 }
  0x25   : > { %2714 = vset.pattern.permute.xlu1 %v2869_v1  ;;  %266 = vperm.xlu0 %2713, %v195_v4  }
  0x26   : > { %270 = vperm.xlu1 %2714, %v196_v5   ;;  %v184_v27 = vsub.f32 %v168_v15, %v182_v23  ;;  %v189_v31 = vadd.f32 1.0, %v183_v26  ;;  %v2987_v39 = vmul.f32 0.39269906, %v186_v33 }
  0x28   : > { %v190_v32 = vadd.f32 1.0, %v184_v27  ;;  %v2983_v37 = vmul.f32 0.39269906, %v189_v31 }
  0x29   : > { %274 = vperm.xlu0 %2713, %v197_v6  }
  0x2a   : > { %2715 = vset.pattern.permute.xlu1 %v2871_v7  ;;  %v2985_v38 = vmul.f32 0.39269906, %v190_v32 }
  0x2b   : > { %322 = vperm.xlu1 %2715, %v193_v0  }
  0x2c   : > { %5119 = vst [vmem:[#allocation5_spill] sm:$0xff] %v2985_v38 }
  0x2d   : > { %282 = vperm.xlu0 %2713, %v199_v8  }
  0x2f   : > { %2716 = vset.pattern.permute.xlu1 %v2870_v2 }
  0x30   : > { %223 = vperm.xlu1 %2716, %v197_v6  }
  0x31   : > { %2720 = vset.pattern.permute.xlu0 %v2871_v7 }
  0x32   : > { %326 = vperm.xlu0 %2720, %v194_v3  }
  0x34   : > { %228 = vperm.xlu1 %2716, %v198_v9  }
  0x36   : > { %334 = vperm.xlu0 %2720, %v196_v5  }
  0x38   : > { %2717 = vset.pattern.permute.xlu1 %v2869_v1 }
  0x39   : > { %278 = vperm.xlu1 %2717, %v198_v9  }
  0x3a   : > { %342 = vperm.xlu0 %2720, %v198_v9  }
  0x3d   : > { %2718 = vset.pattern.permute.xlu1 %v2871_v7 }
  0x3e   : > { %330 = vperm.xlu1 %2718, %v195_v4   ;;  %2723 = vset.pattern.permute.xlu0 %v2870_v2 }
  0x42   : > { %2719 = vset.pattern.permute.xlu1 %v2870_v2 }
  0x43   : > { %233 = vperm.xlu1 %2719, %v199_v8  }
  0x47   : > { %238 = vperm.xlu1 %2719, %v200_v10  }
  0x4b   : > { %2721 = vset.pattern.permute.xlu1 %v2869_v1 }
  0x4c   : > { %286 = vperm.xlu1 %2721, %v200_v10  }
  0x50   : > { %2722 = vset.pattern.permute.xlu1 %v2871_v7 }
  0x51   : > { %338 = vperm.xlu1 %2722, %v197_v6  }
  0x55   : > { %346 = vperm.xlu1 %2722, %v199_v8  }
  0x59   : > { %350 = vperm.xlu1 %2722, %v200_v10  }
  0x5d   : > { %2724 = vset.pattern.permute.xlu1 %v2870_v2 }
  0x97   : > { %v259_v24 = vpop.permute.xlu1 %258  ;;  %v204_v25 = vpop.permute.xlu0 %203 }
  0x98   : > { %v289_v41 = vmul.f32 %v259_v24, %v2983_v37  ;;  %v290_v42 = vmul.f32 %v259_v24, %v2985_v38  ;;  %v241_v43 = vmul.f32 %v204_v25, %v2981_v35  ;;  %v242_v44 = vmul.f32 %v204_v25, %v2987_v39 }
  0x9a   : > { %v305_v47 = vadd.f32 %v289_v41, %v241_v43  ;;  %v306_v48 = vadd.f32 %v290_v42, %v242_v44 }
  0x9b   : > { %v263_v28 = vpop.permute.xlu1 %262  ;;  %v209_v29 = vpop.permute.xlu0 %208 }
  0x9c   : > { %v291_v59 = vmul.f32 %v263_v28, %v2983_v37  ;;  %v243_v60 = vmul.f32 %v209_v29, %v2981_v35  ;;  %v292_v61 = vmul.f32 %v263_v28, %v2985_v38  ;;  %v244_v62 = vmul.f32 %v209_v29, %v2987_v39 }
  0x9e   : > { %v307_v3 = vadd.f32 %v291_v59, %v243_v60  ;;  %v308_v5 = vadd.f32 %v292_v61, %v244_v62 }
  0x9f   : > { %v214_v34 = vpop.permute.xlu0 %213 }
  0xa0   : > { %v219_v36 = vpop.permute.xlu1 %218  ;;  %v245_v11 = vmul.f32 %v214_v34, %v2981_v35  ;;  %v246_v14 = vmul.f32 %v214_v34, %v2987_v39 }
  0xa1   : > { %v247_v6 = vmul.f32 %v219_v36, %v2981_v35  ;;  %v248_v13 = vmul.f32 %v219_v36, %v2987_v39 }
  0xa4   : > { %v267_v40 = vpop.permute.xlu0 %266 }
  0xa5   : > { %v271_v45 = vpop.permute.xlu1 %270  ;;  %v293_v15 = vmul.f32 %v267_v40, %v2983_v37  ;;  %v294_v17 = vmul.f32 %v267_v40, %v2985_v38 }
  0xa6   : > { %v295_v2 = vmul.f32 %v271_v45, %v2983_v37  ;;  %v296_v8 = vmul.f32 %v271_v45, %v2985_v38 }
  0xa7   : > { %v3027_v30 = vadd.f32 %v293_v15, %v245_v11  ;;  %v3032_v34 = vadd.f32 %v294_v17, %v246_v14 }
  0xa8   : > { %v275_v46 = vpop.permute.xlu0 %274  ;;  %v311_v12 = vadd.f32 %v295_v2, %v247_v6  ;;  %v312_v24 = vadd.f32 %v296_v8, %v248_v13 }
  0xa9   : > { %v297_v21 = vmul.f32 %v275_v46, %v2983_v37  ;;  %v298_v25 = vmul.f32 %v275_v46, %v2985_v38 }
  0xaa   : > { %v323_v49 = vpop.permute.xlu1 %322 }
  0xab   : > { %v2993_v50 = vadd.f32 %v323_v49, %v305_v47  ;;  %v2995_v51 = vadd.f32 %v323_v49, %v306_v48 }
  0xac   : > { %v283_v56 = vpop.permute.xlu0 %282 }
  0xad   : > { %5120 = vst [vmem:[#allocation6_spill] sm:$0xff] %v2993_v50  ;;  %5121 = vst [vmem:[#allocation7_spill] sm:$0xff] %v2995_v51  ;;  %v372_v52 = vand.u32 2139095040, %v2993_v50  ;;  %v476_v53 = vand.u32 2139095040, %v2995_v51  ;;  %v3035_v36 = vmul.f32 %v283_v56, %v2983_v37  ;;  %v3038_v40 = vmul.f32 %v283_v56, %v2985_v38 }
  0xaf   : > { %v373_v54 = vshrl.u32 %v372_v52, 23  ;;  %v477_v55 = vshrl.u32 %v476_v53, 23  ;;  %v224_v4 = vpop.permute.xlu1 %223 }
  0xb0   : > { %v249_v27 = vmul.f32 %v224_v4, %v2981_v35  ;;  %v250_v28 = vmul.f32 %v224_v4, %v2987_v39  ;;  %v4992_v4 = vmov 1326507024  }
  0xb1   : > { %v2469_v57 = vadd.s32 4294967169, %v373_v54  ;;  %v2473_v58 = vadd.s32 4294967169, %v477_v55  ;;  %v327_v63 = vpop.permute.xlu0 %326 }
  0xb2   : > { %v3005_v7 = vadd.f32 %v327_v63, %v307_v3  ;;  %v3008_v9 = vadd.f32 %v327_v63, %v308_v5  ;;  %v3045_v45 = vadd.f32 %v297_v21, %v249_v27  ;;  %v3047_v46 = vadd.f32 %v298_v25, %v250_v28 }
  0xb3   : > { %v379_v0 = vadd.s32 1, %v2469_v57  ;;  %v483_v1 = vadd.s32 1, %v2473_v58  ;;  %v229_v23 = vpop.permute.xlu1 %228  ;;  %v4986_v58 = vmov 2102212464   ;;  %v4988_v63 = vmov 920167782  }
  0xb4   : > { %5122 = vst [vmem:[#allocation8_spill] sm:$0xff] %v3005_v7  ;;  %5123 = vst [vmem:[#allocation9_spill] sm:$0xff] %v3008_v9  ;;  %v580_v19 = vand.u32 2139095040, %v3005_v7  ;;  %v684_v22 = vand.u32 2139095040, %v3008_v9  ;;  %v251_v44 = vmul.f32 %v229_v23, %v2981_v35  ;;  %v252_v49 = vmul.f32 %v229_v23, %v2987_v39 }
  0xb5   : > { %vm380_vm0 = vcmp.gt.s32.totalorder %v379_v0, 0  ;;  %vm484_vm1 = vcmp.gt.s32.totalorder %v483_v1, 0  ;;  %v335_v10 = vpop.permute.xlu0 %334 }
  0xb6   : > { %v381_v16 = vsel %vm380_vm0, %v379_v0, 0  ;;  %v485_v18 = vsel %vm484_vm1, %v483_v1, 0  ;;  %v3016_v20 = vadd.f32 %v335_v10, %v311_v12  ;;  %v581_v31 = vshrl.u32 %v580_v19, 23 }
  0xb7   : > { %v3021_v26 = vand.u32 31, %v381_v16  ;;  %v3025_v29 = vand.u32 31, %v485_v18  ;;  %v3029_v32 = vadd.f32 %v335_v10, %v312_v24  ;;  %v685_v41 = vshrl.u32 %v684_v22, 23 }
  0xb8   : > { %5124 = vst [vmem:[#allocation10_spill] sm:$0xff] %v3016_v20  ;;  %v4985_v33 = vand.u32 2147483647, %v3016_v20  ;;  %v996_v42 = vand.u32 2139095040, %v3016_v20  ;;  %v3049_v47 = vshrl.u32 %v381_v16, 5  ;;  %v279_v53 = vpop.permute.xlu1 %278  ;;  %v3055_v54 = vshrl.u32 %v485_v18, 5 }
  0xb9   : > { %5125 = vst [vmem:[#allocation11_spill] sm:$0xff] %v3021_v26  ;;  %5126 = vst [vmem:[#allocation12_spill] sm:$0xff] %v3025_v29  ;;  %v3042_v43 = vsub.s32 32, %v3021_v26  ;;  %v3052_v48 = vsub.s32 32, %v3025_v29  ;;  %v2477_v55 = vadd.s32 4294967169, %v581_v31  ;;  %v395_v59 = vshll.u32 %v4986_v58, %v3021_v26  ;;  %v3087_v18 = vpop.permute.xlu0 %342 }
  0xba   : > { %5127 = vst [vmem:[#allocation13_spill] sm:$0xff] %v3029_v32  ;;  %5129 = vst [vmem:[#allocation15_spill] sm:$0xff] %v3049_v47  ;;  %v997_v52 = vshrl.u32 %v996_v42, 23  ;;  %v1000_v56 = vand.u32 8388607, %v4985_v33  ;;  %v2481_v60 = vadd.s32 4294967169, %v685_v41  ;;  %v3067_v1 = vshll.u32 %v4988_v63, %v3021_v26 }
  0xbb   : > { %5128 = vst [vmem:[#allocation14_spill] sm:$0xff] %v3042_v43  ;;  %5130 = vst [vmem:[#allocation16_spill] sm:$0xff] %v3052_v48  ;;  %v4984_v57 = vand.u32 2147483647, %v3029_v32  ;;  %v1100_v62 = vand.u32 2139095040, %v3029_v32  ;;  %v396_v0 = vshrl.u32 %v4988_v63, %v3042_v43  ;;  %v499_v2 = vshll.u32 %v4986_v58, %v3025_v29 }
  0xbc   : > { %5131 = vst [vmem:[#allocation17_spill] sm:$0xff] %v3055_v54  ;;  %v2493_v61 = vadd.s32 4294967169, %v997_v52  ;;  %v299_v3 = vmul.f32 %v279_v53, %v2983_v37  ;;  %v3074_v5 = vshrl.u32 %v4992_v4, %v3042_v43  ;;  %v500_v6 = vshrl.u32 %v4988_v63, %v3052_v48 }
  0xbd   : > { %v1101_v10 = vshrl.u32 %v1100_v62, 23  ;;  %v1001_v11 = vor.u32 8388608, %v1000_v56  ;;  %v1104_v12 = vand.u32 8388607, %v4984_v57  ;;  %v300_v13 = vmul.f32 %v279_v53, %v2985_v38 }
  0xbe   : > { %v1003_v8 = vadd.s32 1, %v2493_v61  ;;  %v315_v14 = vadd.f32 %v299_v3, %v251_v44  ;;  %v3083_v15 = vshll.u32 %v4988_v63, %v3025_v29  ;;  %v3085_v16 = vadd.s32 1, %v2477_v55 }
  0xbf   : > { %v2497_v17 = vadd.s32 4294967169, %v1101_v10  ;;  %v3089_v19 = vor.u32 %v396_v0, %v395_v59  ;;  %v3093_v21 = vshrl.u32 %v4992_v4, %v3052_v48  ;;  %v3095_v22 = vadd.s32 1, %v2481_v60 }
  0xc0   : > { %vm1004_vm2 = vcmp.gt.s32.totalorder %v1003_v8, 0  ;;  %v3099_v25 = vor.u32 %v500_v6, %v499_v2  ;;  %v3101_v31 = vshll.u32 %v1001_v11, 8  ;;  %v1105_v41 = vor.u32 8388608, %v1104_v12 }
  0xc1   : > { %5132 = vst [vmem:[#allocation18_spill] sm:$0xff] %v3089_v19  ;;  %v1005_v23 = vsel %vm1004_vm2, %v1003_v8, 0  ;;  %v3103_v42 = vadd.f32 %v300_v13, %v252_v49  ;;  %v3106_v44 = vadd.f32 %v3087_v18, %v315_v14  ;;  %v5002_v53 = vmov 683565275  }
  0xc2   : > { %5133 = vst [vmem:[#allocation19_spill] sm:$0xff] %v3099_v25  ;;  %v1006_v27 = vshrl.u32 %v1005_v23, 5  ;;  %v1007_v28 = vand.u32 31, %v1005_v23  ;;  %v4994_v56 = vmov 2475754826   ;;  %v1107_v60 = vadd.s32 1, %v2497_v17 }
  0xc3   : > { %5134 = vst [vmem:[#allocation20_spill] sm:$0xff] %v3106_v44  ;;  %v4990_v61 = vmov 2131351028   ;;  %vm588_vm9 = vcmp.gt.s32.totalorder %v3085_v16, 0  ;;  %vm692_vm10 = vcmp.gt.s32.totalorder %v3095_v22, 0  ;;  %vm5083_vm13 = vcmp.lt.s32.totalorder %v3049_v47, 4 }
  0xc4   : > { %v1008_v52 = vsub.s32 32, %v1007_v28  ;;  %v1010_v55 = vshll.u32 %v5002_v53, %v1007_v28  ;;  %v1013_v59 = vshll.u32 %v4994_v56, %v1007_v28  ;;  %v1016_v62 = vshll.u32 %v4990_v61, %v1007_v28 }
  0xc5   : > { %v1019_v0 = vshll.u32 %v4986_v58, %v1007_v28  ;;  %v1022_v2 = vshll.u32 %v4988_v63, %v1007_v28  ;;  %vm1025_vm3 = vcmp.lt.s32.totalorder %v1006_v27, 1  ;;  %vm1026_vm4 = vcmp.lt.s32.totalorder %v1006_v27, 2 }
  0xc6   : > { %v1011_v49 = vshrl.u32 %v4994_v56, %v1008_v52  ;;  %v1014_v3 = vshrl.u32 %v4990_v61, %v1008_v52  ;;  %v1017_v6 = vshrl.u32 %v4986_v58, %v1008_v52  ;;  %v1009_v8 = vshrl.u32 %v5002_v53, %v1008_v52 }
  0xc7   : > { %v1020_v10 = vshrl.u32 %v4988_v63, %v1008_v52  ;;  %v1023_v11 = vshrl.u32 %v4992_v4, %v1008_v52  ;;  %vm1027_vm5 = vcmp.lt.s32.totalorder %v1006_v27, 3  ;;  %vm1108_vm6 = vcmp.gt.s32.totalorder %v1107_v60, 0 }
  0xc8   : > { %v1012_v12 = vor.u32 %v1011_v49, %v1010_v55  ;;  %v1015_v13 = vor.u32 %v1014_v3, %v1013_v59  ;;  %v1018_v14 = vor.u32 %v1017_v6, %v1016_v62  ;;  %vm1028_vm7 = vcmp.lt.s32.totalorder %v1006_v27, 4 }
  0xc9   : > { %v1021_v17 = vor.u32 %v1020_v10, %v1019_v0  ;;  %v1024_v23 = vor.u32 %v1023_v11, %v1022_v2  ;;  %v1109_v28 = vsel %vm1108_vm6, %v1107_v60, 0  ;;  %v3130_v49 = vshll.u32 %v1105_v41, 8 }
  0xca   : > { %v1029_v57 = vsel %vm1025_vm3, %v1009_v8, %v1012_v12  ;;  %v1030_v33 = vsel %vm1028_vm7, %v1018_v14, 2102212464  ;;  %v1033_v24 = vsel %vm1025_vm3, %v1012_v12, %v1015_v13  ;;  %v1037_v58 = vsel %vm1025_vm3, %v1015_v13, %v1018_v14 }
  0xcb   : > { %v1031_v63 = vsel %vm1027_vm5, %v1015_v13, %v1030_v33  ;;  %v1034_v61 = vsel %vm1028_vm7, %v1021_v17, 920167782  ;;  %v1038_v52 = vsel %vm1028_vm7, %v1024_v23, 1326507024  ;;  %v3123_v4 = vshrl.u32 %v1109_v28, 5 }
  0xcc   : > { %v1032_v55 = vsel %vm1026_vm4, %v1029_v57, %v1031_v63  ;;  %v1035_v59 = vsel %vm1027_vm5, %v1018_v14, %v1034_v61  ;;  %v1039_v62 = vsel %vm1027_vm5, %v1021_v17, %v1038_v52  ;;  %v1111_v60 = vand.u32 31, %v1109_v28 }
  0xcd   : > { %v1036_v0 = vsel %vm1026_vm4, %v1033_v24, %v1035_v59  ;;  %v1040_v2 = vsel %vm1026_vm4, %v1037_v58, %v1039_v62  ;;  %v1048_v63 = vmul.u32 %v3101_v31, %v1032_v55  ;;  %vm1129_vm8 = vcmp.lt.s32.totalorder %v3123_v4, 1 }
  0xce   : > { %v3134_v33 = vmul.u32.u64.low %v3101_v31, %v1040_v2  ;;  %v3135_v6 = vmul.u32.u64.high %v3101_v31, %v1040_v2, %v3134_v33  ;;  %v3138_v8 = vmul.u32.u64.low %v3101_v31, %v1036_v0  ;;  %v3139_v57 = vmul.u32.u64.high %v3101_v31, %v1036_v0, %v3138_v8 }
  0xcf   : > { %v1112_v61 = vsub.s32 32, %v1111_v60  ;;  %v1412_v58 = vand.u32 2139095040, %v3106_v44  ;;  %v1114_v24 = vshll.u32 %v5002_v53, %v1111_v60  ;;  %v1117_v27 = vshll.u32 %v4994_v56, %v1111_v60 }
  0xd0   : > { %v5135_v41 = vmov 2131351028   ;;  %v5136_v11 = vmov 2102212464   ;;  %v5137_v17 = vmov 920167782   ;;  %vm1050_vm11 = vc.u32 %v3135_v6, %v3138_v8 }
  0xd1   : > { %v1120_v10 = vshll.u32 %v5135_v41, %v1111_v60  ;;  %v1123_v12 = vshll.u32 %v5136_v11, %v1111_v60  ;;  %v1115_v13 = vshrl.u32 %v4994_v56, %v1112_v61  ;;  %v1118_v31 = vshrl.u32 %v5135_v41, %v1112_v61 }
  0xd2   : > { %v1121_v14 = vshrl.u32 %v5136_v11, %v1112_v61  ;;  %v1126_v23 = vshll.u32 %v5137_v17, %v1111_v60  ;;  %v1051_v28 = vadd.s32 1, %v3139_v57  ;;  %v1124_v52 = vshrl.u32 %v5137_v17, %v1112_v61 }
  0xd3   : > { %vm1130_vm12 = vcmp.lt.s32.totalorder %v3123_v4, 2  ;;  %v1116_v55 = vor.u32 %v1115_v13, %v1114_v24  ;;  %v1119_v59 = vor.u32 %v1118_v31, %v1117_v27  ;;  %v5138_v0 = vmov 1326507024  }
  0xd4   : > { %v1122_v62 = vor.u32 %v1121_v14, %v1120_v10  ;;  %v1127_v2 = vshrl.u32 %v5138_v0, %v1112_v61  ;;  %v1052_v33 = vsel %vm1050_vm11, %v1051_v28, %v3139_v57  ;;  %v1125_v56 = vor.u32 %v1124_v52, %v1123_v12 }
  0xd5   : > { %vm1132_vm14 = vcmp.lt.s32.totalorder %v3123_v4, 4  ;;  %v1413_v60 = vshrl.u32 %v1412_v58, 23  ;;  %v1053_v3 = vadd.s32 %v1052_v33, %v1048_v63  ;;  %v1113_v7 = vshrl.u32 %v5002_v53, %v1112_v61 }
  0xd6   : > { %v1128_v43 = vor.u32 %v1127_v2, %v1126_v23  ;;  %v1134_v26 = vsel %vm1132_vm14, %v1122_v62, 2102212464  ;;  %vm1131_vm15 = vcmp.lt.s32.totalorder %v3123_v4, 3  ;;  %v1137_v24 = vsel %vm1129_vm8, %v1116_v55, %v1119_v59 }
  0xd7   : > { %v1138_v27 = vsel %vm1132_vm14, %v1125_v56, 920167782  ;;  %v1141_v10 = vsel %vm1129_vm8, %v1119_v59, %v1122_v62  ;;  %v1054_v13 = vadd.s32 536870912, %v1053_v3  ;;  %v1133_v57 = vsel %vm1129_vm8, %v1113_v7, %v1116_v55 }
  0xd8   : > { %v1139_v12 = vsel %vm1131_vm15, %v1122_v62, %v1138_v27  ;;  %v1142_v58 = vsel %vm1132_vm14, %v1128_v43, 1326507024  ;;  %v1135_v63 = vsel %vm1131_vm15, %v1119_v59, %v1134_v26  ;;  %v2509_v14 = vadd.s32 4294967169, %v1413_v60 }
  0xd9   : > { %v1140_v61 = vsel %vm1130_vm12, %v1137_v24, %v1139_v12  ;;  %v1143_v31 = vsel %vm1131_vm15, %v1125_v56, %v1142_v58  ;;  %v3174_v23 = vshrl.u32 %v1054_v13, 30  ;;  %v5140_v26 = vand.u32 2147483647, %v3106_v44  ;;  %v3208_v13 = vpop.permute.xlu1 %330 }
  0xda   : > { %v1144_v28 = vsel %vm1130_vm12, %v1141_v10, %v1143_v31  ;;  %v3179_v52 = vmul.u32.u64.low %v3130_v49, %v1140_v61  ;;  %v3180_v2 = vmul.u32.u64.high %v3130_v49, %v1140_v61, %v3179_v52  ;;  %v1419_v59 = vadd.s32 1, %v2509_v14 }
  0xdb   : > { %5139 = vst [vmem:[#allocation21_spill] sm:$0xff] %v3174_v23  ;;  %v3184_v7 = vmul.u32.u64.low %v3130_v49, %v1144_v28  ;;  %v3185_v55 = vmul.u32.u64.high %v3130_v49, %v1144_v28, %v3184_v7  ;;  %v1416_v43 = vand.u32 8388607, %v5140_v26  ;;  %v1056_v62 = vshll.u32 %v3174_v23, 30 }
  0xdc   : > { %v1136_v33 = vsel %vm1130_vm12, %v1133_v57, %v1135_v63  ;;  %v3196_v60 = vadd.f32 %v3087_v18, %v3103_v42  ;;  %v3201_v24 = vsel %vm588_vm9, %v3085_v16, 0  ;;  %v3206_v27 = vsel %vm692_vm10, %v3095_v22, 0 }
  0xdd   : > { %v1417_v10 = vor.u32 8388608, %v1416_v43  ;;  %vm1420_vm0 = vcmp.gt.s32.totalorder %v1419_v59, 0  ;;  %v3213_v4 = vsel %vm5083_vm13, %v3089_v19, 920167782  ;;  %v3215_v18 = vsub.s32 %v1053_v3, %v1056_v62 }
  0xde   : > { %5141 = vst [vmem:[#allocation22_spill] sm:$0xff] %v3196_v60  ;;  %5142 = vst [vmem:[#allocation23_spill] sm:$0xff] %v3213_v4  ;;  %v1155_v42 = vadd.s32 1, %v3180_v2  ;;  %v1421_v16 = vsel %vm1420_vm0, %v1419_v59, 0  ;;  %v5143_v57 = vor.u32 %v3074_v5, %v3067_v1  ;;  %v1152_v12 = vmul.u32 %v3130_v49, %v1136_v33 }
  0xdf   : > { %vm1154_vm1 = vc.u32 %v3185_v55, %v3179_v52  ;;  %v1423_v58 = vand.u32 31, %v1421_v16  ;;  %v1059_v63 = vsub.s32 0, %v3215_v18  ;;  %v1516_v61 = vand.u32 2139095040, %v3196_v60 }
  0xe0   : > { %v3223_v22 = vsel %vm5083_vm13, %v5143_v57, 1326507024  ;;  %v1156_v3 = vsel %vm1154_vm1, %v1155_v42, %v3180_v2  ;;  %v3233_v31 = vadd.f32 %v3208_v13, %v3027_v30  ;;  %v1422_v5 = vshrl.u32 %v1421_v16, 5 }
  0xe1   : > { %5144 = vst [vmem:[#allocation24_spill] sm:$0xff] %v3223_v22  ;;  %v1157_v1 = vadd.s32 %v1156_v3, %v1152_v12  ;;  %v1424_v14 = vsub.s32 32, %v1423_v58  ;;  %v3235_v28 = vshll.u32 %v1417_v10, 8  ;;  %v2494_v49 = vmin.u32 %v1059_v63, %v3215_v18 }
  0xe2   : > { %5145 = vst [vmem:[#allocation25_spill] sm:$0xff] %v3233_v31  ;;  %v1426_v7 = vshll.u32 %v5002_v53, %v1423_v58  ;;  %v5146_v26 = vmov 2475754826   ;;  %v1432_v59 = vshll.u32 %v5135_v41, %v1423_v58  ;;  %v1435_v30 = vshll.u32 %v5136_v11, %v1423_v58 }
  0xe3   : > { %v1429_v43 = vshll.u32 %v5146_v26, %v1423_v58  ;;  %v1158_v2 = vadd.s32 536870912, %v1157_v1  ;;  %v1427_v62 = vshrl.u32 %v5146_v26, %v1424_v14  ;;  %v1430_v33 = vshrl.u32 %v5135_v41, %v1424_v14 }
  0xe4   : > { %v1061_v42 = vclz %v2494_v49  ;;  %v1433_v16 = vshrl.u32 %v5136_v11, %v1424_v14  ;;  %v1436_v10 = vshrl.u32 %v5137_v17, %v1424_v14  ;;  %v1439_v57 = vshrl.u32 %v5138_v0, %v1424_v14 }
  0xe5   : > { %v3247_v12 = vshrl.u32 %v1158_v2, 30  ;;  %v1428_v63 = vor.u32 %v1427_v62, %v1426_v7  ;;  %v1431_v3 = vor.u32 %v1430_v33, %v1429_v43  ;;  %v1438_v56 = vshll.u32 %v5137_v17, %v1423_v58 }
  0xe6   : > { %v2495_v53 = vadd.s32 4294967294, %v1061_v42  ;;  %v1434_v23 = vor.u32 %v1433_v16, %v1432_v59  ;;  %v1437_v19 = vor.u32 %v1436_v10, %v1435_v30  ;;  %v1517_v22 = vshrl.u32 %v1516_v61, 23 }
  0xe7   : > { %5147 = vst [vmem:[#allocation26_spill] sm:$0xff] %v3247_v12  ;;  %vm508_vm2 = vcmp.lt.s32.totalorder %v3055_v54, 4  ;;  %v1160_v49 = vshll.u32 %v3247_v12, 30  ;;  %v5148_v4 = vmov 683565275   ;;  %v1440_v50 = vor.u32 %v1439_v57, %v1438_v56 }
  0xe8   : > { %v1425_v47 = vshrl.u32 %v5148_v4, %v1424_v14  ;;  %vm1444_vm3 = vcmp.lt.s32.totalorder %v1422_v5, 4  ;;  %vm2496_vm4 = vcmp.lt.s32.totalorder %v2495_v53, 0  ;;  %vm1441_vm5 = vcmp.lt.s32.totalorder %v1422_v5, 1 }
  0xe9   : > { %vm1443_vm6 = vcmp.lt.s32.totalorder %v1422_v5, 3  ;;  %v1446_v7 = vsel %vm1444_vm3, %v1434_v23, 2102212464  ;;  %v1064_v43 = vsel %vm2496_vm4, 0, %v2495_v53  ;;  %v3254_v2 = vsub.s32 %v1157_v1, %v1160_v49 }
  0xea   : > { %v1449_v58 = vsel %vm1441_vm5, %v1428_v63, %v1431_v3  ;;  %v1450_v59 = vsel %vm1444_vm3, %v1437_v19, 920167782  ;;  %v1069_v61 = vsub.s32 4294967266, %v1064_v43  ;;  %vm1442_vm7 = vcmp.lt.s32.totalorder %v1422_v5, 2 }
  0xeb   : > { %v1445_v62 = vsel %vm1441_vm5, %v1425_v47, %v1428_v63  ;;  %v1447_v33 = vsel %vm1443_vm6, %v1431_v3, %v1446_v7  ;;  %v1163_v14 = vsub.s32 0, %v3254_v2  ;;  %v1451_v56 = vsel %vm1443_vm6, %v1434_v23, %v1450_v59 }
  0xec   : > { %v1453_v30 = vsel %vm1441_vm5, %v1431_v3, %v1434_v23  ;;  %v1454_v42 = vsel %vm1444_vm3, %v1440_v50, 1326507024  ;;  %v1065_v16 = vsub.s32 32, %v1064_v43  ;;  %v1070_v10 = vadd.s32 127, %v1069_v61 }
  0xed   : > { %v1452_v53 = vsel %vm1442_vm7, %v1449_v58, %v1451_v56  ;;  %v1455_v1 = vsel %vm1443_vm6, %v1437_v19, %v1454_v42  ;;  %v2498_v57 = vmin.u32 %v1163_v14, %v3254_v2  ;;  %v3271_v7 = vshrl.u32 %v3201_v24, 5 }
  0xee   : > { %v1456_v49 = vsel %vm1442_vm7, %v1453_v30, %v1455_v1  ;;  %v3266_v47 = vmul.u32.u64.low %v3235_v28, %v1452_v53  ;;  %v3267_v63 = vmul.u32.u64.high %v3235_v28, %v1452_v53, %v3266_v47  ;;  %v5011_v3 = vand.u32 2147483647, %v3196_v60 }
  0xef   : > { %5149 = vst [vmem:[#allocation27_spill] sm:$0xff] %v3271_v7  ;;  %v3274_v50 = vmul.u32.u64.low %v3235_v28, %v1456_v49  ;;  %v3275_v23 = vmul.u32.u64.high %v3235_v28, %v1456_v49, %v3274_v50  ;;  %v1049_v19 = vadd.s32 %v3138_v8, %v3135_v6  ;;  %v1165_v58 = vclz %v2498_v57 }
  0xf0   : > { %v1448_v59 = vsel %vm1442_vm7, %v1445_v62, %v1447_v33  ;;  %v2513_v61 = vadd.s32 4294967169, %v1517_v22  ;;  %v3284_v14 = vsel %vm508_vm2, %v3099_v25, 920167782  ;;  %v3287_v56 = vand.u32 31, %v3201_v24 }
  0xf1   : > { %5150 = vst [vmem:[#allocation28_spill] sm:$0xff] %v3284_v14  ;;  %v1071_v30 = vshll.u32 %v1070_v10, 23  ;;  %v788_v42 = vand.u32 2139095040, %v3233_v31  ;;  %v1067_v53 = vshrl.u32 %v1049_v19, %v1065_v16  ;;  %v2499_v1 = vadd.s32 4294967294, %v1165_v58 }
  0xf2   : > { %5151 = vst [vmem:[#allocation29_spill] sm:$0xff] %v3287_v56  ;;  %v1467_v49 = vadd.s32 1, %v3267_v63  ;;  %v1523_v6 = vadd.s32 1, %v2513_v61  ;;  %v5152_v8 = vor.u32 %v3093_v21, %v3083_v15  ;;  %v1464_v5 = vmul.u32 %v3235_v28, %v1448_v59 }
  0xf3   : > { %vm1466_vm8 = vc.u32 %v3275_v23, %v3266_v47  ;;  %v1520_v24 = vand.u32 8388607, %v5011_v3  ;;  %v3304_v62 = vand.u32 31, %v3206_v27  ;;  %v1066_v33 = vshll.u32 %v3215_v18, %v1064_v43 }
  0xf4   : > { %v3296_v22 = vsel %vm508_vm2, %v5152_v8, 1326507024  ;;  %v1468_v16 = vsel %vm1466_vm8, %v1467_v49, %v3267_v63  ;;  %vm1524_vm9 = vcmp.gt.s32.totalorder %v1523_v6, 0  ;;  %v1072_v15 = vor.u32 4788187, %v1071_v30 }
  0xf5   : > { %5153 = vst [vmem:[#allocation30_spill] sm:$0xff] %v3296_v22  ;;  %vm2500_vm10 = vcmp.lt.s32.totalorder %v2499_v1, 0  ;;  %v1469_v21 = vadd.s32 %v1468_v16, %v1464_v5  ;;  %v1525_v10 = vsel %vm1524_vm9, %v1523_v6, 0  ;;  %v3309_v28 = vshrl.u32 %v3206_v27, 5 }
  0xf6   : > { %v1068_v57 = vor.u32 %v1067_v53, %v1066_v33  ;;  %v5016_v50 = vand.u32 2147483647, %v3233_v31  ;;  %v789_v19 = vshrl.u32 %v788_v42, 23  ;;  %v3313_v58 = vsub.s32 32, %v3287_v56 }
  0xf7   : > { %v1470_v59 = vadd.s32 536870912, %v1469_v21  ;;  %v1521_v61 = vor.u32 8388608, %v1520_v24  ;;  %v1527_v18 = vand.u32 31, %v1525_v10  ;;  %v3317_v43 = vshll.u32 %v5136_v11, %v3287_v56 }
  0xf8   : > { %5154 = vst [vmem:[#allocation31_spill] sm:$0xff] %v3313_v58  ;;  %v3321_v63 = vshll.u32 %v5137_v17, %v3287_v56  ;;  %v3324_v27 = vsub.s32 32, %v3304_v62  ;;  %v1168_v30 = vsel %vm2500_vm10, 0, %v2499_v1  ;;  %v3328_v42 = vshll.u32 %v5136_v11, %v3304_v62 }
  0xf9   : > { %v1073_v53 = vand.u32 2147483647, %v1072_v15  ;;  %v3330_v49 = vshrl.u32 %v1470_v59, 30  ;;  %v1528_v6 = vsub.s32 32, %v1527_v18  ;;  %v1075_v8 = vcvt.s32.f32 %v1068_v57 }
  0xfa   : > { %5155 = vst [vmem:[#allocation32_spill] sm:$0xff] %v3321_v63  ;;  %v1153_v5 = vadd.s32 %v3179_v52, %v3185_v55  ;;  %v2485_v24 = vadd.s32 4294967169, %v789_v19  ;;  %v3336_v33 = vand.u32 8388607, %v5016_v50  ;;  %v1173_v16 = vsub.s32 4294967266, %v1168_v30 }
  0xfb   : > { %5156 = vst [vmem:[#allocation33_spill] sm:$0xff] %v3330_v49  ;;  %v1472_v1 = vshll.u32 %v3330_v49, 30  ;;  %v1531_v3 = vshrl.u32 %v5146_v26, %v1528_v6  ;;  %v3340_v12 = vshll.u32 %v1521_v61, 8  ;;  %v1526_v15 = vshrl.u32 %v1525_v10, 5 }
  0xfc   : > { %v1530_v59 = vshll.u32 %v5148_v4, %v1527_v18  ;;  %v1533_v57 = vshll.u32 %v5146_v26, %v1527_v18  ;;  %v1534_v56 = vshrl.u32 %v5135_v41, %v1528_v6  ;;  %v3345_v52 = vmul.f32 %v1075_v8, %v1073_v53 }
  0xfd   : > { %v3347_v55 = vsub.s32 %v1469_v21, %v1472_v1  ;;  %v1536_v19 = vshll.u32 %v5135_v41, %v1527_v18  ;;  %v1537_v50 = vshrl.u32 %v5136_v11, %v1528_v6  ;;  %v1539_v61 = vshll.u32 %v5136_v11, %v1527_v18 }
  0xfe   : > { %v1532_v49 = vor.u32 %v1531_v3, %v1530_v59  ;;  %v1535_v7 = vor.u32 %v1534_v56, %v1533_v57  ;;  %v1540_v10 = vshrl.u32 %v5137_v17, %v1528_v6  ;;  %v1542_v25 = vshll.u32 %v5137_v17, %v1527_v18 }
  0xff   : > { %v1475_v9 = vsub.s32 0, %v3347_v55  ;;  %v1538_v14 = vor.u32 %v1537_v50, %v1536_v19  ;;  %v1543_v53 = vshrl.u32 %v5138_v0, %v1528_v6  ;;  %v1169_v8 = vsub.s32 32, %v1168_v30 }
 0x100   : > { %v1174_v21 = vadd.s32 127, %v1173_v16  ;;  %v1541_v1 = vor.u32 %v1540_v10, %v1539_v61  ;;  %vm1545_vm11 = vcmp.lt.s32.totalorder %v1526_v15, 1  ;;  %v1529_v3 = vshrl.u32 %v5148_v4, %v1528_v6 }
 0x101   : > { %v2510_v22 = vmin.u32 %v1475_v9, %v3347_v55  ;;  %v1544_v56 = vor.u32 %v1543_v53, %v1542_v25  ;;  %vm1548_vm12 = vcmp.lt.s32.totalorder %v1526_v15, 4  ;;  %vm1547_vm14 = vcmp.lt.s32.totalorder %v1526_v15, 3 }
 0x102   : > { %v1550_v59 = vsel %vm1548_vm12, %v1538_v14, 2102212464  ;;  %v1553_v57 = vsel %vm1545_vm11, %v1532_v49, %v1535_v7  ;;  %v1554_v54 = vsel %vm1548_vm12, %v1541_v1, 920167782  ;;  %vm1546_vm15 = vcmp.lt.s32.totalorder %v1526_v15, 2 }
 0x103   : > { %v1477_v29 = vclz %v2510_v22  ;;  %v1555_v50 = vsel %vm1547_vm14, %v1538_v14, %v1554_v54  ;;  %v1557_v18 = vsel %vm1545_vm11, %v1535_v7, %v1538_v14  ;;  %v1171_v19 = vshrl.u32 %v1153_v5, %v1169_v8 }
 0x104   : > { %v1549_v48 = vsel %vm1545_vm11, %v1529_v3, %v1532_v49  ;;  %v1556_v16 = vsel %vm1546_vm15, %v1553_v57, %v1555_v50  ;;  %v1558_v61 = vsel %vm1548_vm12, %v1544_v56, 1326507024  ;;  %v1551_v51 = vsel %vm1547_vm14, %v1535_v7, %v1550_v59 }
 0x105   : > { %v2511_v10 = vadd.s32 4294967294, %v1477_v29  ;;  %v1559_v9 = vsel %vm1547_vm14, %v1541_v1, %v1558_v61  ;;  %v795_v31 = vadd.s32 1, %v2485_v24  ;;  %v1170_v25 = vshll.u32 %v3254_v2, %v1168_v30 }
 0x106   : > { %v1560_v6 = vsel %vm1546_vm15, %v1557_v18, %v1559_v9  ;;  %v3362_v53 = vmul.u32.u64.low %v3340_v12, %v1556_v16  ;;  %v3363_v38 = vmul.u32.u64.high %v3340_v12, %v1556_v16, %v3362_v53  ;;  %v1175_v54 = vshll.u32 %v1174_v21, 23 }
 0x107   : > { %vm2512_vm0 = vcmp.lt.s32.totalorder %v2511_v10, 0  ;;  %v3367_v14 = vmul.u32.u64.low %v3340_v12, %v1560_v6  ;;  %v3368_v22 = vmul.u32.u64.high %v3340_v12, %v1560_v6, %v3367_v14  ;;  %v3370_v49 = vor.u32 %v1171_v19, %v1170_v25  ;;  %v3401_v19 = vpop.permute.xlu1 %233 }
 0x108   : > { %v3372_v29 = vsel %vm2512_vm0, 0, %v2511_v10  ;;  %v1552_v7 = vsel %vm1546_vm15, %v1549_v48, %v1551_v51  ;;  %vm796_vm1 = vcmp.gt.s32.totalorder %v795_v31, 0  ;;  %v3377_v2 = vshll.u32 %v5137_v17, %v3304_v62 }
 0x109   : > { %v1485_v30 = vsub.s32 4294967266, %v3372_v29  ;;  %v3382_v5 = vadd.f32 %v3208_v13, %v3032_v34  ;;  %v797_v24 = vsel %vm796_vm1, %v795_v31, 0  ;;  %v1077_v8 = vxor.u32 2147483648, %v3345_v52 }
 0x10a   : > { %v1465_v21 = vadd.s32 %v3266_v47, %v3275_v23  ;;  %v1571_v15 = vadd.s32 1, %v3363_v38  ;;  %v799_v51 = vand.u32 31, %v797_v24  ;;  %v1176_v48 = vor.u32 4788187, %v1175_v54 }
 0x10b   : > { %v1568_v1 = vmul.u32 %v3340_v12, %v1552_v7  ;;  %vm1570_vm3 = vc.u32 %v3368_v22, %v3362_v53  ;;  %v793_v3 = vor.u32 8388608, %v3336_v33  ;;  %v1179_v34 = vcvt.s32.f32 %v3370_v49 }
 0x10c   : > { %v1481_v13 = vsub.s32 32, %v3372_v29  ;;  %v1572_v31 = vsel %vm1570_vm3, %v1571_v15, %v3363_v38  ;;  %v800_v56 = vsub.s32 32, %v799_v51  ;;  %v1486_v59 = vadd.s32 127, %v1485_v30 }
 0x10d   : > { %v1573_v47 = vadd.s32 %v1572_v31, %v1568_v1  ;;  %v802_v23 = vshll.u32 %v5148_v4, %v799_v51  ;;  %v805_v57 = vshll.u32 %v5146_v26, %v799_v51  ;;  %v808_v18 = vshll.u32 %v5135_v41, %v799_v51 }
 0x10e   : > { %v803_v12 = vshrl.u32 %v5146_v26, %v800_v56  ;;  %v806_v50 = vshrl.u32 %v5135_v41, %v800_v56  ;;  %v809_v33 = vshrl.u32 %v5136_v11, %v800_v56  ;;  %v1177_v16 = vand.u32 2147483647, %v1176_v48 }
 0x10f   : > { %v1574_v61 = vadd.s32 536870912, %v1573_v47  ;;  %v798_v38 = vshrl.u32 %v797_v24, 5  ;;  %v811_v10 = vshll.u32 %v5136_v11, %v799_v51  ;;  %v812_v54 = vshrl.u32 %v5137_v17, %v800_v56 }
 0x110   : > { %v804_v9 = vor.u32 %v803_v12, %v802_v23  ;;  %v807_v25 = vor.u32 %v806_v50, %v805_v57  ;;  %v810_v6 = vor.u32 %v809_v33, %v808_v18  ;;  %v814_v49 = vshll.u32 %v5137_v17, %v799_v51  ;;  %v3414_v50 = vpop.permute.xlu1 %238 }
 0x111   : > { %v3405_v14 = vshrl.u32 %v1574_v61, 30  ;;  %v815_v7 = vshrl.u32 %v5138_v0, %v800_v56  ;;  %v833_v30 = vshll.u32 %v793_v3, 8  ;;  %v1482_v15 = vshll.u32 %v3347_v55, %v3372_v29 }
 0x112   : > { %v1483_v48 = vshrl.u32 %v1465_v21, %v1481_v13  ;;  %v1487_v1 = vshll.u32 %v1486_v59, 23  ;;  %v813_v24 = vor.u32 %v812_v54, %v811_v10  ;;  %vm5073_vm4 = vcmp.lt.s32.totalorder %v3016_v20, 0 }
 0x113   : > { %5157 = vst [vmem:[#allocation34_spill] sm:$0xff] %v3405_v14  ;;  %v1576_v31 = vshll.u32 %v3405_v14, 30  ;;  %v816_v23 = vor.u32 %v815_v7, %v814_v49  ;;  %vm817_vm5 = vcmp.lt.s32.totalorder %v798_v38, 1  ;;  %vm820_vm6 = vcmp.lt.s32.totalorder %v798_v38, 4 }
 0x114   : > { %vm819_vm7 = vcmp.lt.s32.totalorder %v798_v38, 3  ;;  %v822_v57 = vsel %vm820_vm6, %v810_v6, 2102212464  ;;  %v825_v51 = vsel %vm817_vm5, %v804_v9, %v807_v25  ;;  %v826_v12 = vsel %vm820_vm6, %v813_v24, 920167782 }
 0x115   : > { %v3416_v3 = vsub.s32 %v1573_v47, %v1576_v31  ;;  %v801_v55 = vshrl.u32 %v5148_v4, %v800_v56  ;;  %vm818_vm8 = vcmp.lt.s32.totalorder %v798_v38, 2  ;;  %v827_v29 = vsel %vm819_vm7, %v810_v6, %v826_v12 }
 0x116   : > { %v1488_v21 = vor.u32 4788187, %v1487_v1  ;;  %v828_v13 = vsel %vm818_vm8, %v825_v51, %v827_v29  ;;  %v829_v59 = vsel %vm817_vm5, %v807_v25, %v810_v6  ;;  %v830_v18 = vsel %vm820_vm6, %v816_v23, 1326507024 }
 0x117   : > { %v1579_v33 = vsub.s32 0, %v3416_v3  ;;  %v821_v61 = vsel %vm817_vm5, %v801_v55, %v804_v9  ;;  %v823_v10 = vsel %vm819_vm7, %v807_v25, %v822_v57  ;;  %v831_v47 = vsel %vm819_vm7, %v813_v24, %v830_v18 }
 0x118   : > { %v1484_v54 = vor.u32 %v1483_v48, %v1482_v15  ;;  %v832_v56 = vsel %vm818_vm8, %v829_v59, %v831_v47  ;;  %v3427_v49 = vmul.u32.u64.low %v833_v30, %v828_v13  ;;  %v3428_v7 = vmul.u32.u64.high %v833_v30, %v828_v13, %v3427_v49  ;;  %v3439_v48 = vpop.permute.xlu1 %286 }
 0x119   : > { %v1180_v1 = vmul.f32 %v1179_v34, %v1177_v16  ;;  %v2514_v31 = vmin.u32 %v1579_v33, %v3416_v3  ;;  %v3432_v6 = vmul.u32.u64.low %v833_v30, %v832_v56  ;;  %v3433_v23 = vmul.u32.u64.high %v833_v30, %v832_v56, %v3432_v6 }
 0x11a   : > { %v604_v9 = vshrl.u32 %v5137_v17, %v3313_v58  ;;  %v1489_v51 = vand.u32 2147483647, %v1488_v21  ;;  %v824_v25 = vsel %vm818_vm8, %v821_v61, %v823_v10  ;;  %v892_v15 = vand.u32 2139095040, %v3382_v5 }
 0x11b   : > { %v3443_v24 = vshrl.u32 %v5138_v0, %v3313_v58  ;;  %v708_v34 = vshrl.u32 %v5137_v17, %v3324_v27  ;;  %v3449_v16 = vshrl.u32 %v5138_v0, %v3324_v27  ;;  %vm716_vm9 = vcmp.lt.s32.totalorder %v3309_v28, 4 }
 0x11c   : > { %v1581_v57 = vclz %v2514_v31  ;;  %v1078_v38 = vsel %vm5073_vm4, %v1077_v8, %v3345_v52  ;;  %v1491_v12 = vcvt.s32.f32 %v1484_v54  ;;  %v843_v55 = vadd.s32 1, %v3428_v7  ;;  %v3477_v31 = vpop.permute.xlu1 %338 }
 0x11d   : > { %5158 = vst [vmem:[#allocation35_spill] sm:$0xff] %v3443_v24  ;;  %v893_v29 = vshrl.u32 %v892_v15, 23  ;;  %v1181_v21 = vxor.u32 2147483648, %v1180_v1  ;;  %v840_v59 = vmul.u32 %v833_v30, %v824_v25  ;;  %vm842_vm10 = vc.u32 %v3433_v23, %v3427_v49 }
 0x11e   : > { %v2515_v13 = vadd.s32 4294967294, %v1581_v57  ;;  %v1492_v18 = vmul.f32 %v1491_v12, %v1489_v51  ;;  %v844_v33 = vsel %vm842_vm10, %v843_v55, %v3428_v7  ;;  %v5034_v61 = vand.u32 2147483647, %v3382_v5 }
 0x11f   : > { %v2489_v10 = vadd.s32 4294967169, %v893_v29  ;;  %v3463_v47 = vor.u32 %v604_v9, %v3317_v43  ;;  %v5159_v8 = vand.u32 2147483647, %v3016_v20  ;;  %v5160_v54 = vmov 0 }
 0x120   : > { %v845_v30 = vadd.s32 %v844_v33, %v840_v59  ;;  %v3474_v56 = vor.u32 %v708_v34, %v3328_v42  ;;  %vm5075_vm12 = vcmp.lt.s32.totalorder %v3029_v32, 0  ;;  %vm2516_vm14 = vcmp.lt.s32.totalorder %v2515_v13, 0 }
 0x121   : > { %vm3469_vm11 = vcmp.le.f32.partialorder %v5159_v8, 0.7853982  ;;  %v899_v7 = vadd.s32 1, %v2489_v10  ;;  %v5163_v9 = vand.u32 2147483647, %v3029_v32  ;;  %v5164_v51 = vmov 0 }
 0x122   : > { %v5161_v54 = vsel %vm3469_vm11, 4294967295, %v5160_v54  ;;  %v1081_v6 = vsel %vm3469_vm11, %v3016_v20, %v1078_v38  ;;  %v846_v42 = vadd.s32 536870912, %v845_v30  ;;  %v1182_v25 = vsel %vm5075_vm12, %v1181_v21, %v1180_v1 }
 0x123   : > { %5162 = vst [vmem:[#allocation36_spill] sm:$0xff] %v5161_v54  ;;  %vm3486_vm15 = vcmp.le.f32.partialorder %v5163_v9, 0.7853982  ;;  %v1493_v15 = vxor.u32 2147483648, %v1492_v18  ;;  %v896_v34 = vand.u32 8388607, %v5034_v61  ;;  %v3500_v55 = vadd.f32 %v3477_v31, %v3045_v45 }
 0x124   : > { %v5165_v51 = vsel %vm3486_vm15, 4294967295, %v5164_v51  ;;  %vm900_vm0 = vcmp.gt.s32.totalorder %v899_v7, 0  ;;  %v3494_v57 = vsel %vm2516_vm14, 0, %v2515_v13  ;;  %v3496_v12 = vshrl.u32 %v846_v42, 30 }
 0x125   : > { %5166 = vst [vmem:[#allocation37_spill] sm:$0xff] %v5165_v51  ;;  %v901_v38 = vsel %vm900_vm0, %v899_v7, 0  ;;  %5168 = vst [vmem:[#allocation39_spill] sm:$0xff] %v3500_v55  ;;  %v3505_v29 = vsel %vm716_vm9, %v3474_v56, 920167782  ;;  %2725 = vcosq.f32 %v1081_v6  ;;  %vm5068_vm1 = vcmp.lt.s32.totalorder %v3106_v44, 0 }
 0x126   : > { %5167 = vst [vmem:[#allocation38_spill] sm:$0xff] %v3496_v12  ;;  %v903_v1 = vand.u32 31, %v901_v38  ;;  %2727 = vsinq.f32 %v1081_v6  ;;  %v3511_v21 = vsel %vm3486_vm15, %v3029_v32, %v1182_v25  ;;  %v5169_v13 = vand.u32 2147483647, %v3106_v44 }
 0x127   : > { %v5170_v45 = vmov 0  ;;  %v848_v59 = vshll.u32 %v3496_v12, 30  ;;  %v1494_v33 = vsel %vm5068_vm1, %v1493_v15, %v1492_v18  ;;  %v1589_v10 = vsub.s32 4294967266, %v3494_v57 }
 0x128   : > { %vm3515_vm3 = vcmp.le.f32.partialorder %v5169_v13, 0.7853982  ;;  %v897_v8 = vor.u32 8388608, %v896_v34  ;;  %v904_v7 = vsub.s32 32, %v903_v1  ;;  %v3525_v9 = vshrl.u32 %v901_v38, 5 }
 0x129   : > { %v5171_v45 = vsel %vm3515_vm3, 4294967295, %v5170_v45  ;;  %v3523_v6 = vsub.s32 %v845_v30, %v848_v59  ;;  %v906_v42 = vshll.u32 %v5148_v4, %v903_v1  ;;  %v1204_v25 = vand.u32 2139095040, %v3500_v55 }
 0x12a   : > { %5172 = vst [vmem:[#allocation40_spill] sm:$0xff] %v5171_v45  ;;  %v907_v13 = vshrl.u32 %v5146_v26, %v904_v7  ;;  %v909_v52 = vshll.u32 %v5146_v26, %v903_v1  ;;  %v910_v61 = vshrl.u32 %v5135_v41, %v904_v7  ;;  %v913_v18 = vshrl.u32 %v5136_v11, %v904_v7 }
 0x12b   : > { %v851_v15 = vsub.s32 0, %v3523_v6  ;;  %v912_v34 = vshll.u32 %v5135_v41, %v903_v1  ;;  %v915_v30 = vshll.u32 %v5136_v11, %v903_v1  ;;  %v916_v38 = vshrl.u32 %v5137_v17, %v904_v7 }
 0x12c   : > { %v908_v59 = vor.u32 %v907_v13, %v906_v42  ;;  %v911_v43 = vor.u32 %v910_v61, %v909_v52  ;;  %v918_v14 = vshll.u32 %v5137_v17, %v903_v1  ;;  %v919_v54 = vshrl.u32 %v5138_v0, %v904_v7 }
 0x12d   : > { %v1585_v20 = vsub.s32 32, %v3494_v57  ;;  %v2486_v51 = vmin.u32 %v851_v15, %v3523_v6  ;;  %v914_v12 = vor.u32 %v913_v18, %v912_v34  ;;  %v917_v32 = vor.u32 %v916_v38, %v915_v30 }
 0x12e   : > { %v3544_v58 = vsel %vm3515_vm3, %v3106_v44, %v1494_v33  ;;  %v1569_v63 = vadd.s32 %v3362_v53, %v3368_v22  ;;  %v1590_v42 = vadd.s32 127, %v1589_v10  ;;  %v920_v61 = vor.u32 %v919_v54, %v918_v14 }
 0x12f   : > { %vm921_vm5 = vcmp.lt.s32.totalorder %v3525_v9, 1  ;;  %vm924_vm6 = vcmp.lt.s32.totalorder %v3525_v9, 4  ;;  %v937_v52 = vshll.u32 %v897_v8, 8  ;;  %v1205_v1 = vshrl.u32 %v1204_v25, 23  ;;  %v3550_v13 = vpop.eup %2725 }
 0x130   : > { %5173 = vst [vmem:[#allocation41_spill] sm:$0xff] %v3550_v13  ;;  %vm923_vm7 = vcmp.lt.s32.totalorder %v3525_v9, 3  ;;  %v929_v18 = vsel %vm921_vm5, %v908_v59, %v911_v43  ;;  %v930_v33 = vsel %vm924_vm6, %v917_v32, 920167782  ;;  %v5048_v53 = vand.u32 2147483647, %v3500_v55  ;;  %v3558_v22 = vpop.eup %2727 }
 0x131   : > { %5174 = vst [vmem:[#allocation42_spill] sm:$0xff] %v3558_v22  ;;  %v1587_v14 = vshrl.u32 %v1569_v63, %v1585_v20  ;;  %v853_v54 = vclz %v2486_v51  ;;  %v931_v10 = vsel %vm923_vm7, %v914_v12, %v930_v33  ;;  %v933_v8 = vsel %vm921_vm5, %v911_v43, %v914_v12 }
 0x132   : > { %v1591_v25 = vshll.u32 %v1590_v42, 23  ;;  %vm922_vm8 = vcmp.lt.s32.totalorder %v3525_v9, 2  ;;  %v926_v15 = vsel %vm924_vm6, %v914_v12, 2102212464  ;;  %v934_v34 = vsel %vm924_vm6, %v920_v61, 1326507024 }
 0x133   : > { %v905_v30 = vshrl.u32 %v5148_v4, %v904_v7  ;;  %v932_v20 = vsel %vm922_vm8, %v929_v18, %v931_v10  ;;  %v935_v63 = vsel %vm923_vm7, %v917_v32, %v934_v34  ;;  %v2501_v51 = vadd.s32 4294967169, %v1205_v1 }
 0x134   : > { %v1586_v38 = vshll.u32 %v3416_v3, %v3494_v57  ;;  %v936_v42 = vsel %vm922_vm8, %v933_v8, %v935_v63  ;;  %v3580_v12 = vadd.f32 %v3477_v31, %v3047_v46  ;;  %v1208_v7 = vand.u32 8388607, %v5048_v53 }
 0x135   : > { %v2487_v61 = vadd.s32 4294967294, %v853_v54  ;;  %v925_v18 = vsel %vm921_vm5, %v905_v30, %v908_v59  ;;  %v927_v32 = vsel %vm923_vm7, %v911_v43, %v926_v15  ;;  %v1211_v1 = vadd.s32 1, %v2501_v51 }
 0x136   : > { %v3588_v33 = vmul.u32.u64.low %v937_v52, %v936_v42  ;;  %v3589_v3 = vmul.u32.u64.high %v937_v52, %v936_v42, %v3588_v33  ;;  %v3591_v57 = vmul.u32.u64.low %v937_v52, %v932_v20  ;;  %v3592_v10 = vmul.u32.u64.high %v937_v52, %v932_v20, %v3591_v57 }
 0x137   : > { %2729 = vcosq.f32 %v3511_v21  ;;  %v1588_v46 = vor.u32 %v1587_v14, %v1586_v38  ;;  %v1592_v31 = vor.u32 4788187, %v1591_v25  ;;  %vm1212_vm10 = vcmp.gt.s32.totalorder %v1211_v1, 0 }
 0x138   : > { %v5175_v54 = vor.u32 %v3449_v16, %v3377_v2  ;;  %2731 = vsinq.f32 %v3511_v21  ;;  %v928_v43 = vsel %vm922_vm8, %v925_v18, %v927_v32  ;;  %v1213_v8 = vsel %vm1212_vm10, %v1211_v1, 0 }
 0x139   : > { %2733 = vcosq.f32 %v3544_v58  ;;  %vm2488_vm14 = vcmp.lt.s32.totalorder %v2487_v61, 0  ;;  %v3609_v14 = vmul.f32 %v3401_v19, %v2981_v35  ;;  %v1215_v25 = vand.u32 31, %v1213_v8 }
 0x13a   : > { %v3601_v59 = vsel %vm716_vm9, %v5175_v54, 1326507024  ;;  %vm946_vm0 = vc.u32 %v3589_v3, %v3591_v57  ;;  %v947_v2 = vadd.s32 1, %v3592_v10  ;;  %v1209_v16 = vor.u32 8388608, %v1208_v7 }
 0x13b   : > { %v1593_v15 = vand.u32 2147483647, %v1592_v31  ;;  %v1595_v9 = vcvt.s32.f32 %v1588_v46  ;;  %v944_v34 = vmul.u32 %v937_v52, %v928_v43  ;;  %v1216_v30 = vsub.s32 32, %v1215_v25 }
 0x13c   : > { %v3615_v20 = vsel %vm2488_vm14, 0, %v2487_v61  ;;  %v948_v63 = vsel %vm946_vm0, %v947_v2, %v3592_v10  ;;  %v1214_v51 = vshrl.u32 %v1213_v8, 5  ;;  %v1218_v38 = vshll.u32 %v5148_v4, %v1215_v25 }
 0x13d   : > { %v949_v42 = vadd.s32 %v948_v63, %v944_v34  ;;  %v1219_v18 = vshrl.u32 %v5146_v26, %v1216_v30  ;;  %v1221_v32 = vshll.u32 %v5146_v26, %v1215_v25  ;;  %v1224_v7 = vshll.u32 %v5135_v41, %v1215_v25 }
 0x13e   : > { %v1222_v1 = vshrl.u32 %v5135_v41, %v1216_v30  ;;  %v1225_v33 = vshrl.u32 %v5136_v11, %v1216_v30  ;;  %v1227_v52 = vshll.u32 %v5136_v11, %v1215_v25  ;;  %v1228_v61 = vshrl.u32 %v5137_v17, %v1216_v30 }
 0x13f   : > { %v950_v46 = vadd.s32 536870912, %v949_v42  ;;  %v1220_v10 = vor.u32 %v1219_v18, %v1218_v38  ;;  %v1231_v31 = vshrl.u32 %v5138_v0, %v1216_v30  ;;  %v1308_v54 = vand.u32 2139095040, %v3580_v12 }
 0x140   : > { %v1223_v43 = vor.u32 %v1222_v1, %v1221_v32  ;;  %v1226_v8 = vor.u32 %v1225_v33, %v1224_v7  ;;  %v1229_v2 = vor.u32 %v1228_v61, %v1227_v52  ;;  %v1230_v34 = vshll.u32 %v5137_v17, %v1215_v25 }
 0x141   : > { %v3629_v63 = vpop.eup %2729  ;;  %vm5069_vm5 = vcmp.lt.s32.totalorder %v3196_v60, 0  ;;  %v1596_v53 = vmul.f32 %v1595_v9, %v1593_v15  ;;  %v3632_v21 = vshrl.u32 %v950_v46, 30  ;;  %vm1233_vm6 = vcmp.lt.s32.totalorder %v1214_v51, 1 }
 0x142   : > { %5176 = vst [vmem:[#allocation43_spill] sm:$0xff] %v3629_v63  ;;  %v1249_v45 = vshll.u32 %v1209_v16, 8  ;;  %v3634_v44 = vpop.eup %2731  ;;  %v861_v38 = vsub.s32 4294967266, %v3615_v20  ;;  %v1232_v18 = vor.u32 %v1231_v31, %v1230_v34  ;;  %vm1236_vm7 = vcmp.lt.s32.totalorder %v1214_v51, 4 }
 0x143   : > { %5177 = vst [vmem:[#allocation44_spill] sm:$0xff] %v3632_v21  ;;  %5178 = vst [vmem:[#allocation45_spill] sm:$0xff] %v3634_v44  ;;  %v1241_v32 = vsel %vm1233_vm6, %v1220_v10, %v1223_v43  ;;  %v3638_v7 = vpop.eup %2733  ;;  %v952_v25 = vshll.u32 %v3632_v21, 30  ;;  %vm1235_vm8 = vcmp.lt.s32.totalorder %v1214_v51, 3  ;;  %v1242_v1 = vsel %vm1236_vm7, %v1229_v2, 920167782 }
 0x144   : > { %5179 = vst [vmem:[#allocation46_spill] sm:$0xff] %v3638_v7  ;;  %v1309_v15 = vshrl.u32 %v1308_v54, 23  ;;  %v1217_v9 = vshrl.u32 %v5148_v4, %v1216_v30  ;;  %vm1234_vm10 = vcmp.lt.s32.totalorder %v1214_v51, 2  ;;  %v1238_v16 = vsel %vm1236_vm7, %v1226_v8, 2102212464 }
 0x145   : > { %v1243_v33 = vsel %vm1235_vm8, %v1226_v8, %v1242_v1  ;;  %v1597_v52 = vxor.u32 2147483648, %v1596_v53  ;;  %v3645_v61 = vsub.s32 %v949_v42, %v952_v25  ;;  %v1245_v31 = vsel %vm1233_vm6, %v1223_v43, %v1226_v8 }
 0x146   : > { %v1244_v46 = vsel %vm1234_vm10, %v1241_v32, %v1243_v33  ;;  %v1237_v34 = vsel %vm1233_vm6, %v1217_v9, %v1220_v10  ;;  %v1246_v7 = vsel %vm1236_vm7, %v1232_v18, 1326507024  ;;  %v1239_v22 = vsel %vm1235_vm8, %v1223_v43, %v1238_v16 }
 0x147   : > { %v3651_v13 = vmul.u32.u64.low %v1249_v45, %v1244_v46  ;;  %v3652_v54 = vmul.u32.u64.high %v1249_v45, %v1244_v46, %v3651_v13  ;;  %v955_v30 = vsub.s32 0, %v3645_v61  ;;  %v1247_v1 = vsel %vm1235_vm8, %v1229_v2, %v1246_v7 }
 0x148   : > { %v2505_v42 = vadd.s32 4294967169, %v1309_v15  ;;  %2735 = vsinq.f32 %v3544_v58  ;;  %v5180_v32 = vand.u32 2147483647, %v3196_v60  ;;  %v5181_v8 = vmov 0  ;;  %v3674_v15 = vpop.permute.xlu1 %346 }
 0x149   : > { %v862_v10 = vadd.s32 127, %v861_v38  ;;  %v1248_v18 = vsel %vm1234_vm10, %v1245_v31, %v1247_v1  ;;  %v2490_v25 = vmin.u32 %v955_v30, %v3645_v61  ;;  %v1598_v2 = vsel %vm5069_vm5, %v1597_v52, %v1596_v53 }
 0x14a   : > { %vm3661_vm14 = vcmp.le.f32.partialorder %v5180_v32, 0.7853982  ;;  %v3667_v9 = vmul.u32.u64.low %v1249_v45, %v1248_v18  ;;  %v3668_v33 = vmul.u32.u64.high %v1249_v45, %v1248_v18, %v3667_v9  ;;  %v1315_v43 = vadd.s32 1, %v2505_v42 }
 0x14b   : > { %v5182_v8 = vsel %vm3661_vm14, 4294967295, %v5181_v8  ;;  %v1240_v58 = vsel %vm1234_vm10, %v1237_v34, %v1239_v22  ;;  %v1259_v7 = vadd.s32 1, %v3652_v54  ;;  %v317_v38 = vadd.f32 %v3035_v36, %v3609_v14 }
 0x14c   : > { %5183 = vst [vmem:[#allocation47_spill] sm:$0xff] %v5182_v8  ;;  %v857_v16 = vsub.s32 32, %v3615_v20  ;;  %v957_v46 = vclz %v2490_v25  ;;  %v5184_v31 = vand.u32 2147483647, %v3580_v12  ;;  %vm1316_vm0 = vcmp.gt.s32.totalorder %v1315_v43, 0 }
 0x14d   : > { %v841_v1 = vadd.s32 %v3427_v49, %v3433_v23  ;;  %v863_v53 = vshll.u32 %v862_v10, 23  ;;  %v3685_v22 = vmul.f32 %v3401_v19, %v2987_v39  ;;  %v1317_v51 = vsel %vm1316_vm0, %v1315_v43, 0 }
 0x14e   : > { %v1312_v30 = vand.u32 8388607, %v5184_v31  ;;  %v2491_v52 = vadd.s32 4294967294, %v957_v46  ;;  %v1256_v34 = vmul.u32 %v1249_v45, %v1240_v58  ;;  %vm1258_vm6 = vc.u32 %v3668_v33, %v3651_v13 }
 0x14f   : > { %v3690_v36 = vadd.f32 %v3674_v15, %v317_v38  ;;  %v3695_v14 = vsel %vm3661_vm14, %v3196_v60, %v1598_v2  ;;  %v858_v49 = vshll.u32 %v3523_v6, %v3615_v20  ;;  %v1260_v19 = vsel %vm1258_vm6, %v1259_v7, %v3652_v54 }
 0x150   : > { %v1319_v23 = vand.u32 31, %v1317_v51  ;;  %v859_v42 = vshrl.u32 %v841_v1, %v857_v16  ;;  %vm2492_vm7 = vcmp.lt.s32.totalorder %v2491_v52, 0  ;;  %v1261_v45 = vadd.s32 %v1260_v19, %v1256_v34 }
 0x151   : > { %5185 = vst [vmem:[#allocation48_spill] sm:$0xff] %v3690_v36  ;;  %v1313_v32 = vor.u32 8388608, %v1312_v30  ;;  %v3700_v10 = vor.u32 4788187, %v863_v53  ;;  %v945_v18 = vadd.s32 %v3591_v57, %v3589_v3  ;;  %v3704_v25 = vsel %vm2492_vm7, 0, %v2491_v52 }
 0x152   : > { %v1320_v9 = vsub.s32 32, %v1319_v23  ;;  %v965_v43 = vsub.s32 4294967266, %v3704_v25  ;;  %v1262_v2 = vadd.s32 536870912, %v1261_v45  ;;  %v1318_v58 = vshrl.u32 %v1317_v51, 5  ;;  %v3708_v20 = vpop.eup %2735 }
 0x153   : > { %v1620_v6 = vand.u32 2139095040, %v3690_v36  ;;  %5186 = vst [vmem:[#allocation49_spill] sm:$0xff] %v3708_v20  ;;  %v1322_v54 = vshll.u32 %v5148_v4, %v1319_v23  ;;  %v1325_v38 = vshll.u32 %v5146_v26, %v1319_v23  ;;  %v1328_v57 = vshll.u32 %v5135_v41, %v1319_v23 }
 0x154   : > { %v1323_v7 = vshrl.u32 %v5146_v26, %v1320_v9  ;;  %v1326_v16 = vshrl.u32 %v5135_v41, %v1320_v9  ;;  %v3714_v3 = vshrl.u32 %v1262_v2, 30  ;;  %v1329_v46 = vshrl.u32 %v5136_v11, %v1320_v9 }
 0x155   : > { %v3718_v31 = vshll.u32 %v1313_v32, 8  ;;  %v1331_v53 = vshll.u32 %v5136_v11, %v1319_v23  ;;  %v1332_v51 = vshrl.u32 %v5137_v17, %v1320_v9  ;;  %v966_v52 = vadd.s32 127, %v965_v43 }
 0x156   : > { %5187 = vst [vmem:[#allocation50_spill] sm:$0xff] %v3714_v3  ;;  %v1324_v30 = vor.u32 %v1323_v7, %v1322_v54  ;;  %v1327_v1 = vor.u32 %v1326_v16, %v1325_v38  ;;  %v1264_v34 = vshll.u32 %v3714_v3, 30  ;;  %v1330_v19 = vor.u32 %v1329_v46, %v1328_v57 }
 0x157   : > { %v1621_v20 = vshrl.u32 %v1620_v6, 23  ;;  %v1333_v8 = vor.u32 %v1332_v51, %v1331_v53  ;;  %v1334_v2 = vshll.u32 %v5137_v17, %v1319_v23  ;;  %v1335_v60 = vshrl.u32 %v5138_v0, %v1320_v9 }
 0x158   : > { %vm1337_vm8 = vcmp.lt.s32.totalorder %v1318_v58, 1  ;;  %v961_v32 = vsub.s32 32, %v3704_v25  ;;  %v3726_v63 = vsub.s32 %v1261_v45, %v1264_v34  ;;  %vm1338_vm10 = vcmp.lt.s32.totalorder %v1318_v58, 2 }
 0x159   : > { %vm1340_vm0 = vcmp.lt.s32.totalorder %v1318_v58, 4  ;;  %v1321_v54 = vshrl.u32 %v5148_v4, %v1320_v9  ;;  %v1336_v7 = vor.u32 %v1335_v60, %v1334_v2  ;;  %v1345_v38 = vsel %vm1337_vm8, %v1324_v30, %v1327_v1 }
 0x15a   : > { %v1342_v43 = vsel %vm1340_vm0, %v1330_v19, 2102212464  ;;  %v967_v16 = vshll.u32 %v966_v52, 23  ;;  %v1267_v6 = vsub.s32 0, %v3726_v63  ;;  %vm1339_vm6 = vcmp.lt.s32.totalorder %v1318_v58, 3 }
 0x15b   : > { %v1346_v57 = vsel %vm1340_vm0, %v1333_v8, 920167782  ;;  %v1341_v23 = vsel %vm1337_vm8, %v1321_v54, %v1324_v30  ;;  %v1349_v53 = vsel %vm1337_vm8, %v1327_v1, %v1330_v19  ;;  %v1350_v51 = vsel %vm1340_vm0, %v1336_v7, 1326507024 }
 0x15c   : > { %v1347_v46 = vsel %vm1339_vm6, %v1330_v19, %v1346_v57  ;;  %v2502_v3 = vmin.u32 %v1267_v6, %v3726_v63  ;;  %v1343_v45 = vsel %vm1339_vm6, %v1327_v1, %v1342_v43  ;;  %v1351_v44 = vsel %vm1339_vm6, %v1333_v8, %v1350_v51 }
 0x15d   : > { %v1348_v34 = vsel %vm1338_vm10, %v1345_v38, %v1347_v46  ;;  %v860_v21 = vor.u32 %v859_v42, %v858_v49  ;;  %v1352_v60 = vsel %vm1338_vm10, %v1349_v53, %v1351_v44  ;;  %v963_v2 = vshrl.u32 %v945_v18, %v961_v32  ;;  %v5188_v53 = vld [vmem:[#allocation5_spill] sm:$0xff] }
 0x15e   : > { %v3734_v9 = vmul.u32.u64.low %v3718_v31, %v1348_v34  ;;  %v3735_v52 = vmul.u32.u64.high %v3718_v31, %v1348_v34, %v3734_v9  ;;  %v1269_v24 = vclz %v2502_v3  ;;  %v865_v54 = vand.u32 2147483647, %v3700_v10 }
 0x15f   : > { %v3739_v30 = vmul.u32.u64.low %v3718_v31, %v1352_v60  ;;  %v3740_v19 = vmul.u32.u64.high %v3718_v31, %v1352_v60, %v3739_v30  ;;  %v1344_v1 = vsel %vm1338_vm10, %v1341_v23, %v1343_v45  ;;  %v318_v8 = vadd.f32 %v3038_v40, %v3685_v22 }
 0x160   : > { %v2517_v49 = vadd.s32 4294967169, %v1621_v20  ;;  %v962_v44 = vshll.u32 %v3645_v61, %v3704_v25  ;;  %v968_v42 = vor.u32 4788187, %v967_v16  ;;  %v2503_v7 = vadd.s32 4294967294, %v1269_v24 }
 0x161   : > { %v5067_v18 = vand.u32 2147483647, %v3690_v36  ;;  %v867_v3 = vcvt.s32.f32 %v860_v21  ;;  %v1363_v32 = vadd.s32 1, %v3735_v52  ;;  %v3751_v43 = vadd.f32 %v3674_v15, %v318_v8 }
 0x162   : > { %v1627_v10 = vadd.s32 1, %v2517_v49  ;;  %v964_v58 = vor.u32 %v963_v2, %v962_v44  ;;  %vm2504_vm7 = vcmp.lt.s32.totalorder %v2503_v7, 0  ;;  %v1360_v38 = vmul.u32 %v3718_v31, %v1344_v1 }
 0x163   : > { %vm1362_vm8 = vc.u32 %v3740_v19, %v3734_v9  ;;  %v3756_v40 = vmul.f32 %v867_v3, %v865_v54  ;;  %v3758_v61 = vsel %vm2504_vm7, 0, %v2503_v7  ;;  %v969_v21 = vand.u32 2147483647, %v968_v42 }
 0x164   : > { %v1364_v24 = vsel %vm1362_vm8, %v1363_v32, %v3735_v52  ;;  %vm1628_vm10 = vcmp.gt.s32.totalorder %v1627_v10, 0  ;;  %v3763_v15 = vmul.f32 %v3414_v50, %v2981_v35  ;;  %v1624_v25 = vand.u32 8388607, %v5067_v18 }
 0x165   : > { %v1365_v22 = vadd.s32 %v1364_v24, %v1360_v38  ;;  %v3769_v20 = vmul.f32 %v3414_v50, %v2987_v39  ;;  %v1277_v31 = vsub.s32 4294967266, %v3758_v61  ;;  %v1629_v16 = vsel %vm1628_vm10, %v1627_v10, 0 }
 0x166   : > { %v1724_v6 = vand.u32 2139095040, %v3751_v43  ;;  %2737 = vcosq.f32 %v3695_v14  ;;  %v971_v57 = vcvt.s32.f32 %v964_v58  ;;  %v3776_v35 = vmul.f32 %v3439_v48, %v2983_v37 }
 0x167   : > { %v1366_v23 = vadd.s32 536870912, %v1365_v22  ;;  %2739 = vsinq.f32 %v3695_v14  ;;  %v869_v46 = vxor.u32 2147483648, %v3756_v40  ;;  %v3782_v39 = vmul.f32 %v3439_v48, %v5188_v53 }
 0x168   : > { %v1631_v50 = vand.u32 31, %v1629_v16  ;;  %v3784_v51 = vmul.f32 %v971_v57, %v969_v21  ;;  %v1257_v45 = vadd.s32 %v3651_v13, %v3668_v33  ;;  %v1625_v60 = vor.u32 8388608, %v1624_v25 }
 0x169   : > { %v3788_v34 = vshrl.u32 %v1366_v23, 30  ;;  %v1278_v37 = vadd.s32 127, %v1277_v31  ;;  %v5066_v2 = vand.u32 2147483647, %v3751_v43  ;;  %v1725_v14 = vshrl.u32 %v1724_v6, 23 }
 0x16a   : > { %v1632_v52 = vsub.s32 32, %v1631_v50  ;;  %v1630_v54 = vshrl.u32 %v1629_v16, 5  ;;  %v1634_v48 = vshll.u32 %v5148_v4, %v1631_v50  ;;  %v1637_v1 = vshll.u32 %v5146_v26, %v1631_v50 }
 0x16b   : > { %v1368_v30 = vshll.u32 %v3788_v34, 30  ;;  %v1640_v13 = vshll.u32 %v5135_v41, %v1631_v50  ;;  %v1643_v42 = vshll.u32 %v5136_v11, %v1631_v50  ;;  %v1646_v3 = vshll.u32 %v5137_v17, %v1631_v50 }
 0x16c   : > { %v1635_v8 = vshrl.u32 %v5146_v26, %v1632_v52  ;;  %v1638_v49 = vshrl.u32 %v5135_v41, %v1632_v52  ;;  %v1641_v33 = vshrl.u32 %v5136_v11, %v1632_v52  ;;  %v1644_v7 = vshrl.u32 %v5137_v17, %v1632_v52 }
 0x16d   : > { %v3798_v44 = vsub.s32 %v1365_v22, %v1368_v30  ;;  %v1647_v38 = vshrl.u32 %v5138_v0, %v1632_v52  ;;  %v1273_v24 = vsub.s32 32, %v3758_v61  ;;  %v1665_v31 = vshll.u32 %v1625_v60, 8 }
 0x16e   : > { %v1636_v32 = vor.u32 %v1635_v8, %v1634_v48  ;;  %v1639_v10 = vor.u32 %v1638_v49, %v1637_v1  ;;  %v1642_v58 = vor.u32 %v1641_v33, %v1640_v13  ;;  %v1645_v25 = vor.u32 %v1644_v7, %v1643_v42 }
 0x16f   : > { %v1371_v21 = vsub.s32 0, %v3798_v44  ;;  %v1648_v16 = vor.u32 %v1647_v38, %v1646_v3  ;;  %vm1649_vm0 = vcmp.lt.s32.totalorder %v1630_v54, 1  ;;  %v2521_v22 = vadd.s32 4294967169, %v1725_v14 }
 0x170   : > { %v1728_v6 = vand.u32 8388607, %v5066_v2  ;;  %v3808_v57 = vpop.eup %2737  ;;  %v1279_v23 = vshll.u32 %v1278_v37, 23  ;;  %vm1652_vm6 = vcmp.lt.s32.totalorder %v1630_v54, 4  ;;  %v1657_v50 = vsel %vm1649_vm0, %v1636_v32, %v1639_v10 }
 0x171   : > { %5189 = vst [vmem:[#allocation5_spill] sm:$0xff] %v3808_v57  ;;  %v2506_v53 = vmin.u32 %v1371_v21, %v3798_v44  ;;  %v3812_v30 = vpop.eup %2739  ;;  %vm1651_vm7 = vcmp.lt.s32.totalorder %v1630_v54, 3  ;;  %v1658_v48 = vsel %vm1652_vm6, %v1645_v25, 920167782  ;;  %v1661_v60 = vsel %vm1649_vm0, %v1639_v10, %v1642_v58 }
 0x172   : > { %5190 = vst [vmem:[#allocation51_spill] sm:$0xff] %v3812_v30  ;;  %v1662_v1 = vsel %vm1652_vm6, %v1648_v16, 1326507024  ;;  %vm1650_vm8 = vcmp.lt.s32.totalorder %v1630_v54, 2  ;;  %v1654_v14 = vsel %vm1652_vm6, %v1642_v58, 2102212464  ;;  %v1659_v49 = vsel %vm1651_vm7, %v1642_v58, %v1658_v48  ;;  %v351_v58 = vpop.permute.xlu1 %350 }
 0x173   : > { %v1373_v8 = vclz %v2506_v53  ;;  %v1275_v13 = vshrl.u32 %v1257_v45, %v1273_v24  ;;  %v1633_v37 = vshrl.u32 %v5148_v4, %v1632_v52  ;;  %v1660_v33 = vsel %vm1650_vm8, %v1657_v50, %v1659_v49 }
 0x174   : > { %v1663_v42 = vsel %vm1651_vm7, %v1645_v25, %v1662_v1  ;;  %v3819_v7 = vor.u32 4788187, %v1279_v23  ;;  %v1731_v21 = vadd.s32 1, %v2521_v22  ;;  %v1655_v53 = vsel %vm1651_vm7, %v1639_v10, %v1654_v14 }
 0x175   : > { %v2507_v3 = vadd.s32 4294967294, %v1373_v8  ;;  %v1664_v38 = vsel %vm1650_vm8, %v1661_v60, %v1663_v42  ;;  %v1653_v16 = vsel %vm1649_vm0, %v1633_v37, %v1636_v32  ;;  %v1729_v25 = vor.u32 8388608, %v1728_v6 }
 0x176   : > { %v3824_v2 = vmul.u32.u64.low %v1665_v31, %v1664_v38  ;;  %v3825_v18 = vmul.u32.u64.high %v1665_v31, %v1664_v38, %v3824_v2  ;;  %v3827_v45 = vmul.u32.u64.low %v1665_v31, %v1660_v33  ;;  %v3828_v52 = vmul.u32.u64.high %v1665_v31, %v1660_v33, %v3827_v45 }
 0x177   : > { %vm2508_vm10 = vcmp.lt.s32.totalorder %v2507_v3, 0  ;;  %vm1732_vm6 = vcmp.gt.s32.totalorder %v1731_v21, 0  ;;  %v319_v22 = vadd.f32 %v3776_v35, %v3763_v15  ;;  %v1274_v32 = vshll.u32 %v3726_v63, %v3758_v61 }
 0x178   : > { %v1376_v24 = vsel %vm2508_vm10, 0, %v2507_v3  ;;  %v1733_v23 = vsel %vm1732_vm6, %v1731_v21, 0  ;;  %v1656_v50 = vsel %vm1650_vm8, %v1653_v16, %v1655_v53  ;;  %v320_v2 = vadd.f32 %v3782_v39, %v3769_v20 }
 0x179   : > { %v1381_v10 = vsub.s32 4294967266, %v1376_v24  ;;  %v1361_v48 = vadd.s32 %v3734_v9, %v3740_v19  ;;  %vm1674_vm0 = vc.u32 %v3825_v18, %v3827_v45  ;;  %v1735_v6 = vand.u32 31, %v1733_v23 }
 0x17a   : > { %v3842_v60 = vadd.f32 %v351_v58, %v319_v22  ;;  %v3844_v1 = vor.u32 %v1275_v13, %v1274_v32  ;;  %v1281_v15 = vand.u32 2147483647, %v3819_v7  ;;  %v1675_v63 = vadd.s32 1, %v3828_v52 }
 0x17b   : > { %v3848_v61 = vadd.f32 %v351_v58, %v320_v2  ;;  %v1377_v35 = vsub.s32 32, %v1376_v24  ;;  %v1672_v54 = vmul.u32 %v1665_v31, %v1656_v50  ;;  %v1736_v20 = vsub.s32 32, %v1735_v6  ;;  %v5192_v58 = vld [vmem:[#allocation25_spill] sm:$0xff] }
 0x17c   : > { %5191 = vst [vmem:[#allocation52_spill] sm:$0xff] %v3842_v60  ;;  %v3850_v39 = vshll.u32 %v1729_v25, 8  ;;  %v1382_v9 = vadd.s32 127, %v1381_v10  ;;  %v1676_v19 = vsel %vm1674_vm0, %v1675_v63, %v3828_v52  ;;  %v1734_v8 = vshrl.u32 %v1733_v23, 5 }
 0x17d   : > { %v1738_v14 = vshll.u32 %v5148_v4, %v1735_v6  ;;  %v1677_v49 = vadd.s32 %v1676_v19, %v1672_v54  ;;  %v1739_v13 = vshrl.u32 %v5146_v26, %v1736_v20  ;;  %v1741_v37 = vshll.u32 %v5146_v26, %v1735_v6 }
 0x17e   : > { %v1742_v33 = vshrl.u32 %v5135_v41, %v1736_v20  ;;  %v1744_v42 = vshll.u32 %v5135_v41, %v1735_v6  ;;  %v1745_v31 = vshrl.u32 %v5136_v11, %v1736_v20  ;;  %v1747_v3 = vshll.u32 %v5136_v11, %v1735_v6 }
 0x17f   : > { %v1748_v38 = vshrl.u32 %v5137_v17, %v1736_v20  ;;  %v1379_v21 = vshrl.u32 %v1361_v48, %v1377_v35  ;;  %v1678_v16 = vadd.s32 536870912, %v1677_v49  ;;  %v1740_v53 = vor.u32 %v1739_v13, %v1738_v14 }
 0x180   : > { %v1743_v52 = vor.u32 %v1742_v33, %v1741_v37  ;;  %vm5074_vm7 = vcmp.lt.s32.totalorder %v5192_v58, 0  ;;  %v1746_v25 = vor.u32 %v1745_v31, %v1744_v42  ;;  %v1750_v22 = vshll.u32 %v5137_v17, %v1735_v6 }
 0x181   : > { %v1749_v23 = vor.u32 %v1748_v38, %v1747_v3  ;;  %v1751_v32 = vshrl.u32 %v5138_v0, %v1736_v20  ;;  %v1378_v10 = vshll.u32 %v3798_v44, %v1376_v24  ;;  %v1383_v50 = vshll.u32 %v1382_v9, 23 }
 0x182   : > { %v3865_v2 = vshrl.u32 %v1678_v16, 30  ;;  %vm1753_vm8 = vcmp.lt.s32.totalorder %v1734_v8, 1  ;;  %v1737_v63 = vshrl.u32 %v5148_v4, %v1736_v20  ;;  %vm1755_vm10 = vcmp.lt.s32.totalorder %v1734_v8, 3 }
 0x183   : > { %v1752_v48 = vor.u32 %v1751_v32, %v1750_v22  ;;  %vm1756_vm6 = vcmp.lt.s32.totalorder %v1734_v8, 4  ;;  %v1761_v19 = vsel %vm1753_vm8, %v1740_v53, %v1743_v52  ;;  %v1380_v6 = vor.u32 %v1379_v21, %v1378_v10 }
 0x184   : > { %5193 = vst [vmem:[#allocation25_spill] sm:$0xff] %v3865_v2  ;;  %v1680_v35 = vshll.u32 %v3865_v2, 30  ;;  %v1758_v54 = vsel %vm1756_vm6, %v1746_v25, 2102212464  ;;  %v1762_v14 = vsel %vm1756_vm6, %v1749_v23, 920167782  ;;  %v1765_v44 = vsel %vm1753_vm8, %v1743_v52, %v1746_v25 }
 0x185   : > { %vm1754_vm0 = vcmp.lt.s32.totalorder %v1734_v8, 2  ;;  %v1763_v13 = vsel %vm1755_vm10, %v1746_v25, %v1762_v14  ;;  %v5194_v24 = vand.u32 2147483647, %v5192_v58  ;;  %vm5076_vm5 = vcmp.lt.s32.totalorder %v3382_v5, 0 }
 0x186   : > { %v3879_v20 = vsub.s32 %v1677_v49, %v1680_v35  ;;  %v1757_v37 = vsel %vm1753_vm8, %v1737_v63, %v1740_v53  ;;  %v1764_v33 = vsel %vm1754_vm0, %v1761_v19, %v1763_v13  ;;  %v1766_v42 = vsel %vm1756_vm6, %v1752_v48, 1326507024 }
 0x187   : > { %vm3874_vm1 = vcmp.le.f32.partialorder %v5194_v24, 0.7853982  ;;  %v1759_v31 = vsel %vm1755_vm10, %v1743_v52, %v1758_v54  ;;  %v1767_v3 = vsel %vm1755_vm10, %v1749_v23, %v1766_v42  ;;  %v1384_v16 = vor.u32 4788187, %v1383_v50 }
 0x188   : > { %v3886_v38 = vmul.u32.u64.low %v3850_v39, %v1764_v33  ;;  %v3887_v21 = vmul.u32.u64.high %v3850_v39, %v1764_v33, %v3886_v38  ;;  %v1683_v25 = vsub.s32 0, %v3879_v20  ;;  %v1768_v49 = vsel %vm1754_vm0, %v1765_v44, %v1767_v3 }
 0x189   : > { %v1828_v22 = vand.u32 2139095040, %v3842_v60  ;;  %v1283_v53 = vcvt.s32.f32 %v3844_v1  ;;  %v3895_v32 = vmul.u32.u64.low %v3850_v39, %v1768_v49  ;;  %v3896_v10 = vmul.u32.u64.high %v3850_v39, %v1768_v49, %v3895_v32  ;;  %v2064_v1 = vld [vmem:[%s4981_s1 + $0x78] sm:$0xff] }
 0x18a   : > { %v5072_v52 = vand.u32 2147483647, %v3842_v60  ;;  %v870_v23 = vsel %vm5074_vm7, %v869_v46, %v3756_v40  ;;  %v2518_v50 = vmin.u32 %v1683_v25, %v3879_v20  ;;  %v1760_v63 = vsel %vm1754_vm0, %v1757_v37, %v1759_v31 }
 0x18b   : > { %v1829_v48 = vshrl.u32 %v1828_v22, 23  ;;  %v5197_v35 = vand.u32 2147483647, %v3382_v5  ;;  %v973_v54 = vxor.u32 2147483648, %v3784_v51  ;;  %v1284_v19 = vmul.f32 %v1283_v53, %v1281_v15 }
 0x18c   : > { %v1779_v14 = vadd.s32 1, %v3887_v21  ;;  %v1932_v40 = vand.u32 2139095040, %v3848_v61  ;;  %v1385_v46 = vand.u32 2147483647, %v1384_v16  ;;  %v1387_v13 = vcvt.s32.f32 %v1380_v6 }
 0x18d   : > { %vm3908_vm8 = vcmp.le.f32.partialorder %v5197_v35, 0.7853982  ;;  %v1685_v8 = vclz %v2518_v50  ;;  %v2525_v44 = vadd.s32 4294967169, %v1829_v48  ;;  %v1776_v24 = vmul.u32 %v3850_v39, %v1760_v63 }
 0x18e   : > { %vm1778_vm10 = vc.u32 %v3896_v10, %v3886_v38  ;;  %v1832_v37 = vand.u32 8388607, %v5072_v52  ;;  %v1933_v33 = vshrl.u32 %v1932_v40, 23  ;;  %v5071_v31 = vand.u32 2147483647, %v3848_v61 }
 0x18f   : > { %v2519_v42 = vadd.s32 4294967294, %v1685_v8  ;;  %v1780_v7 = vsel %vm1778_vm10, %v1779_v14, %v3887_v21  ;;  %v1835_v15 = vadd.s32 1, %v2525_v44  ;;  %v873_v6 = vsel %vm3874_vm1, %v5192_v58, %v870_v23 }
 0x190   : > { %v974_v39 = vsel %vm5076_vm5, %v973_v54, %v3784_v51  ;;  %v1781_v3 = vadd.s32 %v1780_v7, %v1776_v24  ;;  %v2529_v16 = vadd.s32 4294967169, %v1933_v33  ;;  %v1285_v25 = vxor.u32 2147483648, %v1284_v19 }
 0x191   : > { %v3930_v49 = vmul.f32 %v1387_v13, %v1385_v46  ;;  %vm2520_vm6 = vcmp.lt.s32.totalorder %v2519_v42, 0  ;;  %vm1836_vm0 = vcmp.gt.s32.totalorder %v1835_v15, 0  ;;  %v1833_v53 = vor.u32 8388608, %v1832_v37 }
 0x192   : > { %v3932_v22 = vsel %vm2520_vm6, 0, %v2519_v42  ;;  %v1782_v21 = vadd.s32 536870912, %v1781_v3  ;;  %v1837_v32 = vsel %vm1836_vm0, %v1835_v15, 0  ;;  %2741 = vcosq.f32 %v873_v6 }
 0x193   : > { %vm5070_vm10 = vcmp.lt.s32.totalorder %v3500_v55, 0  ;;  %v1693_v23 = vsub.s32 4294967266, %v3932_v22  ;;  %v3938_v51 = vand.u32 8388607, %v5071_v31  ;;  %2743 = vsinq.f32 %v873_v6 }
 0x194   : > { %v3940_v50 = vshrl.u32 %v1782_v21, 30  ;;  %v1839_v63 = vand.u32 31, %v1837_v32  ;;  %v3942_v48 = vadd.s32 1, %v2529_v16  ;;  %v3947_v35 = vsel %vm3908_vm8, %v3382_v5, %v974_v39 }
 0x195   : > { %v3951_v54 = vsel %vm5070_vm10, %v1285_v25, %v1284_v19  ;;  %v1673_v40 = vadd.s32 %v3827_v45, %v3825_v18  ;;  %v1689_v46 = vsub.s32 32, %v3932_v22  ;;  %v3958_v44 = vshll.u32 %v1833_v53, 8 }
 0x196   : > { %5200 = vst [vmem:[#allocation53_spill] sm:$0xff] %v3940_v50  ;;  %v1784_v13 = vshll.u32 %v3940_v50, 30  ;;  %v1840_v8 = vsub.s32 32, %v1839_v63  ;;  %v1694_v24 = vadd.s32 127, %v1693_v23  ;;  %v1838_v37 = vshrl.u32 %v1837_v32, 5 }
 0x197   : > { %v1842_v33 = vshll.u32 %v5148_v4, %v1839_v63  ;;  %v1845_v15 = vshll.u32 %v5146_v26, %v1839_v63  ;;  %vm1940_vm6 = vcmp.gt.s32.totalorder %v3942_v48, 0  ;;  %v1848_v45 = vshll.u32 %v5135_v41, %v1839_v63 }
 0x198   : > { %v3962_v19 = vsub.s32 %v1781_v3, %v1784_v13  ;;  %v1843_v7 = vshrl.u32 %v5146_v26, %v1840_v8  ;;  %v1846_v18 = vshrl.u32 %v5135_v41, %v1840_v8  ;;  %v1849_v6 = vshrl.u32 %v5136_v11, %v1840_v8 }
 0x199   : > { %v1851_v39 = vshll.u32 %v5136_v11, %v1839_v63  ;;  %v1852_v16 = vshrl.u32 %v5137_v17, %v1840_v8  ;;  %v1691_v25 = vshrl.u32 %v1673_v40, %v1689_v46  ;;  %v5201_v32 = vand.u32 2147483647, %v3500_v55 }
 0x19a   : > { %v1787_v3 = vsub.s32 0, %v3962_v19  ;;  %v1844_v21 = vor.u32 %v1843_v7, %v1842_v33  ;;  %v1847_v53 = vor.u32 %v1846_v18, %v1845_v15  ;;  %v5202_v23 = vmov 0 }
 0x19b   : > { %vm3975_vm0 = vcmp.le.f32.partialorder %v5201_v32, 0.7853982  ;;  %vm5090_vm10 = vcmp.lt.s32.totalorder %v3580_v12, 0  ;;  %v1850_v13 = vor.u32 %v1849_v6, %v1848_v45  ;;  %v1853_v31 = vor.u32 %v1852_v16, %v1851_v39 }
 0x19c   : > { %v5203_v23 = vsel %vm3975_vm0, 4294967295, %v5202_v23  ;;  %v1854_v52 = vshll.u32 %v5137_v17, %v1839_v63  ;;  %v1855_v42 = vshrl.u32 %v5138_v0, %v1840_v8  ;;  %v1695_v14 = vshll.u32 %v1694_v24, 23  ;;  %v3983_v46 = vpop.eup %2741 }
 0x19d   : > { %5204 = vst [vmem:[#allocation54_spill] sm:$0xff] %v5203_v23  ;;  %v2522_v40 = vmin.u32 %v1787_v3, %v3962_v19  ;;  %vm1857_vm4 = vcmp.lt.s32.totalorder %v1838_v37, 1  ;;  %vm1860_vm7 = vcmp.lt.s32.totalorder %v1838_v37, 4  ;;  %v1841_v33 = vshrl.u32 %v5148_v4, %v1840_v8  ;;  %v3986_v32 = vpop.eup %2743 }
 0x19e   : > { %v1856_v7 = vor.u32 %v1855_v42, %v1854_v52  ;;  %v1862_v15 = vsel %vm1860_vm7, %v1850_v13, 2102212464  ;;  %v1865_v18 = vsel %vm1857_vm4, %v1844_v21, %v1847_v53  ;;  %vm1859_vm12 = vcmp.lt.s32.totalorder %v1838_v37, 3 }
 0x19f   : > { %v1789_v45 = vclz %v2522_v40  ;;  %v1866_v6 = vsel %vm1860_vm7, %v1853_v31, 920167782  ;;  %v1869_v63 = vsel %vm1857_vm4, %v1847_v53, %v1850_v13  ;;  %vm1858_vm5 = vcmp.lt.s32.totalorder %v1838_v37, 2  ;;  %v5206_v37 = vld [vmem:[#allocation7_spill] sm:$0xff] }
 0x1a0   : > { %v1861_v39 = vsel %vm1857_vm4, %v1841_v33, %v1844_v21  ;;  %v1867_v24 = vsel %vm1859_vm12, %v1850_v13, %v1866_v6  ;;  %v1870_v16 = vsel %vm1860_vm7, %v1856_v7, 1326507024  ;;  %v1863_v2 = vsel %vm1859_vm12, %v1847_v53, %v1862_v15 }
 0x1a1   : > { %v2523_v3 = vadd.s32 4294967294, %v1789_v45  ;;  %v1868_v50 = vsel %vm1858_vm5, %v1865_v18, %v1867_v24  ;;  %v1871_v57 = vsel %vm1859_vm12, %v1853_v31, %v1870_v16  ;;  %v1690_v52 = vshll.u32 %v3879_v20, %v3932_v22  ;;  %v5208_v18 = vld [vmem:[#allocation16_spill] sm:$0xff] }
 0x1a2   : > { %v1872_v8 = vsel %vm1858_vm5, %v1869_v63, %v1871_v57  ;;  %v3993_v42 = vmul.u32.u64.low %v3958_v44, %v1868_v50  ;;  %v3994_v40 = vmul.u32.u64.high %v3958_v44, %v1868_v50, %v3993_v42  ;;  %v1696_v30 = vor.u32 4788187, %v1695_v14 }
 0x1a3   : > { %vm2524_vm13 = vcmp.lt.s32.totalorder %v2523_v3, 0  ;;  %v3998_v21 = vmul.u32.u64.low %v3958_v44, %v1872_v8  ;;  %v3999_v13 = vmul.u32.u64.high %v3958_v44, %v1872_v8, %v3998_v21  ;;  %2745 = vcosq.f32 %v3947_v35 }
 0x1a4   : > { %v1692_v53 = vor.u32 %v1691_v25, %v1690_v52  ;;  %v1864_v31 = vsel %vm1858_vm5, %v1861_v39, %v1863_v2  ;;  %v1941_v57 = vsel %vm1940_vm6, %v3942_v48, 0  ;;  %2747 = vsinq.f32 %v3947_v35 }
 0x1a5   : > { %v4011_v20 = vsel %vm3975_vm0, %v3500_v55, %v3951_v54  ;;  %v5205_v22 = vxor.u32 2147483648, %v3930_v49  ;;  %v1777_v2 = vadd.s32 %v3886_v38, %v3896_v10  ;;  %v4022_v14 = vsel %vm2524_vm13, 0, %v2523_v3 }
 0x1a6   : > { %v1883_v48 = vadd.s32 1, %v3994_v40  ;;  %v1943_v35 = vand.u32 31, %v1941_v57  ;;  %v5084_v25 = vand.u32 2147483647, %v5206_v37  ;;  %v1697_v33 = vand.u32 2147483647, %v1696_v30 }
 0x1a7   : > { %v4018_v50 = vsel %vm5090_vm10, %v5205_v22, %v3930_v49  ;;  %v1880_v54 = vmul.u32 %v3958_v44, %v1864_v31  ;;  %vm1882_vm4 = vc.u32 %v3999_v13, %v3993_v42  ;;  %v5207_v7 = vor.u32 8388608, %v3938_v51 }
 0x1a8   : > { %v1699_v15 = vcvt.s32.f32 %v1692_v53  ;;  %v1884_v38 = vsel %vm1882_vm4, %v1883_v48, %v3994_v40  ;;  %v1944_v10 = vsub.s32 32, %v1943_v35  ;;  %v4036_v45 = vshrl.u32 %v5148_v4, %v5208_v18 }
 0x1a9   : > { %v4031_v49 = vshll.u32 %v5207_v7, 8  ;;  %v1797_v6 = vsub.s32 4294967266, %v4022_v14  ;;  %v1885_v30 = vadd.s32 %v1884_v38, %v1880_v54  ;;  %v1946_v44 = vshll.u32 %v5148_v4, %v1943_v35 }
 0x1aa   : > { %v1949_v63 = vshll.u32 %v5146_v26, %v1943_v35  ;;  %v1947_v39 = vshrl.u32 %v5146_v26, %v1944_v10  ;;  %v1950_v51 = vshrl.u32 %v5135_v41, %v1944_v10  ;;  %v1952_v24 = vshll.u32 %v5135_v41, %v1943_v35 }
 0x1ab   : > { %v1953_v16 = vshrl.u32 %v5136_v11, %v1944_v10  ;;  %v4045_v3 = vmul.f32 %v1699_v15, %v1697_v33  ;;  %v1886_v52 = vadd.s32 536870912, %v1885_v30  ;;  %v1942_v8 = vshrl.u32 %v1941_v57, 5 }
 0x1ac   : > { %v1955_v40 = vshll.u32 %v5136_v11, %v1943_v35  ;;  %v1948_v21 = vor.u32 %v1947_v39, %v1946_v44  ;;  %v1951_v53 = vor.u32 %v1950_v51, %v1949_v63  ;;  %v1956_v22 = vshrl.u32 %v5137_v17, %v1944_v10 }
 0x1ad   : > { %v1954_v31 = vor.u32 %v1953_v16, %v1952_v24  ;;  %v4049_v48 = vshrl.u32 %v1886_v52, 30  ;;  %v1958_v54 = vshll.u32 %v5137_v17, %v1943_v35  ;;  %v1959_v7 = vshrl.u32 %v5138_v0, %v1944_v10  ;;  %v4057_v33 = vpop.eup %2745 }
 0x1ae   : > { %v4055_v38 = vand.u32 8388607, %v5084_v25  ;;  %v1793_v57 = vsub.s32 32, %v4022_v14  ;;  %v1794_v15 = vshll.u32 %v3962_v19, %v4022_v14  ;;  %v1798_v44 = vadd.s32 127, %v1797_v6  ;;  %v4062_v39 = vpop.eup %2747 }
 0x1af   : > { %5209 = vst [vmem:[#allocation7_spill] sm:$0xff] %v4049_v48  ;;  %v1957_v63 = vor.u32 %v1956_v22, %v1955_v40  ;;  %v1888_v51 = vshll.u32 %v4049_v48, 30  ;;  %v1960_v17 = vor.u32 %v1959_v7, %v1958_v54  ;;  %vm1961_vm13 = vcmp.lt.s32.totalorder %v1942_v8, 1 }
 0x1b0   : > { %vm1964_vm12 = vcmp.lt.s32.totalorder %v1942_v8, 4  ;;  %vm1963_vm5 = vcmp.lt.s32.totalorder %v1942_v8, 3  ;;  %v1969_v35 = vsel %vm1961_vm13, %v1948_v21, %v1951_v53  ;;  %v1945_v52 = vshrl.u32 %v5148_v4, %v1944_v10 }
 0x1b1   : > { %v1966_v0 = vsel %vm1964_vm12, %v1954_v31, 2102212464  ;;  %v1970_v24 = vsel %vm1964_vm12, %v1957_v63, 920167782  ;;  %v4065_v16 = vsub.s32 %v1885_v30, %v1888_v51  ;;  %vm1962_vm7 = vcmp.lt.s32.totalorder %v1942_v8, 2 }
 0x1b2   : > { %v1971_v25 = vsel %vm1963_vm5, %v1954_v31, %v1970_v24  ;;  %v1795_v19 = vshrl.u32 %v1777_v2, %v1793_v57  ;;  %v1973_v6 = vsel %vm1961_vm13, %v1951_v53, %v1954_v31  ;;  %v1974_v40 = vsel %vm1964_vm12, %v1960_v17, 1326507024 }
 0x1b3   : > { %v1972_v14 = vsel %vm1962_vm7, %v1969_v35, %v1971_v25  ;;  %v1891_v22 = vsub.s32 0, %v4065_v16  ;;  %v1965_v54 = vsel %vm1961_vm13, %v1945_v52, %v1948_v21  ;;  %v1967_v7 = vsel %vm1963_vm5, %v1951_v53, %v1966_v0  ;;  %v5210_v53 = vld [vmem:[#allocation12_spill] sm:$0xff] }
 0x1b4   : > { %v1975_v48 = vsel %vm1963_vm5, %v1957_v63, %v1974_v40  ;;  %v1799_v23 = vshll.u32 %v1798_v44, 23  ;;  %v4072_v30 = vmul.u32.u64.low %v4031_v49, %v1972_v14  ;;  %v4073_v51 = vmul.u32.u64.high %v4031_v49, %v1972_v14, %v4072_v30  ;;  %v5211_v40 = vld [vmem:[#allocation17_spill] sm:$0xff] }
 0x1b5   : > { %v1976_v55 = vsel %vm1962_vm7, %v1973_v6, %v1975_v48  ;;  %v2526_v10 = vmin.u32 %v1891_v22, %v4065_v16  ;;  %v481_v31 = vor.u32 8388608, %v4055_v38  ;;  %v1796_v57 = vor.u32 %v1795_v19, %v1794_v15  ;;  %v5212_v22 = vld [vmem:[#allocation30_spill] sm:$0xff] }
 0x1b6   : > { %v4078_v2 = vmul.u32.u64.low %v4031_v49, %v1976_v55  ;;  %v4079_v25 = vmul.u32.u64.high %v4031_v49, %v1976_v55, %v4078_v2  ;;  %v1968_v21 = vsel %vm1962_vm7, %v1965_v54, %v1967_v7  ;;  %v490_v44 = vshll.u32 %v5148_v4, %v5210_v53  ;;  %v5213_v54 = vld [vmem:[#allocation19_spill] sm:$0xff] }
 0x1b7   : > { %v491_v48 = vshrl.u32 %v5146_v26, %v5208_v18  ;;  %v1893_v63 = vclz %v2526_v10  ;;  %v493_v17 = vshll.u32 %v5146_v26, %v5210_v53  ;;  %v494_v0 = vshrl.u32 %v5135_v41, %v5208_v18 }
 0x1b8   : > { %v497_v55 = vshrl.u32 %v5136_v11, %v5208_v18  ;;  %v1800_v38 = vor.u32 4788187, %v1799_v23  ;;  %v1987_v8 = vadd.s32 1, %v4073_v51  ;;  %v496_v35 = vshll.u32 %v5135_v41, %v5210_v53 }
 0x1b9   : > { %v492_v15 = vor.u32 %v491_v48, %v490_v44  ;;  %v2527_v24 = vadd.s32 4294967294, %v1893_v63  ;;  %v1984_v52 = vmul.u32 %v4031_v49, %v1968_v21  ;;  %vm1986_vm6 = vc.u32 %v4079_v25, %v4072_v30 }
 0x1ba   : > { %v495_v19 = vor.u32 %v494_v0, %v493_v17  ;;  %v1988_v14 = vsel %vm1986_vm6, %v1987_v8, %v4073_v51  ;;  %v498_v6 = vor.u32 %v497_v55, %v496_v35  ;;  %vm505_vm4 = vcmp.lt.s32.totalorder %v5211_v40, 1  ;;  %v5214_v51 = vld [vmem:[#allocation28_spill] sm:$0xff] }
 0x1bb   : > { %vm507_vm13 = vcmp.lt.s32.totalorder %v5211_v40, 3  ;;  %vm2528_vm12 = vcmp.lt.s32.totalorder %v2527_v24, 0  ;;  %v1989_v23 = vadd.s32 %v1988_v14, %v1984_v52  ;;  %v1801_v53 = vand.u32 2147483647, %v1800_v38 }
 0x1bc   : > { %v513_v18 = vsel %vm505_vm4, %v492_v15, %v495_v19  ;;  %v519_v49 = vsel %vm507_vm13, %v5213_v54, %v5212_v22  ;;  %v1896_v7 = vsel %vm2528_vm12, 0, %v2527_v24  ;;  %v510_v10 = vsel %vm508_vm2, %v498_v6, 2102212464 }
 0x1bd   : > { %v515_v2 = vsel %vm507_vm13, %v498_v6, %v5214_v51  ;;  %v517_v21 = vsel %vm505_vm4, %v495_v19, %v498_v6  ;;  %v1901_v44 = vsub.s32 4294967266, %v1896_v7  ;;  %v1990_v48 = vadd.s32 536870912, %v1989_v23 }
 0x1be   : > { %vm506_vm5 = vcmp.lt.s32.totalorder %v5211_v40, 2  ;;  %v1803_v63 = vcvt.s32.f32 %v1796_v57  ;;  %v521_v55 = vshll.u32 %v481_v31, 8  ;;  %v509_v24 = vsel %vm505_vm4, %v4036_v45, %v492_v15  ;;  %v5218_v40 = vld [vmem:[#allocation9_spill] sm:$0xff] }
 0x1bf   : > { %v516_v17 = vsel %vm506_vm5, %v513_v18, %v515_v2  ;;  %v520_v0 = vsel %vm506_vm5, %v517_v21, %v519_v49  ;;  %v1902_v8 = vadd.s32 127, %v1901_v44  ;;  %v4120_v35 = vshrl.u32 %v1990_v48, 30  ;;  %v5297_v18 = vld [vmem:[#allocation22_spill] sm:$0xff] }
 0x1c0   : > { %v511_v38 = vsel %vm507_vm13, %v495_v19, %v510_v10  ;;  %v4127_v52 = vmul.u32.u64.low %v521_v55, %v520_v0  ;;  %v4128_v14 = vmul.u32.u64.high %v521_v55, %v520_v0, %v4127_v52  ;;  %2749 = vcosq.f32 %v4011_v20 }
 0x1c1   : > { %v4130_v57 = vmul.u32.u64.low %v521_v55, %v516_v17  ;;  %v4131_v6 = vmul.u32.u64.high %v521_v55, %v516_v17, %v4130_v57  ;;  %v5215_v31 = vand.u32 2147483647, %v3580_v12  ;;  %v1804_v22 = vmul.f32 %v1803_v63, %v1801_v53 }
 0x1c2   : > { %v1992_v45 = vshll.u32 %v4120_v35, 30  ;;  %2751 = vsinq.f32 %v4011_v20  ;;  %vm5091_vm7 = vcmp.lt.s32.totalorder %v3690_v36, 0  ;;  %vm5095_vm6 = vcmp.lt.s32.totalorder %v3751_v43, 0 }
 0x1c3   : > { %vm4137_vm2 = vcmp.le.f32.partialorder %v5215_v31, 0.7853982  ;;  %v1897_v15 = vsub.s32 32, %v1896_v7  ;;  %v512_v19 = vsel %vm506_vm5, %v509_v24, %v511_v38  ;;  %v1701_v49 = vxor.u32 2147483648, %v4045_v3 }
 0x1c4   : > { %v1393_v54 = vsel %vm4137_vm2, %v3580_v12, %v4018_v50  ;;  %v1903_v10 = vshll.u32 %v1902_v8, 23  ;;  %v4152_v51 = vsub.s32 %v1989_v23, %v1992_v45  ;;  %v1881_v20 = vadd.s32 %v3993_v42, %v3999_v13 }
 0x1c5   : > { %vm530_vm4 = vc.u32 %v4128_v14, %v4130_v57  ;;  %v531_v2 = vadd.s32 1, %v4131_v6  ;;  %v5094_v21 = vand.u32 2147483647, %v5218_v40  ;;  %v1805_v53 = vxor.u32 2147483648, %v1804_v22 }
 0x1c6   : > { %v1898_v44 = vshll.u32 %v4065_v16, %v1896_v7  ;;  %v1995_v50 = vsub.s32 0, %v4152_v51  ;;  %v528_v48 = vmul.u32 %v521_v55, %v512_v19  ;;  %v1899_v63 = vshrl.u32 %v1881_v20, %v1897_v15 }
 0x1c7   : > { %v532_v23 = vsel %vm530_vm4, %v531_v2, %v4131_v6  ;;  %v699_v17 = vshrl.u32 %v5146_v26, %v3324_v27  ;;  %v702_v42 = vshrl.u32 %v5135_v41, %v3324_v27  ;;  %v1904_v13 = vor.u32 4788187, %v1903_v10 }
 0x1c8   : > { %v2530_v0 = vmin.u32 %v1995_v50, %v4152_v51  ;;  %v533_v8 = vadd.s32 %v532_v23, %v528_v48  ;;  %v701_v24 = vshll.u32 %v5146_v26, %v3304_v62  ;;  %v5219_v16 = vand.u32 2147483647, %v3690_v36 }
 0x1c9   : > { %v5220_v7 = vmov 0  ;;  %v688_v55 = vand.u32 8388607, %v5094_v21  ;;  %v698_v38 = vshll.u32 %v5148_v4, %v3304_v62  ;;  %v704_v52 = vshll.u32 %v5135_v41, %v3304_v62 }
 0x1ca   : > { %vm4172_vm13 = vcmp.le.f32.partialorder %v5219_v16, 0.7853982  ;;  %v705_v6 = vshrl.u32 %v5136_v11, %v3324_v27  ;;  %2753 = vcosq.f32 %v1393_v54  ;;  %v1997_v31 = vclz %v2530_v0  ;;  %v4190_v48 = vpop.eup %2749 }
 0x1cb   : > { %v5221_v7 = vsel %vm4172_vm13, 4294967295, %v5220_v7  ;;  %v534_v45 = vadd.s32 536870912, %v533_v8  ;;  %v703_v15 = vor.u32 %v702_v42, %v701_v24  ;;  %2755 = vsinq.f32 %v1393_v54 }
 0x1cc   : > { %5222 = vst [vmem:[#allocation16_spill] sm:$0xff] %v5221_v7  ;;  %v5223_v19 = vand.u32 2147483647, %v3751_v43  ;;  %v5224_v10 = vmov 0  ;;  %v1900_v20 = vor.u32 %v1899_v63, %v1898_v44  ;;  %v700_v2 = vor.u32 %v699_v17, %v698_v38  ;;  %v4199_v0 = vpop.eup %2751 }
 0x1cd   : > { %v706_v50 = vor.u32 %v705_v6, %v704_v52  ;;  %v1702_v62 = vsel %vm5091_vm7, %v1701_v49, %v4045_v3  ;;  %v1806_v23 = vsel %vm5095_vm6, %v1805_v53, %v1804_v22  ;;  %v2531_v42 = vadd.s32 4294967294, %v1997_v31 }
 0x1ce   : > { %vm4186_vm12 = vcmp.le.f32.partialorder %v5223_v19, 0.7853982  ;;  %v4197_v54 = vshrl.u32 %v534_v45, 30  ;;  %v1905_v24 = vand.u32 2147483647, %v1904_v13  ;;  %v689_v16 = vor.u32 8388608, %v688_v55 }
 0x1cf   : > { %v5225_v10 = vsel %vm4186_vm12, 4294967295, %v5224_v10  ;;  %vm713_vm5 = vcmp.lt.s32.totalorder %v3309_v28, 1  ;;  %vm715_vm4 = vcmp.lt.s32.totalorder %v3309_v28, 3  ;;  %vm2532_vm10 = vcmp.lt.s32.totalorder %v2531_v42, 0 }
 0x1d0   : > { %5226 = vst [vmem:[#allocation12_spill] sm:$0xff] %v5225_v10  ;;  %v536_v44 = vshll.u32 %v4197_v54, 30  ;;  %v725_v3 = vsel %vm713_vm5, %v703_v15, %v706_v50  ;;  %v727_v22 = vsel %vm715_vm4, %v3474_v56, %v3601_v59  ;;  %v1907_v49 = vcvt.s32.f32 %v1900_v20 }
 0x1d1   : > { %v2000_v53 = vsel %vm2532_vm10, 0, %v2531_v42  ;;  %v721_v63 = vsel %vm713_vm5, %v700_v2, %v703_v15  ;;  %v723_v17 = vsel %vm715_vm4, %v706_v50, %v3505_v29  ;;  %vm714_vm7 = vcmp.lt.s32.totalorder %v3309_v28, 2 }
 0x1d2   : > { %v2005_v13 = vsub.s32 4294967266, %v2000_v53  ;;  %v4215_v55 = vsub.s32 %v533_v8, %v536_v44  ;;  %v718_v38 = vsel %vm716_vm9, %v706_v50, 2102212464  ;;  %v1908_v52 = vmul.f32 %v1907_v49, %v1905_v24 }
 0x1d3   : > { %v697_v56 = vshrl.u32 %v5148_v4, %v3324_v27  ;;  %v728_v59 = vsel %vm714_vm7, %v725_v3, %v727_v22  ;;  %v729_v6 = vshll.u32 %v689_v16, 8  ;;  %v1705_v29 = vsel %vm4172_vm13, %v3690_v36, %v1702_v62 }
 0x1d4   : > { %v2001_v31 = vsub.s32 32, %v2000_v53  ;;  %v539_v8 = vsub.s32 0, %v4215_v55  ;;  %v724_v45 = vsel %vm714_vm7, %v721_v63, %v723_v17  ;;  %v719_v27 = vsel %vm715_vm4, %v703_v15, %v718_v38  ;;  %v4237_v42 = vpop.eup %2753 }
 0x1d5   : > { %v717_v19 = vsel %vm713_vm5, %v697_v56, %v700_v2  ;;  %v4234_v20 = vmul.u32.u64.low %v729_v6, %v728_v59  ;;  %v4235_v50 = vmul.u32.u64.high %v729_v6, %v728_v59, %v4234_v20  ;;  %v1809_v62 = vsel %vm4186_vm12, %v3751_v43, %v1806_v23  ;;  %v4245_v3 = vpop.eup %2755  ;;  %v5231_v56 = vld [vmem:[#allocation6_spill] sm:$0xff] }
 0x1d6   : > { %v1985_v24 = vadd.s32 %v4072_v30, %v4079_v25  ;;  %v2006_v16 = vadd.s32 127, %v2005_v13  ;;  %v2474_v44 = vmin.u32 %v539_v8, %v4215_v55  ;;  %2757 = vcosq.f32 %v1705_v29 }
 0x1d7   : > { %v1909_v2 = vxor.u32 2147483648, %v1908_v52  ;;  %v4247_v15 = vmul.u32.u64.low %v729_v6, %v724_v45  ;;  %v4248_v22 = vmul.u32.u64.high %v729_v6, %v724_v45, %v4247_v15  ;;  %2759 = vsinq.f32 %v1705_v29 }
 0x1d8   : > { %v2003_v49 = vshrl.u32 %v1985_v24, %v2001_v31  ;;  %v541_v63 = vclz %v2474_v44  ;;  %v720_v23 = vsel %vm714_vm7, %v717_v19, %v719_v27  ;;  %2761 = vcosq.f32 %v1809_v62  ;;  %v5232_v19 = vld [vmem:[#allocation11_spill] sm:$0xff] }
 0x1d9   : > { %v5227_v30 = vand.u32 2147483647, %v3842_v60  ;;  %v5228_v25 = vmov 0  ;;  %vm5092_vm10 = vcmp.lt.s32.totalorder %v3842_v60, 0  ;;  %v2002_v17 = vshll.u32 %v4152_v51, %v2000_v53  ;;  %v5233_v53 = vld [vmem:[#allocation14_spill] sm:$0xff] }
 0x1da   : > { %v2007_v13 = vshll.u32 %v2006_v16, 23  ;;  %v2475_v38 = vadd.s32 4294967294, %v541_v63  ;;  %vm738_vm5 = vc.u32 %v4235_v50, %v4247_v15  ;;  %v5093_v59 = vand.u32 2147483647, %v5231_v56 }
 0x1db   : > { %vm4255_vm9 = vcmp.le.f32.partialorder %v5227_v30, 0.7853982  ;;  %v1910_v28 = vsel %vm5092_vm10, %v1909_v2, %v1908_v52  ;;  %v529_v29 = vadd.s32 %v4130_v57, %v4128_v14  ;;  %v736_v31 = vmul.u32 %v729_v6, %v720_v23 }
 0x1dc   : > { %v5229_v25 = vsel %vm4255_vm9, 4294967295, %v5228_v25  ;;  %v739_v8 = vadd.s32 1, %v4248_v22  ;;  %v2004_v45 = vor.u32 %v2003_v49, %v2002_v17  ;;  %vm2476_vm7 = vcmp.lt.s32.totalorder %v2475_v38, 0 }
 0x1dd   : > { %5230 = vst [vmem:[#allocation17_spill] sm:$0xff] %v5229_v25  ;;  %v386_v51 = vshll.u32 %v5148_v4, %v5232_v19  ;;  %v387_v27 = vshrl.u32 %v5146_v26, %v5233_v53  ;;  %v544_v20 = vsel %vm2476_vm7, 0, %v2475_v38  ;;  %v389_v52 = vshll.u32 %v5146_v26, %v5232_v19  ;;  %v5245_v25 = vld [vmem:[#allocation18_spill] sm:$0xff] }
 0x1de   : > { %v740_v24 = vsel %vm738_vm5, %v739_v8, %v4248_v22  ;;  %v390_v14 = vshrl.u32 %v5135_v41, %v5233_v53  ;;  %v2008_v57 = vor.u32 4788187, %v2007_v13  ;;  %v545_v6 = vsub.s32 32, %v544_v20 }
 0x1df   : > { %v549_v16 = vsub.s32 4294967266, %v544_v20  ;;  %v376_v44 = vand.u32 8388607, %v5093_v59  ;;  %v546_v2 = vshll.u32 %v4215_v55, %v544_v20  ;;  %v741_v49 = vadd.s32 %v740_v24, %v736_v31 }
 0x1e0   : > { %v388_v63 = vor.u32 %v387_v27, %v386_v51  ;;  %v391_v23 = vor.u32 %v390_v14, %v389_v52  ;;  %v547_v30 = vshrl.u32 %v529_v29, %v545_v6  ;;  %v392_v22 = vshll.u32 %v5135_v41, %v5232_v19  ;;  %v4285_v8 = vpop.eup %2757  ;;  %v5236_v29 = vld [vmem:[#allocation27_spill] sm:$0xff] }
 0x1e1   : > { %v550_v17 = vadd.s32 127, %v549_v16  ;;  %v393_v38 = vshrl.u32 %v5136_v11, %v5233_v53  ;;  %5234 = vst [vmem:[#allocation30_spill] sm:$0xff] %v4285_v8  ;;  %2763 = vsinq.f32 %v1809_v62  ;;  %v1913_v13 = vsel %vm4255_vm9, %v3842_v60, %v1910_v28  ;;  %v4291_v31 = vpop.eup %2759  ;;  %v5241_v16 = vld [vmem:[#allocation15_spill] sm:$0xff] }
 0x1e2   : > { %v742_v55 = vadd.s32 536870912, %v741_v49  ;;  %5235 = vst [vmem:[#allocation19_spill] sm:$0xff] %v4291_v31  ;;  %v5237_v51 = vand.u32 2147483647, %v5206_v37  ;;  %v548_v27 = vor.u32 %v547_v30, %v546_v2  ;;  %v559_v62 = vsub.s32 4, %v4197_v54  ;;  %v4301_v52 = vpop.eup %2761 }
 0x1e3   : > { %v551_v20 = vshll.u32 %v550_v17, 23  ;;  %v394_v24 = vor.u32 %v393_v38, %v392_v22  ;;  %5240 = vst [vmem:[#allocation28_spill] sm:$0xff] %v4301_v52  ;;  %v2011_v28 = vcvt.s32.f32 %v2004_v45  ;;  %v377_v6 = vor.u32 8388608, %v376_v44  ;;  %v5242_v45 = vld [vmem:[#allocation23_spill] sm:$0xff] }
 0x1e4   : > { %vm4296_vm7 = vcmp.le.f32.partialorder %v5237_v51, 0.7853982  ;;  %v4303_v14 = vshrl.u32 %v742_v55, 30  ;;  %vm401_vm10 = vcmp.lt.s32.totalorder %v5241_v16, 1  ;;  %v2009_v59 = vand.u32 2147483647, %v2008_v57 }
 0x1e5   : > { %v552_v21 = vor.u32 4788187, %v551_v20  ;;  %vm403_vm6 = vcmp.lt.s32.totalorder %v5241_v16, 3  ;;  %v409_v51 = vsel %vm401_vm10, %v388_v63, %v391_v23  ;;  %v385_v30 = vshrl.u32 %v5148_v4, %v5233_v53  ;;  %v5244_v53 = vld [vmem:[#allocation24_spill] sm:$0xff] }
 0x1e6   : > { %v744_v2 = vshll.u32 %v4303_v14, 30  ;;  %vm5100_vm5 = vcmp.lt.s32.totalorder %v5241_v16, 2  ;;  %v411_v44 = vsel %vm403_vm6, %v394_v24, %v5242_v45  ;;  %v555_v22 = vcvt.s32.f32 %v548_v27 }
 0x1e7   : > { %v553_v17 = vand.u32 2147483647, %v552_v21  ;;  %vm5243_vm4 = vcmp.lt.s32.totalorder %v5241_v16, 4  ;;  %v413_v38 = vsel %vm401_vm10, %v391_v23, %v394_v24  ;;  %v412_v20 = vsel %vm5100_vm5, %v409_v51, %v411_v44 }
 0x1e8   : > { %v406_v57 = vsel %vm5243_vm4, %v394_v24, 2102212464  ;;  %v4320_v55 = vsub.s32 %v741_v49, %v744_v2  ;;  %v415_v60 = vsel %vm403_vm6, %v5245_v25, %v5244_v53  ;;  %v417_v8 = vshll.u32 %v377_v6, 8  ;;  %v2050_v25 = vld [vmem:[%s4981_s1 + $0x8] sm:$0xff] }
 0x1e9   : > { %v4328_v45 = vmul.f32 %v2011_v28, %v2009_v59  ;;  %v556_v21 = vmul.f32 %v555_v22, %v553_v17  ;;  %vm5246_vm4 = vcmp.lt.s32.totalorder %v5206_v37, 0  ;;  %v416_v49 = vsel %vm5100_vm5, %v413_v38, %v415_v60  ;;  %v2049_v59 = vld [vmem:[%s4981_s1] sm:$0xff]  ;;  %2072 = vperm.xlu1 %2724, %v2050_v25   ;;  %v2052_v22 = vld [vmem:[%s4981_s1 + $0x18] sm:$0xff] }
 0x1ea   : > { %v560_v27 = vsel %vm5246_vm4, %v559_v62, %v4197_v54  ;;  %v747_v24 = vsub.s32 0, %v4320_v55  ;;  %v405_v51 = vsel %vm401_vm10, %v385_v30, %v388_v63  ;;  %v407_v60 = vsel %vm403_vm6, %v391_v23, %v406_v57  ;;  %2067 = vperm.xlu0 %2723, %v2049_v59   ;;  %v2051_v23 = vld [vmem:[%s4981_s1 + $0x10] sm:$0xff]  ;;  %v5250_v38 = vld [vmem:[#allocation32_spill] sm:$0xff] }
 0x1eb   : > { %v4338_v2 = vmul.u32.u64.low %v417_v8, %v416_v49  ;;  %v4339_v44 = vmul.u32.u64.high %v417_v8, %v416_v49, %v4338_v2  ;;  %v557_v54 = vxor.u32 2147483648, %v556_v21  ;;  %v4353_v63 = vpop.eup %2763  ;;  %vm5248_vm10 = vcmp.lt.s32.totalorder %v5236_v29, 4  ;;  %v5249_v57 = vld [vmem:[#allocation35_spill] sm:$0xff]  ;;  %v5257_v59 = vld [vmem:[#allocation8_spill] sm:$0xff] }
 0x1ec   : > { %v4349_v62 = vmul.u32.u64.low %v417_v8, %v412_v20  ;;  %v4350_v28 = vmul.u32.u64.high %v417_v8, %v412_v20, %v4349_v62  ;;  %5247 = vst [vmem:[#allocation9_spill] sm:$0xff] %v4353_v63  ;;  %v4358_v6 = vsel %vm5248_vm10, %v3463_v47, 920167782  ;;  %2765 = vcosq.f32 %v1913_v13  ;;  %vm5252_vm6 = vmmov %vm5248_vm10  ;;  %v2063_v2 = vld [vmem:[%s4981_s1 + $0x70] sm:$0xff] }
 0x1ed   : > { %v562_v30 = vsel %vm4296_vm7, 0, %v560_v27  ;;  %v2482_v17 = vmin.u32 %v747_v24, %v4320_v55  ;;  %v5251_v20 = vor.u32 %v5249_v57, %v5250_v38  ;;  %2767 = vsinq.f32 %v1913_v13  ;;  %2077 = vperm.xlu1 %2724, %v2051_v23  }
 0x1ee   : > { %v558_v27 = vsel %vm5246_vm4, %v557_v54, %v556_v21  ;;  %vm5110_vm10 = vcmp.lt.s32.totalorder %v5218_v40, 0  ;;  %vm5111_vm5 = vcmp.lt.s32.totalorder %v3848_v61, 0  ;;  %v5253_v24 = vand.u32 2147483647, %v5218_v40  ;;  %2082 = vperm.xlu0 %2723, %v2052_v22  }
 0x1ef   : > { %v4374_v53 = vsel %vm5252_vm6, %v5251_v20, 1326507024  ;;  %v561_v49 = vsel %vm4296_vm7, %v5206_v37, %v558_v27  ;;  %v749_v25 = vclz %v2482_v17  ;;  %vm5256_vm6 = vcmp.lt.s32.totalorder %v5241_v16, 2 }
 0x1f0   : > { %vm4385_vm9 = vcmp.le.f32.partialorder %v5253_v24, 0.7853982  ;;  %v408_v13 = vsel %vm5256_vm6, %v405_v51, %v407_v60  ;;  %v5106_v21 = vand.u32 2147483647, %v5257_v59  ;;  %v2013_v54 = vxor.u32 2147483648, %v4328_v45  ;;  %v2053_v51 = vld [vmem:[%s4981_s1 + $0x20] sm:$0xff] }
 0x1f1   : > { %v566_v57 = vadd.s32 3, %v562_v30  ;;  %v737_v38 = vadd.s32 %v4247_v15, %v4235_v50  ;;  %vm426_vm7 = vc.u32 %v4339_v44, %v4349_v62  ;;  %2769 = vcosq.f32 %v561_v49  ;;  %v2054_v60 = vld [vmem:[%s4981_s1 + $0x28] sm:$0xff]  ;;  %v5258_v15 = vld [vmem:[#allocation31_spill] sm:$0xff]  ;;  %2087 = vperm.xlu1 %2724, %v2053_v51  }
 0x1f2   : > { %v2483_v19 = vadd.s32 4294967294, %v749_v25  ;;  %v767_v17 = vsub.s32 4, %v4303_v14  ;;  %v427_v16 = vadd.s32 1, %v4350_v28  ;;  %2771 = vsinq.f32 %v561_v49  ;;  %2092 = vperm.xlu0 %2723, %v2054_v60  }
 0x1f3   : > { %v424_v50 = vmul.u32 %v417_v8, %v408_v13  ;;  %v595_v30 = vshrl.u32 %v5146_v26, %v5258_v15  ;;  %v598_v23 = vshrl.u32 %v5135_v41, %v5258_v15  ;;  %v5259_v22 = vand.u32 2147483647, %v3848_v61  ;;  %v5262_v13 = vld [vmem:[#allocation29_spill] sm:$0xff] }
 0x1f4   : > { %v5260_v20 = vmov 0  ;;  %vm2484_vm6 = vcmp.lt.s32.totalorder %v2483_v19, 0  ;;  %v428_v27 = vsel %vm426_vm7, %v427_v16, %v4350_v28  ;;  %v584_v24 = vand.u32 8388607, %v5106_v21 }
 0x1f5   : > { %vm4411_vm4 = vcmp.le.f32.partialorder %v5259_v22, 0.7853982  ;;  %v601_v8 = vshrl.u32 %v5136_v11, %v5258_v15  ;;  %v752_v49 = vsel %vm2484_vm6, 0, %v2483_v19  ;;  %v429_v25 = vadd.s32 %v428_v27, %v424_v50  ;;  %v2055_v11 = vld [vmem:[%s4981_s1 + $0x30] sm:$0xff] }
 0x1f6   : > { %v5261_v20 = vsel %vm4411_vm4, 4294967295, %v5260_v20  ;;  %v597_v31 = vshll.u32 %v5146_v26, %v5262_v13  ;;  %v600_v22 = vshll.u32 %v5135_v41, %v5262_v13  ;;  %v753_v7 = vsub.s32 32, %v752_v49  ;;  %v2056_v26 = vld [vmem:[%s4981_s1 + $0x38] sm:$0xff]  ;;  %v4437_v50 = vpop.eup %2765  ;;  %2097 = vperm.xlu1 %2724, %v2055_v11  }
 0x1f7   : > { %v757_v36 = vsub.s32 4294967266, %v752_v49  ;;  %v768_v28 = vsel %vm5110_vm10, %v767_v17, %v4303_v14  ;;  %v594_v16 = vshll.u32 %v5148_v4, %v5262_v13  ;;  %v4435_v41 = vand.u32 3, %v566_v57  ;;  %v4440_v21 = vpop.eup %2767  ;;  %2102 = vperm.xlu0 %2723, %v2056_v26  }
 0x1f8   : > { %v430_v19 = vadd.s32 536870912, %v429_v25  ;;  %v599_v51 = vor.u32 %v598_v23, %v597_v31  ;;  %v602_v60 = vor.u32 %v601_v8, %v600_v22  ;;  %v754_v14 = vshll.u32 %v4320_v55, %v752_v49 }
 0x1f9   : > { %v755_v17 = vshrl.u32 %v737_v38, %v753_v7  ;;  %v758_v27 = vadd.s32 127, %v757_v36  ;;  %v596_v13 = vor.u32 %v595_v30, %v594_v16  ;;  %v2014_v52 = vsel %vm5111_vm5, %v2013_v54, %v4328_v45  ;;  %v2057_v36 = vld [vmem:[%s4981_s1 + $0x40] sm:$0xff]  ;;  %v2058_v7 = vld [vmem:[%s4981_s1 + $0x48] sm:$0xff] }
 0x1fa   : > { %v770_v57 = vsel %vm4385_vm9, 0, %v768_v28  ;;  %v431_v63 = vshrl.u32 %v430_v19, 30  ;;  %v585_v10 = vor.u32 8388608, %v584_v24  ;;  %vm609_vm6 = vcmp.lt.s32.totalorder %v5236_v29, 1  ;;  %2107 = vperm.xlu1 %2724, %v2057_v36  }
 0x1fb   : > { %v756_v31 = vor.u32 %v755_v17, %v754_v14  ;;  %v759_v23 = vshll.u32 %v758_v27, 23  ;;  %vm5113_vm10 = vcmp.lt.s32.totalorder %v5236_v29, 3  ;;  %v621_v45 = vsel %vm609_vm6, %v599_v51, %v602_v60  ;;  %v2770_v38 = vpop.eup %2769  ;;  %2112 = vperm.xlu0 %2723, %v2058_v7  }
 0x1fc   : > { %v432_v55 = vshll.u32 %v431_v63, 30  ;;  %v623_v54 = vsel %vm5113_vm10, %v3463_v47, %v4374_v53  ;;  %vm5114_vm7 = vcmp.lt.s32.totalorder %v5236_v29, 2  ;;  %v617_v24 = vsel %vm609_vm6, %v596_v13, %v599_v51  ;;  %v2772_v49 = vpop.eup %2771 }
 0x1fd   : > { %v760_v30 = vor.u32 4788187, %v759_v23  ;;  %v619_v8 = vsel %vm5113_vm10, %v602_v60, %v4358_v6  ;;  %v4472_v22 = vsel %vm4411_vm4, %v3848_v61, %v2014_v52  ;;  %v774_v47 = vadd.s32 3, %v770_v57  ;;  %v2059_v52 = vld [vmem:[%s4981_s1 + $0x50] sm:$0xff] }
 0x1fe   : > { %v5263_v53 = vand.u32 2147483647, %v5231_v56  ;;  %v4481_v16 = vsub.s32 %v429_v25, %v432_v55  ;;  %v624_v6 = vsel %vm5114_vm7, %v621_v45, %v623_v54  ;;  %v763_v26 = vcvt.s32.f32 %v756_v31  ;;  %v2060_v25 = vld [vmem:[%s4981_s1 + $0x58] sm:$0xff]  ;;  %2117 = vperm.xlu1 %2724, %v2059_v52  }
 0x1ff   : > { %v761_v11 = vand.u32 2147483647, %v760_v30  ;;  %vm5266_vm5 = vcmp.lt.s32.totalorder %v5236_v29, 4  ;;  %v625_v14 = vshll.u32 %v585_v10, 8  ;;  %v455_v27 = vsub.s32 4, %v431_v63  ;;  %v5268_v54 = vld [vmem:[#allocation44_spill] sm:$0xff]  ;;  %2122 = vperm.xlu0 %2723, %v2060_v25  }
 0x200   : > { %vm4477_vm13 = vcmp.le.f32.partialorder %v5263_v53, 0.7853982  ;;  %v614_v19 = vsel %vm5266_vm5, %v602_v60, 2102212464  ;;  %v435_v17 = vsub.s32 0, %v4481_v16  ;;  %v593_v57 = vshrl.u32 %v5148_v4, %v5258_v15  ;;  %v2061_v53 = vld [vmem:[%s4981_s1 + $0x60] sm:$0xff] }
 0x201   : > { %v620_v23 = vsel %vm5114_vm7, %v617_v24, %v619_v8  ;;  %v573_v31 = vxor.u32 2147483648, %v2770_v38  ;;  %v764_v36 = vmul.f32 %v763_v26, %v761_v11  ;;  %vm5267_vm5 = vcmp.lt.s32.totalorder %v5236_v29, 3 }
 0x202   : > { %v4499_v7 = vmul.u32.u64.low %v625_v14, %v624_v6  ;;  %v4500_v60 = vmul.u32.u64.high %v625_v14, %v624_v6, %v4499_v7  ;;  %v2470_v10 = vmin.u32 %v435_v17, %v4481_v16  ;;  %v613_v55 = vsel %vm609_vm6, %v593_v57, %v596_v13  ;;  %v2062_v13 = vld [vmem:[%s4981_s1 + $0x68] sm:$0xff]  ;;  %2127 = vperm.xlu1 %2724, %v2061_v53  }
 0x203   : > { %v615_v45 = vsel %vm5267_vm5, %v599_v51, %v614_v19  ;;  %v975_v4 = vsub.s32 4, %v5268_v54  ;;  %v570_v15 = vxor.u32 2147483648, %v2772_v49  ;;  %v765_v30 = vxor.u32 2147483648, %v764_v36  ;;  %2132 = vperm.xlu0 %2723, %v2062_v13   ;;  %v5279_v13 = vld [vmem:[#allocation38_spill] sm:$0xff] }
 0x204   : > { %v4508_v24 = vmul.u32.u64.low %v625_v14, %v620_v23  ;;  %v4509_v8 = vmul.u32.u64.high %v625_v14, %v620_v23, %v4508_v24  ;;  %2773 = vcosq.f32 %v4472_v22  ;;  %vm565_vm6 = vweird.f32 %v5206_v37  ;;  %v5275_v23 = vld [vmem:[#allocation26_spill] sm:$0xff] }
 0x205   : > { %v4520_v51 = vand.u32 3, %v774_v47  ;;  %v437_v6 = vclz %v2470_v10  ;;  %vm5269_vm5 = vcmp.lt.s32.totalorder %v5231_v56, 0  ;;  %vm5270_vm10 = vcmp.eq.s32.totalorder %v4435_v41, 2 }
 0x206   : > { %v456_v52 = vsel %vm5269_vm5, %v455_v27, %v431_v63  ;;  %v574_v11 = vsel %vm5270_vm10, %v573_v31, %v2772_v49  ;;  %vm5271_vm7 = vcmp.lt.s32.totalorder %v5218_v40, 0  ;;  %vm5272_vm4 = vcmp.lt.s32.totalorder %v5236_v29, 2  ;;  %2137 = vperm.xlu1 %2724, %v2063_v2  }
 0x207   : > { %v766_v26 = vsel %vm5271_vm7, %v765_v30, %v764_v36  ;;  %v616_v19 = vsel %vm5272_vm4, %v613_v55, %v615_v45  ;;  %vm5273_vm12 = vcmp.lt.s32.totalorder %v3382_v5, 0  ;;  %v2471_v17 = vadd.s32 4294967294, %v437_v6  ;;  %2142 = vperm.xlu0 %2723, %v2064_v1  }
 0x208   : > { %v976_v25 = vsel %vm5273_vm12, %v975_v4, %v5268_v54  ;;  %v769_v47 = vsel %vm4385_vm9, %v5218_v40, %v766_v26  ;;  %vm634_vm5 = vc.u32 %v4500_v60, %v4508_v24  ;;  %vm5274_vm10 = vcmp.eq.s32.totalorder %v4435_v41, 0 }
 0x209   : > { %v978_v63 = vsel %vm3908_vm8, 0, %v976_v25  ;;  %v571_v29 = vsel %vm5274_vm10, %v2770_v38, %v570_v15  ;;  %2775 = vcosq.f32 %v769_v47  ;;  %v458_v49 = vsel %vm4477_vm13, 0, %v456_v52 }
 0x20a   : > { %v635_v27 = vadd.s32 1, %v4509_v8  ;;  %2777 = vsinq.f32 %v769_v47  ;;  %vm2472_vm8 = vcmp.lt.s32.totalorder %v2471_v17, 0  ;;  %v632_v57 = vmul.u32 %v625_v14, %v616_v19  ;;  %v5307_v19 = vld [vmem:[#allocation20_spill] sm:$0xff] }
 0x20b   : > { %v1183_v31 = vsub.s32 4, %v5275_v23  ;;  %v425_v38 = vadd.s32 %v4349_v62, %v4339_v44  ;;  %v440_v36 = vsel %vm2472_vm8, 0, %v2471_v17  ;;  %v982_v10 = vadd.s32 3, %v978_v63  ;;  %v5277_v44 = vld [vmem:[#allocation13_spill] sm:$0xff] }
 0x20c   : > { %v636_v7 = vsel %vm634_vm5, %v635_v27, %v4509_v8  ;;  %vm5276_vm12 = vcmp.lt.s32.totalorder %v4435_v41, 2  ;;  %v441_v45 = vsub.s32 32, %v440_v36  ;;  %v445_v54 = vsub.s32 4294967266, %v440_v36 }
 0x20d   : > { %v575_v55 = vsel %vm5276_vm12, %v571_v29, %v574_v11  ;;  %v637_v4 = vadd.s32 %v636_v7, %v632_v57  ;;  %2779 = vsinq.f32 %v4472_v22  ;;  %v462_v14 = vadd.s32 3, %v458_v49 }
 0x20e   : > { %vm579_vm9 = vcmp.lt.s32.totalorder %v5257_v59, 0  ;;  %vm5278_vm4 = vcmp.lt.s32.totalorder %v5277_v44, 0  ;;  %vm777_vm7 = vcmp.eq.s32.totalorder %v4520_v51, 0  ;;  %v442_v15 = vshll.u32 %v4481_v16, %v440_v36  ;;  %v4572_v52 = vpop.eup %2773 }
 0x20f   : > { %v1184_v62 = vsel %vm5278_vm4, %v1183_v31, %v5275_v23  ;;  %v443_v41 = vshrl.u32 %v425_v38, %v441_v45  ;;  %v446_v30 = vadd.s32 127, %v445_v54  ;;  %v638_v8 = vadd.s32 536870912, %v637_v4 }
 0x210   : > { %v576_v53 = vsel %vm565_vm6, nan, %v575_v55  ;;  %vm776_vm5 = vcmp.lt.s32.totalorder %v4520_v51, 2  ;;  %vm780_vm10 = vcmp.eq.s32.totalorder %v4520_v51, 2  ;;  %v983_v22 = vand.u32 3, %v982_v10 }
 0x211   : > { %v871_v6 = vsub.s32 4, %v5279_v13  ;;  %v444_v11 = vor.u32 %v443_v41, %v442_v15  ;;  %v447_v26 = vshll.u32 %v446_v30, 23  ;;  %v5280_v16 = vand.u32 2147483647, %v5257_v59 }
 0x212   : > { %v639_v37 = vshrl.u32 %v638_v8, 30  ;;  %v1186_v47 = vsel %vm3486_vm15, 0, %v1184_v62  ;;  %v4583_v17 = vand.u32 3, %v462_v14  ;;  %v986_v63 = vxor.u32 2147483648, %v4062_v39  ;;  %v5285_v14 = vld [vmem:[#allocation45_spill] sm:$0xff] }
 0x213   : > { %vm4577_vm12 = vcmp.le.f32.partialorder %v5280_v16, 0.7853982  ;;  %v989_v29 = vxor.u32 2147483648, %v4057_v33  ;;  %vm5284_vm6 = vcmp.lt.s32.totalorder %v5192_v58, 0  ;;  %v448_v27 = vor.u32 4788187, %v447_v26  ;;  %v2776_v23 = vpop.eup %2775 }
 0x214   : > { %v872_v49 = vsel %vm5284_vm6, %v871_v6, %v5279_v13  ;;  %v4592_v2 = vadd.s32 %v4508_v24, %v4500_v60  ;;  %v640_v1 = vshll.u32 %v639_v37, 30  ;;  %v663_v57 = vsub.s32 4, %v639_v37  ;;  %v2778_v36 = vpop.eup %2777  ;;  %v5286_v26 = vld [vmem:[#allocation43_spill] sm:$0xff] }
 0x215   : > { %v451_v31 = vcvt.s32.f32 %v444_v11  ;;  %vm985_vm15 = vcmp.eq.s32.totalorder %v983_v22, 0  ;;  %vm988_vm4 = vcmp.eq.s32.totalorder %v983_v22, 2  ;;  %v1190_v38 = vadd.s32 3, %v1186_v47 }
 0x216   : > { %v781_v7 = vxor.u32 2147483648, %v2776_v23  ;;  %v449_v10 = vand.u32 2147483647, %v448_v27  ;;  %v4594_v55 = vsub.s32 %v637_v4, %v640_v1  ;;  %vm981_vm8 = vweird.f32 %v3382_v5 }
 0x217   : > { %v874_v45 = vsel %vm3874_vm1, 0, %v872_v49  ;;  %v778_v54 = vxor.u32 2147483648, %v2778_v36  ;;  %v987_v60 = vsel %vm985_vm15, %v4057_v33, %v986_v63  ;;  %v990_v24 = vsel %vm988_vm4, %v989_v29, %v4062_v39  ;;  %v4607_v8 = vpop.eup %2779  ;;  %v5289_v49 = vld [vmem:[#allocation21_spill] sm:$0xff] }
 0x218   : > { %v1194_v62 = vxor.u32 2147483648, %v5285_v14  ;;  %v782_v15 = vsel %vm780_vm10, %v781_v7, %v2778_v36  ;;  %v452_v41 = vmul.f32 %v451_v31, %v449_v10  ;;  %v643_v30 = vsub.s32 0, %v4594_v55  ;;  %v5290_v36 = vld [vmem:[#allocation10_spill] sm:$0xff] }
 0x219   : > { %v664_v4 = vsel %vm579_vm9, %v663_v57, %v639_v37  ;;  %v779_v9 = vsel %vm777_vm7, %v2776_v23, %v778_v54  ;;  %vm984_vm1 = vcmp.lt.s32.totalorder %v983_v22, 2  ;;  %v1191_v33 = vand.u32 3, %v1190_v38 }
 0x21a   : > { %v878_v13 = vadd.s32 3, %v874_v45  ;;  %v783_v39 = vsel %vm776_vm5, %v779_v9, %v782_v15  ;;  %v453_v6 = vxor.u32 2147483648, %v452_v41  ;;  %v2478_v11 = vmin.u32 %v643_v30, %v4594_v55 }
 0x21b   : > { %v1197_v16 = vxor.u32 2147483648, %v5286_v26  ;;  %vm5287_vm10 = vweird.f32 %v5218_v40  ;;  %v666_v37 = vsel %vm4577_vm12, 0, %v664_v4  ;;  %v991_v47 = vsel %vm984_vm1, %v987_v60, %v990_v24 }
 0x21c   : > { %v784_v25 = vsel %vm5287_vm10, nan, %v783_v39  ;;  %v882_v63 = vxor.u32 2147483648, %v3986_v32  ;;  %vm5288_vm7 = vcmp.lt.s32.totalorder %v5231_v56, 0  ;;  %v645_v51 = vclz %v2478_v11  ;;  %v5294_v39 = vld [vmem:[#allocation41_spill] sm:$0xff] }
 0x21d   : > { %v2555_v22 = vpack.c.bf16 %v784_v25, %v576_v53  ;;  %v454_v29 = vsel %vm5288_vm7, %v453_v6, %v452_v41  ;;  %v1079_v27 = vsub.s32 4, %v5289_v49  ;;  %vm1193_vm5 = vcmp.eq.s32.totalorder %v1191_v33, 0 }
 0x21e   : > { %v457_v1 = vsel %vm4477_vm13, %v5231_v56, %v454_v29  ;;  %vm1196_vm6 = vcmp.eq.s32.totalorder %v1191_v33, 2  ;;  %v879_v40 = vand.u32 3, %v878_v13  ;;  %v2479_v57 = vadd.s32 4294967294, %v645_v51 }
 0x21f   : > { %2556 = vmatprep.subr.bf16.mxu0 %v2555_v22  ;;  %2571 = vmatprep.subr.bf16.mxu1 %v2555_v22  ;;  %2781 = vcosq.f32 %v457_v1  ;;  %v1195_v23 = vsel %vm1193_vm5, %v5286_v26, %v1194_v62  ;;  %v1198_v53 = vsel %vm1196_vm6, %v1197_v16, %v5285_v14  ;;  %v992_v31 = vsel %vm981_vm8, nan, %v991_v47 }
 0x220   : > { %2783 = vsinq.f32 %v457_v1  ;;  %vm1189_vm15 = vweird.f32 %v5277_v44  ;;  %v885_v28 = vxor.u32 2147483648, %v3983_v46  ;;  %vm2480_vm13 = vcmp.lt.s32.totalorder %v2479_v57, 0 }
 0x221   : > { %v670_v38 = vadd.s32 3, %v666_v37  ;;  %vm1192_vm4 = vcmp.lt.s32.totalorder %v1191_v33, 2  ;;  %vm5291_vm1 = vcmp.lt.s32.totalorder %v5290_v36, 0  ;;  %v648_v10 = vsel %vm2480_vm13, 0, %v2479_v57  ;;  %v5293_v33 = vld [vmem:[#allocation42_spill] sm:$0xff] }
 0x222   : > { %v1080_v7 = vsel %vm5291_vm1, %v1079_v27, %v5289_v49  ;;  %v1199_v45 = vsel %vm1192_vm4, %v1195_v23, %v1198_v53  ;;  %vm881_vm10 = vcmp.eq.s32.totalorder %v879_v40, 0  ;;  %v649_v24 = vsub.s32 32, %v648_v10  ;;  %v5311_v53 = vld [vmem:[#allocation49_spill] sm:$0xff] }
 0x223   : > { %v1082_v60 = vsel %vm3469_vm11, 0, %v1080_v7  ;;  %v653_v5 = vsub.s32 4294967266, %v648_v10  ;;  %v883_v14 = vsel %vm881_vm10, %v3983_v46, %v882_v63  ;;  %vm884_vm8 = vcmp.eq.s32.totalorder %v879_v40, 2 }
 0x224   : > { %v650_v62 = vshll.u32 %v4594_v55, %v648_v10  ;;  %v886_v15 = vsel %vm884_vm8, %v885_v28, %v3986_v32  ;;  %v1086_v41 = vadd.s32 3, %v1082_v60  ;;  %v1391_v30 = vsub.s32 4, %v3788_v34  ;;  %v5296_v55 = vld [vmem:[#allocation34_spill] sm:$0xff] }
 0x225   : > { %v651_v4 = vshrl.u32 %v4592_v2, %v649_v24  ;;  %v654_v9 = vadd.s32 127, %v653_v5  ;;  %v1090_v13 = vxor.u32 2147483648, %v5293_v33  ;;  %v1093_v6 = vxor.u32 2147483648, %v5294_v39 }
 0x226   : > { %vm465_vm11 = vcmp.eq.s32.totalorder %v4583_v17, 0  ;;  %v1200_v46 = vsel %vm1189_vm15, nan, %v1199_v45  ;;  %v1087_v11 = vand.u32 3, %v1086_v41  ;;  %vm5295_vm7 = vcmp.lt.s32.totalorder %v3580_v12, 0  ;;  %v5301_v41 = vld [vmem:[#allocation5_spill] sm:$0xff] }
 0x227   : > { %v1392_v32 = vsel %vm5295_vm7, %v1391_v30, %v3788_v34  ;;  %v1599_v26 = vsub.s32 4, %v5296_v55  ;;  %v652_v16 = vor.u32 %v651_v4, %v650_v62  ;;  %v655_v25 = vshll.u32 %v654_v9, 23  ;;  %v5302_v4 = vld [vmem:[#allocation50_spill] sm:$0xff] }
 0x228   : > { %vm880_vm5 = vcmp.lt.s32.totalorder %v879_v40, 2  ;;  %v1394_v2 = vsel %vm4137_vm2, 0, %v1392_v32  ;;  %vm1089_vm6 = vcmp.eq.s32.totalorder %v1087_v11, 0  ;;  %vm1092_vm13 = vcmp.eq.s32.totalorder %v1087_v11, 2 }
 0x229   : > { %v887_v37 = vsel %vm880_vm5, %v883_v14, %v886_v15  ;;  %v1398_v47 = vadd.s32 3, %v1394_v2  ;;  %v2782_v63 = vpop.eup %2781  ;;  %vm464_vm15 = vcmp.lt.s32.totalorder %v4583_v17, 2  ;;  %v656_v44 = vor.u32 4788187, %v655_v25 }
 0x22a   : > { %vm1088_vm4 = vcmp.lt.s32.totalorder %v1087_v11, 2  ;;  %v1091_v22 = vsel %vm1089_vm6, %v5294_v39, %v1090_v13  ;;  %v1094_v34 = vsel %vm1092_vm13, %v1093_v6, %v5293_v33  ;;  %v2784_v29 = vpop.eup %2783  ;;  %v469_v51 = vxor.u32 2147483648, %v2782_v63  ;;  %v5303_v39 = vld [vmem:[#allocation33_spill] sm:$0xff] }
 0x22b   : > { %v659_v49 = vcvt.s32.f32 %v652_v16  ;;  %v1095_v27 = vsel %vm1088_vm4, %v1091_v22, %v1094_v34  ;;  %vm5298_vm2 = vcmp.lt.s32.totalorder %v5297_v18, 0  ;;  %v466_v40 = vxor.u32 2147483648, %v2784_v29 }
 0x22c   : > { %v1600_v1 = vsel %vm5298_vm2, %v1599_v26, %v5296_v55  ;;  %v657_v57 = vand.u32 2147483647, %v656_v44  ;;  %v1399_v23 = vand.u32 3, %v1398_v47  ;;  %vm468_vm1 = vcmp.eq.s32.totalorder %v4583_v17, 2 }
 0x22d   : > { %v1602_v28 = vsel %vm3661_vm14, 0, %v1600_v1  ;;  %v4662_v7 = vand.u32 3, %v670_v38  ;;  %v4664_v10 = vpack.c.bf16 %v1200_v46, %v992_v31  ;;  %vm877_vm10 = vweird.f32 %v5192_v58  ;;  %v5300_v58 = vld [vmem:[#allocation51_spill] sm:$0xff]  ;;  %v5310_v1 = vld [vmem:[#allocation53_spill] sm:$0xff] }
 0x22e   : > { %v660_v45 = vmul.f32 %v659_v49, %v657_v57  ;;  %v888_v54 = vsel %vm877_vm10, nan, %v887_v37  ;;  %vm1085_vm8 = vweird.f32 %v5290_v36  ;;  %v1402_v60 = vxor.u32 2147483648, %v4245_v3 }
 0x22f   : > { %vm461_vm7 = vweird.f32 %v5231_v56  ;;  %v470_v24 = vsel %vm468_vm1, %v469_v51, %v2784_v29  ;;  %v1096_v5 = vsel %vm1085_vm8, nan, %v1095_v27  ;;  %v1405_v14 = vxor.u32 2147483648, %v4237_v42  ;;  %v5312_v56 = vld [vmem:[#allocation46_spill] sm:$0xff] }
 0x230   : > { %v1606_v62 = vadd.s32 3, %v1602_v28  ;;  %v467_v38 = vsel %vm465_vm11, %v2782_v63, %v466_v40  ;;  %v661_v31 = vxor.u32 2147483648, %v660_v45  ;;  %vm1397_vm14 = vweird.f32 %v3580_v12 }
 0x231   : > { %vm1400_vm5 = vcmp.lt.s32.totalorder %v1399_v23, 2  ;;  %v1610_v15 = vxor.u32 2147483648, %v5300_v58  ;;  %vm1401_vm6 = vcmp.eq.s32.totalorder %v1399_v23, 0  ;;  %v1613_v30 = vxor.u32 2147483648, %v5301_v41 }
 0x232   : > { %v1607_v36 = vand.u32 3, %v1606_v62  ;;  %v1287_v9 = vsub.s32 4, %v5302_v4  ;;  %v662_v33 = vsel %vm579_vm9, %v661_v31, %v660_v45  ;;  %v1403_v13 = vsel %vm1401_vm6, %v4237_v42, %v1402_v60  ;;  %v5304_v42 = vld [vmem:[#allocation39_spill] sm:$0xff]  ;;  %v5314_v62 = vld [vmem:[#allocation12_spill] sm:$0xff]  ;;  %v5316_v31 = vld [vmem:[#allocation9_spill] sm:$0xff] }
 0x233   : > { %vm1404_vm13 = vcmp.eq.s32.totalorder %v1399_v23, 2  ;;  %vm1605_vm11 = vweird.f32 %v5297_v18  ;;  %v1495_v6 = vsub.s32 4, %v5303_v39  ;;  %v471_v46 = vsel %vm464_vm15, %v467_v38, %v470_v24 }
 0x234   : > { %v665_v11 = vsel %vm4577_vm12, %v5257_v59, %v662_v33  ;;  %v1406_v32 = vsel %vm1404_vm13, %v1405_v14, %v4245_v3  ;;  %vm1609_vm4 = vcmp.eq.s32.totalorder %v1607_v36, 0  ;;  %vm1612_vm9 = vcmp.eq.s32.totalorder %v1607_v36, 2 }
 0x235   : > { %2785 = vcosq.f32 %v665_v11  ;;  %v1611_v55 = vsel %vm1609_vm4, %v5301_v41, %v1610_v15  ;;  %vm5305_vm2 = vcmp.lt.s32.totalorder %v5304_v42, 0  ;;  %v1614_v16 = vsel %vm1612_vm9, %v1613_v30, %v5300_v58 }
 0x236   : > { %v1288_v26 = vsel %vm5305_vm2, %v1287_v9, %v5302_v4  ;;  %2787 = vsinq.f32 %v665_v11  ;;  %vm5308_vm12 = vcmp.lt.s32.totalorder %v5307_v19, 0  ;;  %v4698_v3 = vpack.c.bf16 %v1096_v5, %v888_v54 }
 0x237   : > { %v1290_v25 = vsel %vm3975_vm0, 0, %v1288_v26  ;;  %v1496_v2 = vsel %vm5308_vm12, %v1495_v6, %v5303_v39  ;;  %v1407_v37 = vsel %vm1400_vm5, %v1403_v13, %v1406_v32  ;;  %vm1608_vm15 = vcmp.lt.s32.totalorder %v1607_v36, 2  ;;  %v5319_v13 = vld [vmem:[#allocation28_spill] sm:$0xff] }
 0x238   : > { %v1294_v47 = vadd.s32 3, %v1290_v25  ;;  %v1498_v44 = vsel %vm3515_vm3, 0, %v1496_v2  ;;  %v1298_v22 = vxor.u32 2147483648, %v4199_v0  ;;  %v1301_v34 = vxor.u32 2147483648, %v4190_v48 }
 0x239   : > { %v1502_v29 = vadd.s32 3, %v1498_v44  ;;  %v472_v51 = vsel %vm461_vm7, nan, %v471_v46  ;;  %vm676_vm0 = vcmp.eq.s32.totalorder %v4662_v7, 2  ;;  %v1615_v49 = vsel %vm1608_vm15, %v1611_v55, %v1614_v16 }
 0x23a   : > { %v1295_v27 = vand.u32 3, %v1294_v47  ;;  %v1807_v40 = vsub.s32 4, %v5310_v1  ;;  %vm673_vm1 = vcmp.eq.s32.totalorder %v4662_v7, 0  ;;  %v1408_v57 = vsel %vm1397_vm14, nan, %v1407_v37  ;;  %v5321_v37 = vld [vmem:[#allocation48_spill] sm:$0xff] }
 0x23b   : > { %v1503_v23 = vand.u32 3, %v1502_v29  ;;  %v1506_v28 = vxor.u32 2147483648, %v5311_v53  ;;  %v2015_v45 = vsub.s32 4, %v4120_v35  ;;  %vm672_vm3 = vcmp.lt.s32.totalorder %v4662_v7, 2  ;;  %v5323_v7 = vld [vmem:[#allocation16_spill] sm:$0xff] }
 0x23c   : > { %vm1297_vm10 = vcmp.eq.s32.totalorder %v1295_v27, 0  ;;  %vm1300_vm8 = vcmp.eq.s32.totalorder %v1295_v27, 2  ;;  %v1509_v54 = vxor.u32 2147483648, %v5312_v56  ;;  %vm5313_vm7 = vcmp.lt.s32.totalorder %v3751_v43, 0 }
 0x23d   : > { %v1808_v60 = vsel %vm5313_vm7, %v1807_v40, %v5310_v1  ;;  %vm669_vm5 = vweird.f32 %v5257_v59  ;;  %v1616_v12 = vsel %vm1605_vm11, nan, %v1615_v49  ;;  %vm1293_vm14 = vweird.f32 %v5304_v42  ;;  %v5325_v1 = vld [vmem:[#allocation7_spill] sm:$0xff] }
 0x23e   : > { %v1299_v24 = vsel %vm1297_vm10, %v4190_v48, %v1298_v22  ;;  %v1302_v5 = vsel %vm1300_vm8, %v1301_v34, %v4199_v0  ;;  %v4725_v14 = vpack.c.bf16 %v1616_v12, %v1408_v57  ;;  %vm1296_vm6 = vcmp.lt.s32.totalorder %v1295_v27, 2  ;;  %v5330_v12 = vld [vmem:[#allocation17_spill] sm:$0xff] }
 0x23f   : > { %vm5315_vm13 = vnez %v5314_v62  ;;  %v1818_v58 = vxor.u32 2147483648, %v5316_v31  ;;  %vm1505_vm4 = vcmp.eq.s32.totalorder %v1503_v23, 0  ;;  %vm1508_vm9 = vcmp.eq.s32.totalorder %v1503_v23, 2  ;;  %v2786_v36 = vpop.eup %2785 }
 0x240   : > { %v1810_v38 = vsel %vm5315_vm13, 0, %v1808_v60  ;;  %vm5317_vm11 = vcmp.lt.s32.totalorder %v3848_v61, 0  ;;  %v1303_v41 = vsel %vm1296_vm6, %v1299_v24, %v1302_v5  ;;  %v1507_v48 = vsel %vm1505_vm4, %v5312_v56, %v1506_v28  ;;  %v2788_v4 = vpop.eup %2787 }
 0x241   : > { %v1814_v15 = vadd.s32 3, %v1810_v38  ;;  %v2016_v18 = vsel %vm5317_vm11, %v2015_v45, %v4120_v35  ;;  %v1510_v0 = vsel %vm1508_vm9, %v1509_v54, %v5311_v53  ;;  %vm5318_vm2 = vnez %v5261_v20  ;;  %v5320_v35 = vld [vmem:[#allocation25_spill] sm:$0xff]  ;;  %v5328_v45 = vld [vmem:[#allocation52_spill] sm:$0xff] }
 0x242   : > { %v2018_v30 = vsel %vm5318_vm2, 0, %v2016_v18  ;;  %v677_v9 = vxor.u32 2147483648, %v2786_v36  ;;  %vm1501_vm12 = vweird.f32 %v5307_v19  ;;  %v1821_v39 = vxor.u32 2147483648, %v5319_v13 }
 0x243   : > { %v1815_v33 = vand.u32 3, %v1814_v15  ;;  %v2022_v6 = vadd.s32 3, %v2018_v30  ;;  %v674_v46 = vxor.u32 2147483648, %v2788_v4  ;;  %vm1504_vm15 = vcmp.lt.s32.totalorder %v1503_v23, 2  ;;  %v5326_v23 = vld [vmem:[#allocation19_spill] sm:$0xff]  ;;  %v2042_v30 = vld [vmem:[%s4980_s0 + $0x48] sm:$0xff] }
 0x244   : > { %vm2021_vm10 = vweird.f32 %v3848_v61  ;;  %v1703_v11 = vsub.s32 4, %v5320_v35  ;;  %v678_v32 = vsel %vm676_vm0, %v677_v9, %v2788_v4  ;;  %v1304_v20 = vsel %vm1293_vm14, nan, %v1303_v41  ;;  %v2035_v4 = vld [vmem:[%s4980_s0 + $0x10] sm:$0xff] }
 0x245   : > { %v1511_v55 = vsel %vm1504_vm15, %v1507_v48, %v1510_v0  ;;  %v2026_v26 = vxor.u32 2147483648, %v4607_v8  ;;  %v675_v16 = vsel %vm673_vm1, %v2786_v36, %v674_v46  ;;  %vm1816_vm8 = vcmp.lt.s32.totalorder %v1815_v33, 2  ;;  %v2033_v0 = vld [vmem:[%s4980_s0] sm:$0xff]  ;;  %v2043_v9 = vld [vmem:[%s4980_s0 + $0x50] sm:$0xff]  ;;  %v2038_v46 = vld [vmem:[%s4980_s0 + $0x28] sm:$0xff] }
 0x246   : > { %v2023_v17 = vand.u32 3, %v2022_v6  ;;  %v2029_v25 = vxor.u32 2147483648, %v4572_v52  ;;  %v679_v2 = vsel %vm672_vm3, %v675_v16, %v678_v32  ;;  %vm1817_vm7 = vcmp.eq.s32.totalorder %v1815_v33, 0  ;;  %v2045_v6 = vld [vmem:[%s4980_s0 + $0x60] sm:$0xff]  ;;  %v2047_v32 = vld [vmem:[%s4980_s0 + $0x70] sm:$0xff] }
 0x247   : > { %vm1820_vm6 = vcmp.eq.s32.totalorder %v1815_v33, 2  ;;  %vm5322_vm0 = vcmp.lt.s32.totalorder %v5321_v37, 0  ;;  %v680_v47 = vsel %vm669_vm5, nan, %v679_v2  ;;  %v1819_v63 = vsel %vm1817_vm7, %v5319_v13, %v1818_v58  ;;  %v2036_v33 = vld [vmem:[%s4980_s0 + $0x18] sm:$0xff] }
 0x248   : > { %v1704_v42 = vsel %vm5322_vm0, %v1703_v11, %v5320_v35  ;;  %v1822_v44 = vsel %vm1820_vm6, %v1821_v39, %v5316_v31  ;;  %vm2025_vm1 = vcmp.eq.s32.totalorder %v2023_v17, 0  ;;  %v2557_v22 = vpack.c.bf16 %v680_v47, %v472_v51  ;;  %v5327_v51 = vld [vmem:[#allocation30_spill] sm:$0xff]  ;;  %v2044_v13 = vld [vmem:[%s4980_s0 + $0x58] sm:$0xff]  ;;  %v2037_v39 = vld [vmem:[%s4980_s0 + $0x20] sm:$0xff] }
 0x249   : > { %v2027_v34 = vsel %vm2025_vm1, %v4572_v52, %v2026_v26  ;;  %vm2028_vm14 = vcmp.eq.s32.totalorder %v2023_v17, 2  ;;  %vm5324_vm3 = vnez %v5323_v7  ;;  %vm2024_vm13 = vcmp.lt.s32.totalorder %v2023_v17, 2  ;;  %v2046_v35 = vld [vmem:[%s4980_s0 + $0x68] sm:$0xff]  ;;  %v2039_v11 = vld [vmem:[%s4980_s0 + $0x30] sm:$0xff] }
 0x24a   : > { %v1706_v29 = vsel %vm5324_vm3, 0, %v1704_v42  ;;  %v2030_v49 = vsel %vm2028_vm14, %v2029_v25, %v4607_v8  ;;  %v1911_v40 = vsub.s32 4, %v5325_v1  ;;  %2558 = vmatpush1.bf16.msra.mxu0 %v2557_v22  ;;  %2575 = vmatpush1.bf16.msra.mxu1 %v2557_v22  ;;  %v1823_v59 = vsel %vm1816_vm8, %v1819_v63, %v1822_v44 }
 0x24b   : > { %v1710_v27 = vadd.s32 3, %v1706_v29  ;;  %v2031_v57 = vsel %vm2024_vm13, %v2027_v34, %v2030_v49  ;;  %v1714_v53 = vxor.u32 2147483648, %v5326_v23  ;;  %v1717_v28 = vxor.u32 2147483648, %v5327_v51  ;;  %2560 = vmatprep.subr.bf16.mxu0 %v4664_v10  ;;  %2572 = vmatprep.subr.bf16.mxu1 %v4664_v10 }
 0x24c   : > { %v1512_v52 = vsel %vm1501_vm12, nan, %v1511_v55  ;;  %vm5329_vm5 = vcmp.lt.s32.totalorder %v5328_v45, 0  ;;  %vm1813_vm4 = vweird.f32 %v3751_v43  ;;  %v2032_v60 = vsel %vm2021_vm10, nan, %v2031_v57  ;;  %v2048_v55 = vld [vmem:[%s4980_s0 + $0x78] sm:$0xff] }
 0x24d   : > { %v1711_v8 = vand.u32 3, %v1710_v27  ;;  %v1912_v56 = vsel %vm5329_vm5, %v1911_v40, %v5325_v1  ;;  %v2565_v54 = vpack.c.bf16 %v1512_v52, %v1304_v20  ;;  %vm5331_vm9 = vnez %v5330_v12  ;;  %v2040_v20 = vld [vmem:[%s4980_s0 + $0x38] sm:$0xff] }
 0x24e   : > { %v1914_v24 = vsel %vm5331_vm9, 0, %v1912_v56  ;;  %v2878_v5 = vmov 0.0   ;;  %v1824_v10 = vsel %vm1813_vm4, nan, %v1823_v59  ;;  %2562 = vmatpush1.bf16.msra.mxu0 %v4698_v3  ;;  %2576 = vmatpush1.bf16.msra.mxu1 %v4698_v3  ;;  %v1922_v62 = vxor.u32 2147483648, %v4440_v21 }
 0x24f   : > { %2258 = vmatprep.mubr.f32.mxu0 %v2878_v5  ;;  %2306 = vmatprep.mubr.f32.mxu1 %v2878_v5  ;;  %vm1713_vm11 = vcmp.eq.s32.totalorder %v1711_v8, 0  ;;  %vm1716_vm2 = vcmp.eq.s32.totalorder %v1711_v8, 2  ;;  %v1918_v19 = vadd.s32 3, %v1914_v24  ;;  %v1925_v38 = vxor.u32 2147483648, %v4437_v50 }
 0x250   : > { %v1715_v43 = vsel %vm1713_vm11, %v5327_v51, %v1714_v53  ;;  %v1718_v61 = vsel %vm1716_vm2, %v1717_v28, %v5326_v23  ;;  %2564 = vmatprep.subr.bf16.mxu0 %v4725_v14  ;;  %2573 = vmatprep.subr.bf16.mxu1 %v4725_v14  ;;  %v2567_v31 = vpack.c.bf16 %v2032_v60, %v1824_v10  ;;  %vm1712_vm12 = vcmp.lt.s32.totalorder %v1711_v8, 2 }
 0x251   : > { %v1919_v58 = vand.u32 3, %v1918_v19  ;;  %v1719_v15 = vsel %vm1712_vm12, %v1715_v43, %v1718_v61  ;;  %vm1709_vm7 = vweird.f32 %v5321_v37  ;;  %vm1917_vm6 = vweird.f32 %v5328_v45 }
 0x252   : > { %2566 = vmatpush1.bf16.msra.mxu0 %v2565_v54  ;;  %2577 = vmatpush1.bf16.msra.mxu1 %v2565_v54  ;;  %v1720_v36 = vsel %vm1709_vm7, nan, %v1719_v15  ;;  %vm2145_vm0 = vcmask 523264  }
 0x253   : > { %vm1921_vm15 = vcmp.eq.s32.totalorder %v1919_v58, 0  ;;  %vm1924_vm10 = vcmp.eq.s32.totalorder %v1919_v58, 2  ;;  %vm1920_vm8 = vcmp.lt.s32.totalorder %v1919_v58, 2  ;;  %2568 = vmatprep.subr.bf16.mxu0 %v2567_v31  ;;  %2574 = vmatprep.subr.bf16.mxu1 %v2567_v31 }
 0x254   : > { %v1923_v3 = vsel %vm1921_vm15, %v4437_v50, %v1922_v62  ;;  %v1926_v18 = vsel %vm1924_vm10, %v1925_v38, %v4440_v21  ;;  %v2041_v21 = vld [vmem:[%s4980_s0 + $0x40] sm:$0xff]  ;;  %v2034_v50 = vld [vmem:[%s4980_s0 + $0x8] sm:$0xff] }
 0x255   : > { %v1927_v14 = vsel %vm1920_vm8, %v1923_v3, %v1926_v18 }
 0x256   : > { %v1928_v41 = vsel %vm1917_vm6, nan, %v1927_v14 }
 0x257   : > { %v2569_v48 = vpack.c.bf16 %v1928_v41, %v1720_v36 }
 0x259   : > { %2570 = vmatpush1.bf16.msra.mxu0 %v2569_v48  ;;  %2578 = vmatpush1.bf16.msra.mxu1 %v2569_v48 }
 0x25c   : > { %2533 = vmatmul.mubr.msk.f32.vlgmr.msra.gmra.mrb[0].mxu0 %vm2145_vm0, %v2033_v0  ;;  %2541 = vmatmul.mubr.msk.f32.vlgmr.msra.gmra.mrb[0].mxu1 %vm2145_vm0, %v2041_v21 }
 0x25d   : > { %2264 = vmatprep.mubr.f32.mxu0 %v2878_v5  ;;  %2312 = vmatprep.mubr.f32.mxu1 %v2878_v5 }
 0x260   : > { %2534 = vmatmul.mubr.msk.f32.gmra.mrb[2].mxu0 %vm2145_vm0, %v2034_v50  ;;  %2542 = vmatmul.mubr.msk.f32.gmra.mrb[2].mxu1 %vm2145_vm0, %v2042_v30 }
 0x261   : > { %2270 = vmatprep.mubr.f32.mxu0 %v2878_v5  ;;  %2318 = vmatprep.mubr.f32.mxu1 %v2878_v5 }
 0x264   : > { %2535 = vmatmul.mubr.msk.f32.gmra.mrb[4].mxu0 %vm2145_vm0, %v2035_v4  ;;  %2543 = vmatmul.mubr.msk.f32.gmra.mrb[4].mxu1 %vm2145_vm0, %v2043_v9 }
 0x265   : > { %2276 = vmatprep.mubr.f32.mxu0 %v2878_v5  ;;  %2324 = vmatprep.mubr.f32.mxu1 %v2878_v5 }
 0x268   : > { %2536 = vmatmul.mubr.msk.f32.gmra.mrb[6].mxu0 %vm2145_vm0, %v2036_v33  ;;  %2544 = vmatmul.mubr.msk.f32.gmra.mrb[6].mxu1 %vm2145_vm0, %v2044_v13  ;;  %v2073_v26 = vpop.permute.xlu1 %2072 }
 0x269   : > { %2282 = vmatprep.mubr.f32.mxu0 %v2878_v5  ;;  %2330 = vmatprep.mubr.f32.mxu1 %v2878_v5  ;;  %v2068_v16 = vpop.permute.xlu0 %2067 }
 0x26c   : > { %2537 = vmatmul.mubr.msk.f32.gmra.mrb[8].mxu0 %vm2145_vm0, %v2037_v39  ;;  %2545 = vmatmul.mubr.msk.f32.gmra.mrb[8].mxu1 %vm2145_vm0, %v2045_v6  ;;  %v2078_v17 = vpop.permute.xlu1 %2077 }
 0x26d   : > { %2288 = vmatprep.mubr.f32.mxu0 %v2878_v5  ;;  %2336 = vmatprep.mubr.f32.mxu1 %v2878_v5  ;;  %v2083_v25 = vpop.permute.xlu0 %2082 }
 0x270   : > { %2538 = vmatmul.mubr.msk.f32.gmra.mrb[10].mxu0 %vm2145_vm0, %v2038_v46  ;;  %2546 = vmatmul.mubr.msk.f32.gmra.mrb[10].mxu1 %vm2145_vm0, %v2046_v35  ;;  %v4870_v2 = vpop.permute.xlu1 %2087 }
 0x271   : > { %2294 = vmatprep.mubr.f32.mxu0 %v2878_v5  ;;  %2342 = vmatprep.mubr.f32.mxu1 %v2878_v5  ;;  %v4872_v37 = vpop.permute.xlu0 %2092 }
 0x274   : > { %2539 = vmatmul.mubr.msk.f32.gmra.mrb[12].mxu0 %vm2145_vm0, %v2039_v11  ;;  %2547 = vmatmul.mubr.msk.f32.gmra.mrb[12].mxu1 %vm2145_vm0, %v2047_v32 }
 0x275   : > { %2300 = vmatprep.mubr.f32.mxu0 %v2878_v5  ;;  %2348 = vmatprep.mubr.f32.mxu1 %v2878_v5  ;;  %v4874_v42 = vpop.permute.xlu1 %2097 }
 0x276   : > { %v4877_v47 = vpop.permute.xlu0 %2102 }
 0x278   : > { %2540 = vmatmul.mubr.msk.f32.gmra.mrb[14].mxu0 %vm2145_vm0, %v2040_v20  ;;  %2548 = vmatmul.mubr.msk.f32.gmra.mrb[14].mxu1 %vm2145_vm0, %v2048_v55 }
 0x279   : > { %v2108_v63 = vpop.permute.xlu1 %2107 }
 0x27a   : > { %v2113_v40 = vpop.permute.xlu0 %2112 }
 0x27d   : > { %v2118_v45 = vpop.permute.xlu1 %2117 }
 0x27e   : > { %v2123_v43 = vpop.permute.xlu0 %2122 }
 0x281   : > { %v2128_v14 = vpop.permute.xlu1 %2127 }
 0x282   : > { %v2133_v9 = vpop.permute.xlu0 %2132 }
 0x285   : > { %v2138_v20 = vpop.permute.xlu1 %2137 }
 0x32f   : > { %v2260_v44 = vpop.f32.mrb[0].mxu0  ;;  %v2308_v22 = vpop.f32.mrb[0].mxu1 }
 0x330   : > { %v2261_v34 = vadd.f32 %v2260_v44, %v2068_v16  ;;  %v2309_v7 = vadd.f32 %v2308_v22, %v2108_v63  ;;  %v2262_v29 = vpop.f32.mrb[1].mxu0  ;;  %v2310_v49 = vpop.f32.mrb[1].mxu1 }
 0x331   : > { %v2263_v27 = vadd.f32 %v2262_v29, %v2068_v16  ;;  %v2311_v1 = vadd.f32 %v2310_v49, %v2108_v63  ;;  %v2143_v44 = vpop.permute.xlu0 %2142 }
 0x332   : > { %2355 = vst [vmem:[%s4881_s19] sm:$0xff] %v2261_v34  ;;  %2371 = vst [vmem:[%s4881_s19 + $0x80] sm:$0xff] %v2309_v7 }
 0x333   : > { %2356 = vst [vmem:[%s4881_s19 + $0x8] sm:$0xff] %v2263_v27  ;;  %2372 = vst [vmem:[%s4881_s19 + $0x88] sm:$0xff] %v2311_v1  ;;  %v2266_v59 = vpop.f32.mrb[2].mxu0  ;;  %v2314_v57 = vpop.f32.mrb[2].mxu1 }
 0x334   : > { %v2267_v23 = vadd.f32 %v2266_v59, %v2073_v26  ;;  %v2315_v53 = vadd.f32 %v2314_v57, %v2113_v40  ;;  %v2268_v51 = vpop.f32.mrb[3].mxu0  ;;  %v2316_v28 = vpop.f32.mrb[3].mxu1 }
 0x335   : > { %v2269_v52 = vadd.f32 %v2268_v51, %v2073_v26  ;;  %v2317_v8 = vadd.f32 %v2316_v28, %v2113_v40 }
 0x336   : > { %2357 = vst [vmem:[%s4881_s19 + $0x10] sm:$0xff] %v2267_v23  ;;  %2373 = vst [vmem:[%s4881_s19 + $0x90] sm:$0xff] %v2315_v53 }
 0x337   : > { %2358 = vst [vmem:[%s4881_s19 + $0x18] sm:$0xff] %v2269_v52  ;;  %2374 = vst [vmem:[%s4881_s19 + $0x98] sm:$0xff] %v2317_v8  ;;  %v2272_v56 = vpop.f32.mrb[4].mxu0  ;;  %v2320_v54 = vpop.f32.mrb[4].mxu1 }
 0x338   : > { %v2273_v60 = vadd.f32 %v2272_v56, %v2078_v17  ;;  %v2321_v12 = vadd.f32 %v2320_v54, %v2118_v45  ;;  %v2274_v24 = vpop.f32.mrb[5].mxu0  ;;  %v2322_v5 = vpop.f32.mrb[5].mxu1 }
 0x339   : > { %v2275_v10 = vadd.f32 %v2274_v24, %v2078_v17  ;;  %v2323_v19 = vadd.f32 %v2322_v5, %v2118_v45 }
 0x33a   : > { %2359 = vst [vmem:[%s4881_s19 + $0x20] sm:$0xff] %v2273_v60  ;;  %2375 = vst [vmem:[%s4881_s19 + $0xa0] sm:$0xff] %v2321_v12 }
 0x33b   : > { %2360 = vst [vmem:[%s4881_s19 + $0x28] sm:$0xff] %v2275_v10  ;;  %2376 = vst [vmem:[%s4881_s19 + $0xa8] sm:$0xff] %v2323_v19  ;;  %v2278_v61 = vpop.f32.mrb[6].mxu0  ;;  %v2326_v62 = vpop.f32.mrb[6].mxu1 }
 0x33c   : > { %v2279_v38 = vadd.f32 %v2278_v61, %v2083_v25  ;;  %v2327_v31 = vadd.f32 %v2326_v62, %v2123_v43  ;;  %v2280_v58 = vpop.f32.mrb[7].mxu0  ;;  %v2328_v15 = vpop.f32.mrb[7].mxu1 }
 0x33d   : > { %v2281_v3 = vadd.f32 %v2280_v58, %v2083_v25  ;;  %v2329_v18 = vadd.f32 %v2328_v15, %v2123_v43 }
 0x33e   : > { %2361 = vst [vmem:[%s4881_s19 + $0x30] sm:$0xff] %v2279_v38  ;;  %2377 = vst [vmem:[%s4881_s19 + $0xb0] sm:$0xff] %v2327_v31 }
 0x33f   : > { %2362 = vst [vmem:[%s4881_s19 + $0x38] sm:$0xff] %v2281_v3  ;;  %2378 = vst [vmem:[%s4881_s19 + $0xb8] sm:$0xff] %v2329_v18  ;;  %v2284_v36 = vpop.f32.mrb[8].mxu0  ;;  %v2332_v41 = vpop.f32.mrb[8].mxu1 }
 0x340   : > { %v2285_v48 = vadd.f32 %v2284_v36, %v4870_v2  ;;  %v2333_v0 = vadd.f32 %v2332_v41, %v2128_v14  ;;  %v2286_v21 = vpop.f32.mrb[9].mxu0  ;;  %v2334_v50 = vpop.f32.mrb[9].mxu1 }
 0x341   : > { %v2287_v30 = vadd.f32 %v2286_v21, %v4870_v2  ;;  %v2335_v4 = vadd.f32 %v2334_v50, %v2128_v14 }
 0x342   : > { %2363 = vst [vmem:[%s4881_s19 + $0x40] sm:$0xff] %v2285_v48  ;;  %2379 = vst [vmem:[%s4881_s19 + $0xc0] sm:$0xff] %v2333_v0 }
 0x343   : > { %2364 = vst [vmem:[%s4881_s19 + $0x48] sm:$0xff] %v2287_v30  ;;  %2380 = vst [vmem:[%s4881_s19 + $0xc8] sm:$0xff] %v2335_v4  ;;  %v2290_v33 = vpop.f32.mrb[10].mxu0  ;;  %v2338_v13 = vpop.f32.mrb[10].mxu1 }
 0x344   : > { %v2291_v39 = vadd.f32 %v2290_v33, %v4872_v37  ;;  %v2339_v6 = vadd.f32 %v2338_v13, %v2133_v9  ;;  %v2292_v46 = vpop.f32.mrb[11].mxu0  ;;  %v2340_v35 = vpop.f32.mrb[11].mxu1 }
 0x345   : > { %v2293_v11 = vadd.f32 %v2292_v46, %v4872_v37  ;;  %v2341_v32 = vadd.f32 %v2340_v35, %v2133_v9 }
 0x346   : > { %2365 = vst [vmem:[%s4881_s19 + $0x50] sm:$0xff] %v2291_v39  ;;  %2381 = vst [vmem:[%s4881_s19 + $0xd0] sm:$0xff] %v2339_v6 }
 0x347   : > { %2366 = vst [vmem:[%s4881_s19 + $0x58] sm:$0xff] %v2293_v11  ;;  %2382 = vst [vmem:[%s4881_s19 + $0xd8] sm:$0xff] %v2341_v32  ;;  %v2296_v55 = vpop.f32.mrb[12].mxu0  ;;  %v2344_v26 = vpop.f32.mrb[12].mxu1 }
 0x348   : > { %v2297_v16 = vadd.f32 %v2296_v55, %v4874_v42  ;;  %v2345_v17 = vadd.f32 %v2344_v26, %v2138_v20  ;;  %v2298_v25 = vpop.f32.mrb[13].mxu0  ;;  %v2346_v2 = vpop.f32.mrb[13].mxu1 }
 0x349   : > { %v2299_v37 = vadd.f32 %v2298_v25, %v4874_v42  ;;  %v2347_v63 = vadd.f32 %v2346_v2, %v2138_v20 }
 0x34a   : > { %2367 = vst [vmem:[%s4881_s19 + $0x60] sm:$0xff] %v2297_v16  ;;  %2383 = vst [vmem:[%s4881_s19 + $0xe0] sm:$0xff] %v2345_v17 }
 0x34b   : > { %2368 = vst [vmem:[%s4881_s19 + $0x68] sm:$0xff] %v2299_v37  ;;  %2384 = vst [vmem:[%s4881_s19 + $0xe8] sm:$0xff] %v2347_v63  ;;  %v2302_v22 = vpop.f32.mrb[14].mxu0  ;;  %v2350_v34 = vpop.f32.mrb[14].mxu1 }
 0x34c   : > { %v2303_v7 = vadd.f32 %v2302_v22, %v4877_v47  ;;  %v2351_v29 = vadd.f32 %v2350_v34, %v2143_v44  ;;  %v2304_v42 = vpop.f32.mrb[15].mxu0  ;;  %v2352_v49 = vpop.f32.mrb[15].mxu1 }
 0x34d   : > { %v2305_v27 = vadd.f32 %v2304_v42, %v4877_v47  ;;  %v2353_v1 = vadd.f32 %v2352_v49, %v2143_v44 }
 0x34e   : > { %2369 = vst [vmem:[%s4881_s19 + $0x70] sm:$0xff] %v2303_v7  ;;  %2385 = vst [vmem:[%s4881_s19 + $0xf0] sm:$0xff] %v2351_v29 }
 0x34f   : > { %2370 = vst [vmem:[%s4881_s19 + $0x78] sm:$0xff] %v2305_v27  ;;  %2386 = vst [vmem:[%s4881_s19 + $0xf8] sm:$0xff] %v2353_v1 }
 0x350   : > { %2802 = shalt.err (!%p2799_p3)
}
 0x351   : > { %s2803_s6 = scalar_lea.hbm %s4923_s27, 4096  ;;  %s2807_s9 = scalar_lea.hbm %s4983_s3, 8192 }
 0x352   : > { %p2804_p5 = scmp.ne.s32.totalorder %s4923_s27, %s2803_s6  ;;  %p2808_p9 = scmp.lt.u32.totalorder %s4923_s27, %s4983_s3 }
 0x353   : > { %p2809_p10 = scmp.lt.u32.totalorder %s2807_s9, %s2803_s6  ;;  %p2811_p12 = scmp.lt.u32.totalorder %s2803_s6, %s4923_s27 }
 0x354   : > { %p2805_p6 = pnand %p2804_p5, %p2942_p4 }
 0x355   : > { %p2810_p11 = por %p2809_p10, %p2808_p9 }
 0x356   : > { %p2806_p7 = pneg %p2805_p6 }
 0x357   : > { %p2812_p13 = por %p2811_p12, %p2810_p11 }
 0x359   : > { %p2813_p0 = pnand %p2812_p13, %p2806_p7 }
 0x35b   : > { %2816 = shalt.err (!%p2813_p0)
}
 0x35c   : > { %s2880_s18 = smov 256   ;;  %s2881_s19 = smov 16  }
 0x35d   : > { %2643 = dma.vmem_to_hbm [thread:$0]  (%p2942_p4), %s4925_s23, 4096, %s4923_s27, %s4934_s28, %s2880_s18, %s2880_s18, %s2881_s19  }
 0x35e PF: > { %p2649_p1 = scmp.ge.s32.totalorder %s2867_s17, 2  ;;  %s2418_s21 = sand.u32 1, %s2847_s12  }
 0x35f   : > { %s2419_s15 = scalar_lea.sflag [#allocation3], %s2418_s21 }
 0x360   : > { %p2646_p2 = pnand %p2649_p1, %p2949_p8 }
 0x362   : > { %2842 = dma.done.wait (!%p2646_p2), %s2419_s15, 4096  }
 0x363   : > { %2844 = vsyncadd (!%p2646_p2), %s2419_s15, 4294963200  ;;  %s16_s17 = sadd.s32 1, %s2867_s17   ;;  %s5332_s12 = smov %s2851_s13 }
 0x364   : > { %p13_p3 = scmp.ge.s32.totalorder %s16_s17, 4   ;;  %s5333_s13 = smov %s2855_s14 }
 0x365   : > { %s5334_s14 = smov %s2955_s25  ;;  %s5335_s15 = smov %s2863_s16 }
 0x366   : > { %s5336_s16 = smov %s5338_s20  ;;  %15 = sbr.rel (!%p13_p3) target bundleno = 4 (0x4), region = 64 }
 0x36d   :  { %2424 = vsyncpa [#allocation3], 1 }
 0x36e   :  { %2426 = vsyncpa [#allocation3 + $0x1], 1 }

</bundles_post_ra>
